<compile_context>
chip_gen: v7x
topology: tpu7x:2x2x1
jax: 0.10.0
libtpu: 0.0.40
codegen_flags: <defaults>
</compile_context>

<pallas_src>
import math
import functools

import jax
import jax.numpy as jnp
from jax import lax
from jax.experimental import pallas as pl
from jax.experimental.pallas import tpu as pltpu

_LN_EPS = 1e-5
_INV_SQRT2 = 1.0 / math.sqrt(2.0)


def _gelu_exact(x):
    # exact (erf) GELU to match torch.nn.GELU()
    return 0.5 * x * (1.0 + lax.erf(x * _INV_SQRT2))


def _token_block(n):
    """Largest row-tile (multiple of 8, <=256) that divides the token count."""
    for cand in (256, 128, 64, 32, 16, 8):
        if n % cand == 0:
            return cand
    return n


def _hidden_block(h):
    """Hidden-axis (K) tile for the base-expert FFN; multiple of 128 when possible."""
    for cand in (2048, 1024, 512, 256, 128):
        if h % cand == 0:
            return cand
    return h


# -----------------------------------------------------------------------------
# Compiler-params / pipeline-mode helpers
# -----------------------------------------------------------------------------
_VMEM_LIMIT = -1          # sentinel: not yet probed
_BUFFERED1_OK = None      # sentinel: not yet probed


def _vmem_limit():
    """Per-kernel scoped-VMEM budget derived from the hardware (with headroom)."""
    global _VMEM_LIMIT
    if _VMEM_LIMIT == -1:
        try:
            cap = int(pltpu.get_tpu_info().vmem_capacity_bytes)
            _VMEM_LIMIT = min(max(cap - (16 << 20), 16 << 20), 100 << 20)
        except Exception:
            _VMEM_LIMIT = None   # fall back to compiler defaults
    return _VMEM_LIMIT


def _cparams(*sems):
    kw = dict(dimension_semantics=tuple(sems))
    v = _vmem_limit()
    if v is not None:
        kw["vmem_limit_bytes"] = v
    return pltpu.CompilerParams(**kw)


def _buffered_one_ok():
    """Probe whether pipeline_mode=pl.Buffered(1) is supported on this install."""
    global _BUFFERED1_OK
    if _BUFFERED1_OK is None:
        try:
            def _probe(x_ref, o_ref):
                o_ref[...] = x_ref[...] + 1.0
            spec = pl.BlockSpec((8, 128), lambda i: (0, 0),
                                pipeline_mode=pl.Buffered(buffer_count=1))
            out = pl.pallas_call(
                _probe,
                out_shape=jax.ShapeDtypeStruct((8, 128), jnp.float32),
                grid=(2,),
                in_specs=[spec],
                out_specs=pl.BlockSpec((8, 128), lambda i: (0, 0)),
            )(jnp.zeros((8, 128), jnp.float32))
            jax.block_until_ready(out)
            _BUFFERED1_OK = True
        except Exception:
            _BUFFERED1_OK = False
    return _BUFFERED1_OK


def _const_spec(shape, index_map):
    """BlockSpec for a grid-invariant (weight) block: single-buffered when possible."""
    if _buffered_one_ok():
        return pl.BlockSpec(shape, index_map,
                            pipeline_mode=pl.Buffered(buffer_count=1))
    return pl.BlockSpec(shape, index_map)


# -----------------------------------------------------------------------------
# Pallas kernels
# -----------------------------------------------------------------------------
def ln_qkv_kernel(x_ref, g_ref, b_ref, w_ref, bias_ref, o_ref, *, eps):
    """Fused LayerNorm1 + QKV projection: out = LN(x) @ Wqkv + bqkv  ([bn, 3D])."""
    x = x_ref[...].astype(jnp.float32)
    mu = jnp.mean(x, axis=-1, keepdims=True)
    var = jnp.mean((x - mu) ** 2, axis=-1, keepdims=True)
    h = (x - mu) * lax.rsqrt(var + eps) * g_ref[...] + b_ref[...]
    y = jnp.dot(h.astype(jnp.bfloat16), w_ref[...],
                preferred_element_type=jnp.float32) + bias_ref[...]
    o_ref[...] = y.astype(o_ref.dtype)


def attn_outproj_kernel(qkv_ref, res_ref, wo_ref, bo_ref, o_ref, *, num_heads, scale):
    """Per-batch fused MHA + output projection + residual add.

    qkv_ref: (S, 3D) for one batch element; heads are handled with static lane
    slices (no XLA head transposes) and re-merged with a lane concat; the
    out-projection + residual add keeps the attention output in VMEM.
    """
    x = qkv_ref[...].astype(jnp.float32)       # (S, 3D)
    s_len, d3 = x.shape
    d = d3 // 3
    hd = d // num_heads
    heads = []
    # TODO(synk): for long sequences replace with a kv-tiled flash-style
    # online-softmax loop; the full (S, S) score tile is the VMEM limiter.
    for h in range(num_heads):
        q = x[:, h * hd:(h + 1) * hd] * scale
        k = x[:, d + h * hd: d + (h + 1) * hd]
        v = x[:, 2 * d + h * hd: 2 * d + (h + 1) * hd]
        s = jnp.dot(q, k.T, preferred_element_type=jnp.float32)
        s = s - jnp.max(s, axis=-1, keepdims=True)
        p = jnp.exp(s)
        o = jnp.dot(p.astype(jnp.bfloat16), v.astype(jnp.bfloat16),
                    preferred_element_type=jnp.float32)
        o = o * pl.reciprocal(jnp.sum(p, axis=-1, keepdims=True), approx=True)
        heads.append(o)
    attn = jnp.concatenate(heads, axis=-1)     # (S, D): head merge, no transpose
    y = jnp.dot(attn.astype(jnp.bfloat16), wo_ref[...],
                preferred_element_type=jnp.float32) + bo_ref[...]
    o_ref[...] = (res_ref[...].astype(jnp.float32) + y).astype(o_ref.dtype)


def ln2_router_kernel(x_ref, g_ref, b_ref, wr_ref, br_ref, hn_ref, logit_ref, *, eps):
    """Fused LayerNorm2 + router logits.

    Also emits normalize(h) (zero-mean / unit-var, no affine): every expert's
    LayerNorm shares these statistics, and each expert's gamma/beta have been
    folded into its fc1 weights at init, so the experts consume hn directly.
    """
    x = x_ref[...].astype(jnp.float32)
    mu = jnp.mean(x, axis=-1, keepdims=True)
    var = jnp.mean((x - mu) ** 2, axis=-1, keepdims=True)
    h = (x - mu) * lax.rsqrt(var + eps) * g_ref[...] + b_ref[...]
    mu2 = jnp.mean(h, axis=-1, keepdims=True)
    var2 = jnp.mean((h - mu2) ** 2, axis=-1, keepdims=True)
    hn_ref[...] = ((h - mu2) * lax.rsqrt(var2 + eps)).astype(hn_ref.dtype)
    logit_ref[...] = (jnp.dot(h.astype(jnp.bfloat16), wr_ref[...],
                              preferred_element_type=jnp.float32)
                      + br_ref[...]).astype(logit_ref.dtype)


def base_experts_kernel(hn_ref, res_ref, w1_ref, b1_ref, w2_ref, b2_ref, o_ref, acc_ref):
    """out = residual + global_expert(h) + vision_expert(h), K-tiled over hidden.

    The two base experts (all tokens are vision tokens) are concatenated into one
    FFN (hidden axis = 8*D) with their LayerNorm affines pre-folded into fc1;
    grid = (token tiles, hidden tiles) with an f32 accumulator in VMEM.
    """
    j = pl.program_id(1)

    @pl.when(j == 0)
    def _():
        acc_ref[...] = res_ref[...].astype(jnp.float32) + b2_ref[...]

    h1 = jnp.dot(hn_ref[...].astype(jnp.bfloat16), w1_ref[...],
                 preferred_element_type=jnp.float32) + b1_ref[...]
    h1 = _gelu_exact(h1)
    acc_ref[...] += jnp.dot(h1.astype(jnp.bfloat16), w2_ref[...],
                            preferred_element_type=jnp.float32)

    @pl.when(j == pl.num_programs(1) - 1)
    def _():
        o_ref[...] = acc_ref[...].astype(o_ref.dtype)


def grouped_expert_kernel(te_ref, h_ref, w_ref, w1_ref, b1_ref, w2_ref, b2_ref, o_ref):
    """One row-tile of tokens, all routed to the same general expert.

    The expert's weight blocks are selected by the scalar-prefetched per-tile
    expert id in the BlockSpec index_maps (squeezed leading expert dim); output
    is pre-scaled by the per-row routing weight (0 for padding rows).
    """
    del te_ref
    h1 = jnp.dot(h_ref[...].astype(jnp.bfloat16), w1_ref[...],
                 preferred_element_type=jnp.float32) + b1_ref[...]
    h1 = _gelu_exact(h1)
    y = jnp.dot(h1.astype(jnp.bfloat16), w2_ref[...],
                preferred_element_type=jnp.float32) + b2_ref[...]
    o_ref[...] = (y * w_ref[...].astype(jnp.float32)).astype(o_ref.dtype)


def final_ln_kernel(x_ref, g_ref, b_ref, o_ref, *, eps):
    x = x_ref[...].astype(jnp.float32)
    mu = jnp.mean(x, axis=-1, keepdims=True)
    var = jnp.mean((x - mu) ** 2, axis=-1, keepdims=True)
    y = (x - mu) * lax.rsqrt(var + eps) * g_ref[...] + b_ref[...]
    o_ref[...] = y.astype(o_ref.dtype)


# -----------------------------------------------------------------------------
# pallas_call wrappers
# -----------------------------------------------------------------------------
def fused_ln_qkv(x2, g, b, wqkv, bqkv):
    n, d = x2.shape
    d3 = wqkv.shape[1]
    bn = _token_block(n)
    return pl.pallas_call(
        functools.partial(ln_qkv_kernel, eps=_LN_EPS),
        out_shape=jax.ShapeDtypeStruct((n, d3), x2.dtype),
        grid=(n // bn,),
        in_specs=[pl.BlockSpec((bn, d), lambda i: (i, 0)),
                  pl.BlockSpec((1, d), lambda i: (0, 0)),
                  pl.BlockSpec((1, d), lambda i: (0, 0)),
                  _const_spec((d, d3), lambda i: (0, 0)),
                  pl.BlockSpec((1, d3), lambda i: (0, 0))],
        out_specs=pl.BlockSpec((bn, d3), lambda i: (i, 0)),
        compiler_params=_cparams("parallel"),
    )(x2, g, b, wqkv, bqkv)


def fused_attention_block(qkv3, x3, wo, bo, num_heads):
    B, S, d3 = qkv3.shape
    d = d3 // 3
    scale = 1.0 / math.sqrt(d // num_heads)
    return pl.pallas_call(
        functools.partial(attn_outproj_kernel, num_heads=num_heads, scale=scale),
        out_shape=jax.ShapeDtypeStruct((B, S, d), x3.dtype),
        grid=(B,),
        in_specs=[pl.BlockSpec((None, S, d3), lambda b: (b, 0, 0)),
                  pl.BlockSpec((None, S, d), lambda b: (b, 0, 0)),
                  _const_spec((d, d), lambda b: (0, 0)),
                  pl.BlockSpec((1, d), lambda b: (0, 0))],
        out_specs=pl.BlockSpec((None, S, d), lambda b: (b, 0, 0)),
        compiler_params=_cparams("parallel"),
    )(qkv3, x3, wo, bo)


def fused_ln2_router(x2, g, b, wr, br):
    n, d = x2.shape
    ep = wr.shape[1]              # already padded to a 128-lane multiple
    bn = _token_block(n)
    return pl.pallas_call(
        functools.partial(ln2_router_kernel, eps=_LN_EPS),
        out_shape=(jax.ShapeDtypeStruct((n, d), x2.dtype),
                   jax.ShapeDtypeStruct((n, ep), jnp.float32)),
        grid=(n // bn,),
        in_specs=[pl.BlockSpec((bn, d), lambda i: (i, 0)),
                  pl.BlockSpec((1, d), lambda i: (0, 0)),
                  pl.BlockSpec((1, d), lambda i: (0, 0)),
                  _const_spec((d, ep), lambda i: (0, 0)),
                  pl.BlockSpec((1, ep), lambda i: (0, 0))],
        out_specs=(pl.BlockSpec((bn, d), lambda i: (i, 0)),
                   pl.BlockSpec((bn, ep), lambda i: (i, 0))),
        compiler_params=_cparams("parallel"),
    )(x2, g, b, wr, br)


def fused_base_experts(hn2, residual, bp):
    n, d = hn2.shape
    h2 = bp["w1"].shape[1]        # concatenated hidden = 2 * 4 * D
    bn = _token_block(n)
    bh = _hidden_block(h2)
    row = pl.BlockSpec((bn, d), lambda i, j: (i, 0))
    return pl.pallas_call(
        base_experts_kernel,
        out_shape=jax.ShapeDtypeStruct((n, d), hn2.dtype),
        grid=(n // bn, h2 // bh),
        in_specs=[row, row,
                  pl.BlockSpec((d, bh), lambda i, j: (0, j)),
                  pl.BlockSpec((1, bh), lambda i, j: (0, j)),
                  pl.BlockSpec((bh, d), lambda i, j: (j, 0)),
                  pl.BlockSpec((1, d), lambda i, j: (0, 0))],
        out_specs=pl.BlockSpec((bn, d), lambda i, j: (i, 0)),
        scratch_shapes=[pltpu.VMEM((bn, d), jnp.float32)],
        compiler_params=_cparams("parallel", "arbitrary"),
    )(hn2, residual, bp["w1"], bp["b1"], bp["w2"], bp["b2"])


def moe_general_dispatch(hn2, base, top_i, top_w, gp, *, block_rows=128):
    """Grouped general-expert MoE: gather -> per-expert FFN -> unsort + k-sum.

    Only the top-k selected (token, expert) pairs run the expert FFN.  Tokens are
    sorted by expert (tiny XLA glue), each expert group padded to a multiple of
    `block_rows` (MXU-sized tiles), and the kernel's weight BlockSpecs pick the
    expert's weights via a scalar-prefetched per-tile expert id.  All dispatch /
    combine glue is gather-only (no scatters, no duplicate-index scatter-add).
    """
    n, d = hn2.shape
    e, _, hidden = gp["w1"].shape
    k = top_i.shape[1]
    nk = n * k

    flat_e = top_i.reshape(-1).astype(jnp.int32)
    flat_t = jnp.broadcast_to(jnp.arange(n, dtype=jnp.int32)[:, None], (n, k)).reshape(-1)
    flat_w = top_w.reshape(-1).astype(jnp.float32)

    order = jnp.argsort(flat_e)
    se, st, sw = flat_e[order], flat_t[order], flat_w[order]

    gsizes = jnp.bincount(se, length=e).astype(jnp.int32)
    gstart = jnp.concatenate([jnp.zeros((1,), jnp.int32),
                              jnp.cumsum(gsizes)[:-1].astype(jnp.int32)])
    padded = ((gsizes + block_rows - 1) // block_rows) * block_rows
    pend = jnp.cumsum(padded).astype(jnp.int32)
    pstart = pend - padded

    m_pad = ((nk + e * (block_rows - 1) + block_rows - 1) // block_rows) * block_rows
    num_tiles = m_pad // block_rows

    # Gather-only construction of the expert-sorted dispatch buffer.
    rows = jnp.arange(m_pad, dtype=jnp.int32)
    row_e = jnp.searchsorted(pend, rows, side="right").astype(jnp.int32)
    row_ec = jnp.minimum(row_e, e - 1)
    off = rows - pstart[row_ec]
    valid = (row_e < e) & (off < gsizes[row_ec])
    src = jnp.where(valid, gstart[row_ec] + off, 0)
    tok_sorted = jnp.where(valid, st[src], 0)
    w_sorted = jnp.where(valid, sw[src], 0.0)[:, None]
    h_sorted = hn2[tok_sorted]                       # padding rows: weight 0

    tile_expert = jnp.minimum(
        jnp.searchsorted(pend, jnp.arange(num_tiles, dtype=jnp.int32) * block_rows,
                         side="right"),
        e - 1).astype(jnp.int32)

    row = pl.BlockSpec((block_rows, d), lambda i, te: (i, 0))
    wrow = pl.BlockSpec((block_rows, 1), lambda i, te: (i, 0))
    emat1 = pl.BlockSpec((None, d, hidden), lambda i, te: (te[i], 0, 0))
    evec_h = pl.BlockSpec((None, 1, hidden), lambda i, te: (te[i], 0, 0))
    emat2 = pl.BlockSpec((None, hidden, d), lambda i, te: (te[i], 0, 0))
    evec_d = pl.BlockSpec((None, 1, d), lambda i, te: (te[i], 0, 0))

    out_sorted = pl.pallas_call(
        grouped_expert_kernel,
        out_shape=jax.ShapeDtypeStruct((m_pad, d), hn2.dtype),
        grid_spec=pltpu.PrefetchScalarGridSpec(
            num_scalar_prefetch=1,
            grid=(num_tiles,),
            in_specs=[row, wrow, emat1, evec_h, emat2, evec_d],
            out_specs=row,
        ),
        compiler_params=_cparams("parallel"),
    )(tile_expert, h_sorted, w_sorted,
      gp["w1"], gp["b1"], gp["w2"], gp["b2"])

    # Unsort by gathering each (token, k) pair's output row, then sum over k.
    dest_sorted = pstart[se] + (jnp.arange(nk, dtype=jnp.int32) - gstart[se])
    inv = jnp.argsort(order)
    per_pair = out_sorted[dest_sorted[inv]]          # (nk, d), already weighted
    return base + per_pair.reshape(n, k, d).sum(axis=1).astype(base.dtype)


def final_layernorm(x2, g, b):
    n, d = x2.shape
    bn = _token_block(n)
    return pl.pallas_call(
        functools.partial(final_ln_kernel, eps=_LN_EPS),
        out_shape=jax.ShapeDtypeStruct((n, d), x2.dtype),
        grid=(n // bn,),
        in_specs=[pl.BlockSpec((bn, d), lambda i: (i, 0)),
                  pl.BlockSpec((1, d), lambda i: (0, 0)),
                  pl.BlockSpec((1, d), lambda i: (0, 0))],
        out_specs=pl.BlockSpec((bn, d), lambda i: (i, 0)),
        compiler_params=_cparams("parallel"),
    )(x2, g, b)


# -----------------------------------------------------------------------------
# Parameter construction (deterministic, synthetic) + kernel-layout packing
# -----------------------------------------------------------------------------
def init_expert(key, d, hidden):
    k1, k2 = jax.random.split(key)
    return dict(
        ln_g=jnp.ones((1, d), jnp.float32),
        ln_b=jnp.zeros((1, d), jnp.float32),
        w1=0.02 * jax.random.normal(k1, (d, hidden), jnp.float32),
        b1=jnp.zeros((1, hidden), jnp.float32),
        w2=0.02 * jax.random.normal(k2, (hidden, d), jnp.float32),
        b2=jnp.zeros((1, d), jnp.float32),
    )


def init_general_experts(key, d, hidden, num_experts):
    k1, k2 = jax.random.split(key)
    return dict(
        ln_g=jnp.ones((num_experts, 1, d), jnp.float32),
        ln_b=jnp.zeros((num_experts, 1, d), jnp.float32),
        w1=0.02 * jax.random.normal(k1, (num_experts, d, hidden), jnp.float32),
        b1=jnp.zeros((num_experts, 1, hidden), jnp.float32),
        w2=0.02 * jax.random.normal(k2, (num_experts, hidden, d), jnp.float32),
        b2=jnp.zeros((num_experts, 1, d), jnp.float32),
    )


def init_layer(key, d, num_experts):
    """Torch-like parameter layout (f32), mirroring UnifiedModalEncoder."""
    ks = jax.random.split(key, 6)
    hidden = 4 * d
    return dict(
        norm1_g=jnp.ones((1, d), jnp.float32), norm1_b=jnp.zeros((1, d), jnp.float32),
        norm2_g=jnp.ones((1, d), jnp.float32), norm2_b=jnp.zeros((1, d), jnp.float32),
        wqkv=0.02 * jax.random.normal(ks[0], (d, 3 * d), jnp.float32),
        bqkv=jnp.zeros((1, 3 * d), jnp.float32),
        wo=0.02 * jax.random.normal(ks[1], (d, d), jnp.float32),
        bo=jnp.zeros((1, d), jnp.float32),
        router_w=0.02 * jax.random.normal(ks[2], (d, num_experts), jnp.float32),
        router_b=jnp.zeros((1, num_experts), jnp.float32),
        global_expert=init_expert(ks[3], d, hidden),
        vision_expert=init_expert(ks[4], d, hidden),
        # TODO(synk): the text expert of the PyTorch module is unreachable for
        # ImageEncoder (modality_type == 0 everywhere) and is therefore omitted.
        general=init_general_experts(ks[5], d, num_experts * 0 + hidden, num_experts)
        if False else init_general_experts(ks[5], d, hidden, num_experts),
    )


def pack_layer(p, d, num_experts):
    """Fold expert LayerNorm affines into fc1, concat base experts, cast weights bf16."""
    ge, ve, gp = p["global_expert"], p["vision_expert"], p["general"]

    def fold(exp):
        w1p = exp["ln_g"].reshape(d, 1) * exp["w1"]          # (d, h)
        b1p = exp["ln_b"] @ exp["w1"] + exp["b1"]            # (1, h)
        return w1p, b1p

    gw1, gb1 = fold(ge)
    vw1, vb1 = fold(ve)
    base = dict(
        w1=jnp.concatenate([gw1, vw1], axis=1).astype(jnp.bfloat16),   # (d, 2h)
        b1=jnp.concatenate([gb1, vb1], axis=1),                        # (1, 2h) f32
        w2=jnp.concatenate([ge["w2"], ve["w2"]], axis=0).astype(jnp.bfloat16),
        b2=ge["b2"] + ve["b2"],                                        # (1, d) f32
    )

    gen_w1 = (jnp.swapaxes(gp["ln_g"], 1, 2) * gp["w1"]).astype(jnp.bfloat16)
    gen_b1 = jnp.matmul(gp["ln_b"], gp["w1"]) + gp["b1"]
    general = dict(w1=gen_w1, b1=gen_b1,
                   w2=gp["w2"].astype(jnp.bfloat16), b2=gp["b2"])

    ep = ((num_experts + 127) // 128) * 128
    wr = jnp.zeros((d, ep), jnp.float32).at[:, :num_experts].set(p["router_w"])
    br = jnp.zeros((1, ep), jnp.float32).at[:, :num_experts].set(p["router_b"])

    return dict(
        norm1_g=p["norm1_g"], norm1_b=p["norm1_b"],
        norm2_g=p["norm2_g"], norm2_b=p["norm2_b"],
        wqkv=p["wqkv"].astype(jnp.bfloat16), bqkv=p["bqkv"],
        wo=p["wo"].astype(jnp.bfloat16), bo=p["bo"],
        router_w=wr.astype(jnp.bfloat16), router_b=br,
        base=base, general=general,
    )


def init_image_encoder(key, d, num_layers, num_experts):
    ks = jax.random.split(key, num_layers + 1)
    layers = [pack_layer(init_layer(ks[i], d, num_experts), d, num_experts)
              for i in range(num_layers)]
    return dict(layers=layers,
                norm_g=jnp.ones((1, d), jnp.float32),
                norm_b=jnp.zeros((1, d), jnp.float32))


# -----------------------------------------------------------------------------
# Forward pass (hot paths in Pallas, tiny routing/sort glue in XLA)
# -----------------------------------------------------------------------------
def unified_modal_encoder_forward(x3, p, *, num_heads, top_k):
    B, S, d = x3.shape
    n = B * S
    num_experts = p["general"]["w1"].shape[0]
    x2 = x3.reshape(n, d)

    # --- self-attention block: x = x + Wo * MHA(LN1(x)) -------------------------
    qkv = fused_ln_qkv(x2, p["norm1_g"], p["norm1_b"], p["wqkv"], p["bqkv"])
    x3 = fused_attention_block(qkv.reshape(B, S, 3 * d), x3, p["wo"], p["bo"], num_heads)
    x2 = x3.reshape(n, d)

    # --- MoE block ---------------------------------------------------------------
    hn2, logits_p = fused_ln2_router(x2, p["norm2_g"], p["norm2_b"],
                                     p["router_w"], p["router_b"])
    probs = jax.nn.softmax(logits_p[:, :num_experts], axis=-1)
    top_v, top_i = lax.top_k(probs, top_k)
    top_w = jax.nn.softmax(top_v, axis=-1)     # matches F.softmax(top_k_probs, -1)

    # residual + global expert + vision expert (all tokens are "vision")
    base = fused_base_experts(hn2, x2, p["base"])
    # + selected general experts via grouped-matmul dispatch
    out2 = moe_general_dispatch(hn2, base, top_i, top_w, p["general"])
    return out2.reshape(B, S, d)


def image_encoder_forward(x, params, *, num_heads, top_k):
    b, s, d = x.shape
    for layer_p in params["layers"]:
        x = unified_modal_encoder_forward(x, layer_p, num_heads=num_heads, top_k=top_k)
    x2 = final_layernorm(x.reshape(b * s, d), params["norm_g"], params["norm_b"])
    return x2.reshape(b, s, d)


# -----------------------------------------------------------------------------
if __name__ == "__main__":
    B, S, D = 2, 8, 128
    NUM_LAYERS = 2
    NUM_HEADS = 8
    NUM_EXPERTS = 8
    TOP_K = 2

    # Probe hardware / pipeline-mode support once, eagerly.
    _vmem_limit()
    _buffered_one_ok()

    key = jax.random.PRNGKey(0)
    kx, kp = jax.random.split(key)
    x = jax.random.normal(kx, (B, S, D), jnp.float32)
    params = init_image_encoder(kp, D, NUM_LAYERS, NUM_EXPERTS)

    fwd = jax.jit(functools.partial(image_encoder_forward,
                                    num_heads=NUM_HEADS, top_k=TOP_K))
    out = fwd(x, params)
    jax.block_until_ready(out)
    assert out.shape == (B, S, D)
    print("KERNEL_OK")
</pallas_src>

<mosaic_0001>
module attributes {stable_mosaic.version = 11 : i64} {
  func.func @_probe(%arg0: i32, %arg1: memref<8x128xf32, #tpu.memory_space<vmem>>, %arg2: memref<8x128xf32, #tpu.memory_space<vmem>>) attributes {dimension_semantics = [#tpu.dimension_semantics<arbitrary>], iteration_bounds = array<i64: 2>, scalar_prefetch = 0 : i64, scratch_operands = 0 : i64, tpu.core_type = #tpu.core_type<tc>, window_params = [{pipeline_mode = #tpu.pipeline_mode<synchronous>, transform_indices = @transform_0, window_bounds = array<i64: 8, 128>}, {pipeline_mode = #tpu.pipeline_mode<synchronous>, transform_indices = @transform_1, window_bounds = array<i64: 8, 128>}]} {
    %c0 = arith.constant 0 : index
    %c0_0 = arith.constant 0 : index
    %0 = vector.load %arg1[%c0, %c0_0] : memref<8x128xf32, #tpu.memory_space<vmem>>, vector<8x128xf32>
    %cst = arith.constant 1.000000e+00 : f32
    %1 = vector.broadcast %cst : f32 to vector<8x128xf32>
    %2 = arith.addf %0, %1 : vector<8x128xf32>
    %c0_1 = arith.constant 0 : index
    %c0_2 = arith.constant 0 : index
    %3 = vector.load %arg2[%c0_1, %c0_2] : memref<8x128xf32, #tpu.memory_space<vmem>>, vector<8x128xf32>
    tpu.vector_store %arg2[%c0_1, %c0_2], %2 {strides = array<i32>} : memref<8x128xf32, #tpu.memory_space<vmem>>, vector<8x128xf32>,
    return
  }
  func.func @transform_0(%arg0: i32) -> (i32, i32) {
    %c0_i32 = arith.constant 0 : i32
    %c0_i32_0 = arith.constant 0 : i32
    %c0_i32_1 = arith.constant 0 : i32
    return %c0_i32, %c0_i32_0 : i32, i32
  }
  func.func @transform_1(%arg0: i32) -> (i32, i32) {
    %c0_i32 = arith.constant 0 : i32
    %c0_i32_0 = arith.constant 0 : i32
    %c0_i32_1 = arith.constant 0 : i32
    return %c0_i32, %c0_i32_0 : i32, i32
  }
}

module attributes {stable_mosaic.version = 11 : i64} {
  func.func private @main(%arg0: i32) attributes {dimension_semantics = [#tpu.dimension_semantics<core_parallel>], iteration_bounds = array<i64: 2>, tpu.core_type = #tpu.core_type<sc_scalar_subcore>, window_params = []} {
    return
  }
}

module attributes {stable_mosaic.version = 11 : i64} {
  func.func private @main(%arg0: i32) attributes {dimension_semantics = [#tpu.dimension_semantics<core_parallel>], iteration_bounds = array<i64: 2>, tpu.core_type = #tpu.core_type<sc_scalar_subcore>, window_params = []} {
    return
  }
}

module attributes {stable_mosaic.version = 11 : i64} {
  func.func @attn_outproj_kernel(%arg0: i32, %arg1: memref<1x8x384xf32, #tpu.memory_space<vmem>>, %arg2: memref<1x8x128xf32, #tpu.memory_space<vmem>>, %arg3: memref<128x128xbf16, #tpu.memory_space<vmem>>, %arg4: memref<1x128xf32, #tpu.memory_space<vmem>>, %arg5: memref<1x8x128xf32, #tpu.memory_space<vmem>>) attributes {dimension_semantics = [#tpu.dimension_semantics<parallel>], iteration_bounds = array<i64: 2>, scalar_prefetch = 0 : i64, scratch_operands = 0 : i64, tpu.core_type = #tpu.core_type<tc>, window_params = [{transform_indices = @transform_0, window_bounds = array<i64: 1, 8, 384>}, {transform_indices = @transform_1, window_bounds = array<i64: 1, 8, 128>}, {pipeline_mode = #tpu.pipeline_mode<synchronous>, transform_indices = @transform_2, window_bounds = array<i64: 128, 128>}, {pipeline_mode = #tpu.pipeline_mode<synchronous>, transform_indices = @transform_3, window_bounds = array<i64: 1, 128>}, {transform_indices = @transform_4, window_bounds = array<i64: 1, 8, 128>}]} {
    %c0 = arith.constant 0 : index
    %c0_0 = arith.constant 0 : index
    %c0_1 = arith.constant 0 : index
    %0 = vector.load %arg1[%c0, %c0_0, %c0_1] : memref<1x8x384xf32, #tpu.memory_space<vmem>>, vector<1x8x384xf32>
    %1 = vector.shape_cast %0 : vector<1x8x384xf32> to vector<8x384xf32>
    %2 = vector.extract_strided_slice %1 {offsets = [0, 0], sizes = [8, 16], strides = [1, 1]} : vector<8x384xf32> to vector<8x16xf32>
    %cst = arith.constant 2.500000e-01 : f32
    %3 = vector.broadcast %cst : f32 to vector<8x16xf32>
    %4 = arith.mulf %2, %3 : vector<8x16xf32>
    %5 = vector.extract_strided_slice %1 {offsets = [0, 128], sizes = [8, 16], strides = [1, 1]} : vector<8x384xf32> to vector<8x16xf32>
    %6 = vector.extract_strided_slice %1 {offsets = [0, 256], sizes = [8, 16], strides = [1, 1]} : vector<8x384xf32> to vector<8x16xf32>
    %7 = tpu.transpose %5, [1, 0] : vector<8x16xf32> -> vector<16x8xf32>
    %cst_2 = arith.constant dense<0.000000e+00> : vector<8x8xf32>
    %8 = tpu.matmul %4, %7, %cst_2 {dimension_numbers = #tpu.dot_dimension_numbers<[1], [0], [0], [1], [0, 0, 1, 1], [], []>} : vector<8x16xf32>, vector<16x8xf32>, vector<8x8xf32> -> vector<8x8xf32>
    %cst_3 = arith.constant dense<0xFF800000> : vector<8xf32>
    %9 = vector.multi_reduction <maximumf>, %8, %cst_3 [1] : vector<8x8xf32> to vector<8xf32>
    %10 = vector.shape_cast %9 : vector<8xf32> to vector<8x1xf32>
    %11 = vector.broadcast %10 : vector<8x1xf32> to vector<8x8xf32>
    %12 = arith.subf %8, %11 : vector<8x8xf32>
    %13 = math.exp %12 : vector<8x8xf32>
    %14 = arith.truncf %13 : vector<8x8xf32> to vector<8x8xbf16>
    %15 = arith.truncf %6 : vector<8x16xf32> to vector<8x16xbf16>
    %cst_4 = arith.constant dense<0.000000e+00> : vector<8x16xf32>
    %16 = tpu.matmul %14, %15, %cst_4 {dimension_numbers = #tpu.dot_dimension_numbers<[1], [0], [0], [1], [0, 0, 1, 1], [], []>} : vector<8x8xbf16>, vector<8x16xbf16>, vector<8x16xf32> -> vector<8x16xf32>
    %cst_5 = arith.constant dense<0.000000e+00> : vector<8xf32>
    %17 = vector.multi_reduction <add>, %13, %cst_5 [1] : vector<8x8xf32> to vector<8xf32>
    %18 = vector.shape_cast %17 : vector<8xf32> to vector<8x1xf32>
    %19 = tpu.reciprocal %18 {approx = true} : vector<8x1xf32> -> vector<8x1xf32>
    %20 = vector.broadcast %19 : vector<8x1xf32> to vector<8x16xf32>
    %21 = arith.mulf %16, %20 : vector<8x16xf32>
    %22 = vector.extract_strided_slice %1 {offsets = [0, 16], sizes = [8, 16], strides = [1, 1]} : vector<8x384xf32> to vector<8x16xf32>
    %cst_6 = arith.constant 2.500000e-01 : f32
    %23 = vector.broadcast %cst_6 : f32 to vector<8x16xf32>
    %24 = arith.mulf %22, %23 : vector<8x16xf32>
    %25 = vector.extract_strided_slice %1 {offsets = [0, 144], sizes = [8, 16], strides = [1, 1]} : vector<8x384xf32> to vector<8x16xf32>
    %26 = vector.extract_strided_slice %1 {offsets = [0, 272], sizes = [8, 16], strides = [1, 1]} : vector<8x384xf32> to vector<8x16xf32>
    %27 = tpu.transpose %25, [1, 0] : vector<8x16xf32> -> vector<16x8xf32>
    %cst_7 = arith.constant dense<0.000000e+00> : vector<8x8xf32>
    %28 = tpu.matmul %24, %27, %cst_7 {dimension_numbers = #tpu.dot_dimension_numbers<[1], [0], [0], [1], [0, 0, 1, 1], [], []>} : vector<8x16xf32>, vector<16x8xf32>, vector<8x8xf32> -> vector<8x8xf32>
    %cst_8 = arith.constant dense<0xFF800000> : vector<8xf32>
    %29 = vector.multi_reduction <maximumf>, %28, %cst_8 [1] : vector<8x8xf32> to vector<8xf32>
    %30 = vector.shape_cast %29 : vector<8xf32> to vector<8x1xf32>
    %31 = vector.broadcast %30 : vector<8x1xf32> to vector<8x8xf32>
    %32 = arith.subf %28, %31 : vector<8x8xf32>
    %33 = math.exp %32 : vector<8x8xf32>
    %34 = arith.truncf %33 : vector<8x8xf32> to vector<8x8xbf16>
    %35 = arith.truncf %26 : vector<8x16xf32> to vector<8x16xbf16>
    %cst_9 = arith.constant dense<0.000000e+00> : vector<8x16xf32>
    %36 = tpu.matmul %34, %35, %cst_9 {dimension_numbers = #tpu.dot_dimension_numbers<[1], [0], [0], [1], [0, 0, 1, 1], [], []>} : vector<8x8xbf16>, vector<8x16xbf16>, vector<8x16xf32> -> vector<8x16xf32>
    %cst_10 = arith.constant dense<0.000000e+00> : vector<8xf32>
    %37 = vector.multi_reduction <add>, %33, %cst_10 [1] : vector<8x8xf32> to vector<8xf32>
    %38 = vector.shape_cast %37 : vector<8xf32> to vector<8x1xf32>
    %39 = tpu.reciprocal %38 {approx = true} : vector<8x1xf32> -> vector<8x1xf32>
    %40 = vector.broadcast %39 : vector<8x1xf32> to vector<8x16xf32>
    %41 = arith.mulf %36, %40 : vector<8x16xf32>
    %42 = vector.extract_strided_slice %1 {offsets = [0, 32], sizes = [8, 16], strides = [1, 1]} : vector<8x384xf32> to vector<8x16xf32>
    %cst_11 = arith.constant 2.500000e-01 : f32
    %43 = vector.broadcast %cst_11 : f32 to vector<8x16xf32>
    %44 = arith.mulf %42, %43 : vector<8x16xf32>
    %45 = vector.extract_strided_slice %1 {offsets = [0, 160], sizes = [8, 16], strides = [1, 1]} : vector<8x384xf32> to vector<8x16xf32>
    %46 = vector.extract_strided_slice %1 {offsets = [0, 288], sizes = [8, 16], strides = [1, 1]} : vector<8x384xf32> to vector<8x16xf32>
    %47 = tpu.transpose %45, [1, 0] : vector<8x16xf32> -> vector<16x8xf32>
    %cst_12 = arith.constant dense<0.000000e+00> : vector<8x8xf32>
    %48 = tpu.matmul %44, %47, %cst_12 {dimension_numbers = #tpu.dot_dimension_numbers<[1], [0], [0], [1], [0, 0, 1, 1], [], []>} : vector<8x16xf32>, vector<16x8xf32>, vector<8x8xf32> -> vector<8x8xf32>
    %cst_13 = arith.constant dense<0xFF800000> : vector<8xf32>
    %49 = vector.multi_reduction <maximumf>, %48, %cst_13 [1] : vector<8x8xf32> to vector<8xf32>
    %50 = vector.shape_cast %49 : vector<8xf32> to vector<8x1xf32>
    %51 = vector.broadcast %50 : vector<8x1xf32> to vector<8x8xf32>
    %52 = arith.subf %48, %51 : vector<8x8xf32>
    %53 = math.exp %52 : vector<8x8xf32>
    %54 = arith.truncf %53 : vector<8x8xf32> to vector<8x8xbf16>
    %55 = arith.truncf %46 : vector<8x16xf32> to vector<8x16xbf16>
    %cst_14 = arith.constant dense<0.000000e+00> : vector<8x16xf32>
    %56 = tpu.matmul %54, %55, %cst_14 {dimension_numbers = #tpu.dot_dimension_numbers<[1], [0], [0], [1], [0, 0, 1, 1], [], []>} : vector<8x8xbf16>, vector<8x16xbf16>, vector<8x16xf32> -> vector<8x16xf32>
    %cst_15 = arith.constant dense<0.000000e+00> : vector<8xf32>
    %57 = vector.multi_reduction <add>, %53, %cst_15 [1] : vector<8x8xf32> to vector<8xf32>
    %58 = vector.shape_cast %57 : vector<8xf32> to vector<8x1xf32>
    %59 = tpu.reciprocal %58 {approx = true} : vector<8x1xf32> -> vector<8x1xf32>
    %60 = vector.broadcast %59 : vector<8x1xf32> to vector<8x16xf32>
    %61 = arith.mulf %56, %60 : vector<8x16xf32>
    %62 = vector.extract_strided_slice %1 {offsets = [0, 48], sizes = [8, 16], strides = [1, 1]} : vector<8x384xf32> to vector<8x16xf32>
    %cst_16 = arith.constant 2.500000e-01 : f32
    %63 = vector.broadcast %cst_16 : f32 to vector<8x16xf32>
    %64 = arith.mulf %62, %63 : vector<8x16xf32>
    %65 = vector.extract_strided_slice %1 {offsets = [0, 176], sizes = [8, 16], strides = [1, 1]} : vector<8x384xf32> to vector<8x16xf32>
    %66 = vector.extract_strided_slice %1 {offsets = [0, 304], sizes = [8, 16], strides = [1, 1]} : vector<8x384xf32> to vector<8x16xf32>
    %67 = tpu.transpose %65, [1, 0] : vector<8x16xf32> -> vector<16x8xf32>
    %cst_17 = arith.constant dense<0.000000e+00> : vector<8x8xf32>
    %68 = tpu.matmul %64, %67, %cst_17 {dimension_numbers = #tpu.dot_dimension_numbers<[1], [0], [0], [1], [0, 0, 1, 1], [], []>} : vector<8x16xf32>, vector<16x8xf32>, vector<8x8xf32> -> vector<8x8xf32>
    %cst_18 = arith.constant dense<0xFF800000> : vector<8xf32>
    %69 = vector.multi_reduction <maximumf>, %68, %cst_18 [1] : vector<8x8xf32> to vector<8xf32>
    %70 = vector.shape_cast %69 : vector<8xf32> to vector<8x1xf32>
    %71 = vector.broadcast %70 : vector<8x1xf32> to vector<8x8xf32>
    %72 = arith.subf %68, %71 : vector<8x8xf32>
    %73 = math.exp %72 : vector<8x8xf32>
    %74 = arith.truncf %73 : vector<8x8xf32> to vector<8x8xbf16>
    %75 = arith.truncf %66 : vector<8x16xf32> to vector<8x16xbf16>
    %cst_19 = arith.constant dense<0.000000e+00> : vector<8x16xf32>
    %76 = tpu.matmul %74, %75, %cst_19 {dimension_numbers = #tpu.dot_dimension_numbers<[1], [0], [0], [1], [0, 0, 1, 1], [], []>} : vector<8x8xbf16>, vector<8x16xbf16>, vector<8x16xf32> -> vector<8x16xf32>
    %cst_20 = arith.constant dense<0.000000e+00> : vector<8xf32>
    %77 = vector.multi_reduction <add>, %73, %cst_20 [1] : vector<8x8xf32> to vector<8xf32>
    %78 = vector.shape_cast %77 : vector<8xf32> to vector<8x1xf32>
    %79 = tpu.reciprocal %78 {approx = true} : vector<8x1xf32> -> vector<8x1xf32>
    %80 = vector.broadcast %79 : vector<8x1xf32> to vector<8x16xf32>
    %81 = arith.mulf %76, %80 : vector<8x16xf32>
    %82 = vector.extract_strided_slice %1 {offsets = [0, 64], sizes = [8, 16], strides = [1, 1]} : vector<8x384xf32> to vector<8x16xf32>
    %cst_21 = arith.constant 2.500000e-01 : f32
    %83 = vector.broadcast %cst_21 : f32 to vector<8x16xf32>
    %84 = arith.mulf %82, %83 : vector<8x16xf32>
    %85 = vector.extract_strided_slice %1 {offsets = [0, 192], sizes = [8, 16], strides = [1, 1]} : vector<8x384xf32> to vector<8x16xf32>
    %86 = vector.extract_strided_slice %1 {offsets = [0, 320], sizes = [8, 16], strides = [1, 1]} : vector<8x384xf32> to vector<8x16xf32>
    %87 = tpu.transpose %85, [1, 0] : vector<8x16xf32> -> vector<16x8xf32>
    %cst_22 = arith.constant dense<0.000000e+00> : vector<8x8xf32>
    %88 = tpu.matmul %84, %87, %cst_22 {dimension_numbers = #tpu.dot_dimension_numbers<[1], [0], [0], [1], [0, 0, 1, 1], [], []>} : vector<8x16xf32>, vector<16x8xf32>, vector<8x8xf32> -> vector<8x8xf32>
    %cst_23 = arith.constant dense<0xFF800000> : vector<8xf32>
    %89 = vector.multi_reduction <maximumf>, %88, %cst_23 [1] : vector<8x8xf32> to vector<8xf32>
    %90 = vector.shape_cast %89 : vector<8xf32> to vector<8x1xf32>
    %91 = vector.broadcast %90 : vector<8x1xf32> to vector<8x8xf32>
    %92 = arith.subf %88, %91 : vector<8x8xf32>
    %93 = math.exp %92 : vector<8x8xf32>
    %94 = arith.truncf %93 : vector<8x8xf32> to vector<8x8xbf16>
    %95 = arith.truncf %86 : vector<8x16xf32> to vector<8x16xbf16>
    %cst_24 = arith.constant dense<0.000000e+00> : vector<8x16xf32>
    %96 = tpu.matmul %94, %95, %cst_24 {dimension_numbers = #tpu.dot_dimension_numbers<[1], [0], [0], [1], [0, 0, 1, 1], [], []>} : vector<8x8xbf16>, vector<8x16xbf16>, vector<8x16xf32> -> vector<8x16xf32>
    %cst_25 = arith.constant dense<0.000000e+00> : vector<8xf32>
    %97 = vector.multi_reduction <add>, %93, %cst_25 [1] : vector<8x8xf32> to vector<8xf32>
    %98 = vector.shape_cast %97 : vector<8xf32> to vector<8x1xf32>
    %99 = tpu.reciprocal %98 {approx = true} : vector<8x1xf32> -> vector<8x1xf32>
    %100 = vector.broadcast %99 : vector<8x1xf32> to vector<8x16xf32>
    %101 = arith.mulf %96, %100 : vector<8x16xf32>
    %102 = vector.extract_strided_slice %1 {offsets = [0, 80], sizes = [8, 16], strides = [1, 1]} : vector<8x384xf32> to vector<8x16xf32>
    %cst_26 = arith.constant 2.500000e-01 : f32
    %103 = vector.broadcast %cst_26 : f32 to vector<8x16xf32>
    %104 = arith.mulf %102, %103 : vector<8x16xf32>
    %105 = vector.extract_strided_slice %1 {offsets = [0, 208], sizes = [8, 16], strides = [1, 1]} : vector<8x384xf32> to vector<8x16xf32>
    %106 = vector.extract_strided_slice %1 {offsets = [0, 336], sizes = [8, 16], strides = [1, 1]} : vector<8x384xf32> to vector<8x16xf32>
    %107 = tpu.transpose %105, [1, 0] : vector<8x16xf32> -> vector<16x8xf32>
    %cst_27 = arith.constant dense<0.000000e+00> : vector<8x8xf32>
    %108 = tpu.matmul %104, %107, %cst_27 {dimension_numbers = #tpu.dot_dimension_numbers<[1], [0], [0], [1], [0, 0, 1, 1], [], []>} : vector<8x16xf32>, vector<16x8xf32>, vector<8x8xf32> -> vector<8x8xf32>
    %cst_28 = arith.constant dense<0xFF800000> : vector<8xf32>
    %109 = vector.multi_reduction <maximumf>, %108, %cst_28 [1] : vector<8x8xf32> to vector<8xf32>
    %110 = vector.shape_cast %109 : vector<8xf32> to vector<8x1xf32>
    %111 = vector.broadcast %110 : vector<8x1xf32> to vector<8x8xf32>
    %112 = arith.subf %108, %111 : vector<8x8xf32>
    %113 = math.exp %112 : vector<8x8xf32>
    %114 = arith.truncf %113 : vector<8x8xf32> to vector<8x8xbf16>
    %115 = arith.truncf %106 : vector<8x16xf32> to vector<8x16xbf16>
    %cst_29 = arith.constant dense<0.000000e+00> : vector<8x16xf32>
    %116 = tpu.matmul %114, %115, %cst_29 {dimension_numbers = #tpu.dot_dimension_numbers<[1], [0], [0], [1], [0, 0, 1, 1], [], []>} : vector<8x8xbf16>, vector<8x16xbf16>, vector<8x16xf32> -> vector<8x16xf32>
    %cst_30 = arith.constant dense<0.000000e+00> : vector<8xf32>
    %117 = vector.multi_reduction <add>, %113, %cst_30 [1] : vector<8x8xf32> to vector<8xf32>
    %118 = vector.shape_cast %117 : vector<8xf32> to vector<8x1xf32>
    %119 = tpu.reciprocal %118 {approx = true} : vector<8x1xf32> -> vector<8x1xf32>
    %120 = vector.broadcast %119 : vector<8x1xf32> to vector<8x16xf32>
    %121 = arith.mulf %116, %120 : vector<8x16xf32>
    %122 = vector.extract_strided_slice %1 {offsets = [0, 96], sizes = [8, 16], strides = [1, 1]} : vector<8x384xf32> to vector<8x16xf32>
    %cst_31 = arith.constant 2.500000e-01 : f32
    %123 = vector.broadcast %cst_31 : f32 to vector<8x16xf32>
    %124 = arith.mulf %122, %123 : vector<8x16xf32>
    %125 = vector.extract_strided_slice %1 {offsets = [0, 224], sizes = [8, 16], strides = [1, 1]} : vector<8x384xf32> to vector<8x16xf32>
    %126 = vector.extract_strided_slice %1 {offsets = [0, 352], sizes = [8, 16], strides = [1, 1]} : vector<8x384xf32> to vector<8x16xf32>
    %127 = tpu.transpose %125, [1, 0] : vector<8x16xf32> -> vector<16x8xf32>
    %cst_32 = arith.constant dense<0.000000e+00> : vector<8x8xf32>
    %128 = tpu.matmul %124, %127, %cst_32 {dimension_numbers = #tpu.dot_dimension_numbers<[1], [0], [0], [1], [0, 0, 1, 1], [], []>} : vector<8x16xf32>, vector<16x8xf32>, vector<8x8xf32> -> vector<8x8xf32>
    %cst_33 = arith.constant dense<0xFF800000> : vector<8xf32>
    %129 = vector.multi_reduction <maximumf>, %128, %cst_33 [1] : vector<8x8xf32> to vector<8xf32>
    %130 = vector.shape_cast %129 : vector<8xf32> to vector<8x1xf32>
    %131 = vector.broadcast %130 : vector<8x1xf32> to vector<8x8xf32>
    %132 = arith.subf %128, %131 : vector<8x8xf32>
    %133 = math.exp %132 : vector<8x8xf32>
    %134 = arith.truncf %133 : vector<8x8xf32> to vector<8x8xbf16>
    %135 = arith.truncf %126 : vector<8x16xf32> to vector<8x16xbf16>
    %cst_34 = arith.constant dense<0.000000e+00> : vector<8x16xf32>
    %136 = tpu.matmul %134, %135, %cst_34 {dimension_numbers = #tpu.dot_dimension_numbers<[1], [0], [0], [1], [0, 0, 1, 1], [], []>} : vector<8x8xbf16>, vector<8x16xbf16>, vector<8x16xf32> -> vector<8x16xf32>
    %cst_35 = arith.constant dense<0.000000e+00> : vector<8xf32>
    %137 = vector.multi_reduction <add>, %133, %cst_35 [1] : vector<8x8xf32> to vector<8xf32>
    %138 = vector.shape_cast %137 : vector<8xf32> to vector<8x1xf32>
    %139 = tpu.reciprocal %138 {approx = true} : vector<8x1xf32> -> vector<8x1xf32>
    %140 = vector.broadcast %139 : vector<8x1xf32> to vector<8x16xf32>
    %141 = arith.mulf %136, %140 : vector<8x16xf32>
    %142 = vector.extract_strided_slice %1 {offsets = [0, 112], sizes = [8, 16], strides = [1, 1]} : vector<8x384xf32> to vector<8x16xf32>
    %cst_36 = arith.constant 2.500000e-01 : f32
    %143 = vector.broadcast %cst_36 : f32 to vector<8x16xf32>
    %144 = arith.mulf %142, %143 : vector<8x16xf32>
    %145 = vector.extract_strided_slice %1 {offsets = [0, 240], sizes = [8, 16], strides = [1, 1]} : vector<8x384xf32> to vector<8x16xf32>
    %146 = vector.extract_strided_slice %1 {offsets = [0, 368], sizes = [8, 16], strides = [1, 1]} : vector<8x384xf32> to vector<8x16xf32>
    %147 = tpu.transpose %145, [1, 0] : vector<8x16xf32> -> vector<16x8xf32>
    %cst_37 = arith.constant dense<0.000000e+00> : vector<8x8xf32>
    %148 = tpu.matmul %144, %147, %cst_37 {dimension_numbers = #tpu.dot_dimension_numbers<[1], [0], [0], [1], [0, 0, 1, 1], [], []>} : vector<8x16xf32>, vector<16x8xf32>, vector<8x8xf32> -> vector<8x8xf32>
    %cst_38 = arith.constant dense<0xFF800000> : vector<8xf32>
    %149 = vector.multi_reduction <maximumf>, %148, %cst_38 [1] : vector<8x8xf32> to vector<8xf32>
    %150 = vector.shape_cast %149 : vector<8xf32> to vector<8x1xf32>
    %151 = vector.broadcast %150 : vector<8x1xf32> to vector<8x8xf32>
    %152 = arith.subf %148, %151 : vector<8x8xf32>
    %153 = math.exp %152 : vector<8x8xf32>
    %154 = arith.truncf %153 : vector<8x8xf32> to vector<8x8xbf16>
    %155 = arith.truncf %146 : vector<8x16xf32> to vector<8x16xbf16>
    %cst_39 = arith.constant dense<0.000000e+00> : vector<8x16xf32>
    %156 = tpu.matmul %154, %155, %cst_39 {dimension_numbers = #tpu.dot_dimension_numbers<[1], [0], [0], [1], [0, 0, 1, 1], [], []>} : vector<8x8xbf16>, vector<8x16xbf16>, vector<8x16xf32> -> vector<8x16xf32>
    %cst_40 = arith.constant dense<0.000000e+00> : vector<8xf32>
    %157 = vector.multi_reduction <add>, %153, %cst_40 [1] : vector<8x8xf32> to vector<8xf32>
    %158 = vector.shape_cast %157 : vector<8xf32> to vector<8x1xf32>
    %159 = tpu.reciprocal %158 {approx = true} : vector<8x1xf32> -> vector<8x1xf32>
    %160 = vector.broadcast %159 : vector<8x1xf32> to vector<8x16xf32>
    %161 = arith.mulf %156, %160 : vector<8x16xf32>
    %162 = tpu.concatenate %21, %41, %61, %81, %101, %121, %141, %161 in 1 : vector<8x16xf32>, vector<8x16xf32>, vector<8x16xf32>, vector<8x16xf32>, vector<8x16xf32>, vector<8x16xf32>, vector<8x16xf32>, vector<8x16xf32> -> vector<8x128xf32>
    %163 = arith.truncf %162 : vector<8x128xf32> to vector<8x128xbf16>
    %c0_41 = arith.constant 0 : index
    %c0_42 = arith.constant 0 : index
    %164 = vector.load %arg3[%c0_41, %c0_42] : memref<128x128xbf16, #tpu.memory_space<vmem>>, vector<128x128xbf16>
    %cst_43 = arith.constant dense<0.000000e+00> : vector<8x128xf32>
    %165 = tpu.matmul %163, %164, %cst_43 {dimension_numbers = #tpu.dot_dimension_numbers<[1], [0], [0], [1], [0, 0, 1, 1], [], []>} : vector<8x128xbf16>, vector<128x128xbf16>, vector<8x128xf32> -> vector<8x128xf32>
    %c0_44 = arith.constant 0 : index
    %c0_45 = arith.constant 0 : index
    %166 = vector.load %arg4[%c0_44, %c0_45] : memref<1x128xf32, #tpu.memory_space<vmem>>, vector<1x128xf32>
    %167 = vector.broadcast %166 : vector<1x128xf32> to vector<8x128xf32>
    %168 = arith.addf %165, %167 : vector<8x128xf32>
    %c0_46 = arith.constant 0 : index
    %c0_47 = arith.constant 0 : index
    %c0_48 = arith.constant 0 : index
    %169 = vector.load %arg2[%c0_46, %c0_47, %c0_48] : memref<1x8x128xf32, #tpu.memory_space<vmem>>, vector<1x8x128xf32>
    %170 = vector.shape_cast %169 : vector<1x8x128xf32> to vector<8x128xf32>
    %171 = arith.addf %170, %168 : vector<8x128xf32>
    %c0_49 = arith.constant 0 : index
    %c0_50 = arith.constant 0 : index
    %c0_51 = arith.constant 0 : index
    %172 = vector.load %arg5[%c0_49, %c0_50, %c0_51] : memref<1x8x128xf32, #tpu.memory_space<vmem>>, vector<1x8x128xf32>
    %173 = vector.shape_cast %172 : vector<1x8x128xf32> to vector<8x128xf32>
    %174 = vector.shape_cast %171 : vector<8x128xf32> to vector<1x8x128xf32>
    tpu.vector_store %arg5[%c0_49, %c0_50, %c0_51], %174 {strides = array<i32>} : memref<1x8x128xf32, #tpu.memory_space<vmem>>, vector<1x8x128xf32>,
    return
  }
  func.func @transform_0(%arg0: i32) -> (i32, i32, i32) {
    %c0_i32 = arith.constant 0 : i32
    %c0_i32_0 = arith.constant 0 : i32
    %c0_i32_1 = arith.constant 0 : i32
    return %arg0, %c0_i32, %c0_i32_0 : i32, i32, i32
  }
  func.func @transform_1(%arg0: i32) -> (i32, i32, i32) {
    %c0_i32 = arith.constant 0 : i32
    %c0_i32_0 = arith.constant 0 : i32
    %c0_i32_1 = arith.constant 0 : i32
    return %arg0, %c0_i32, %c0_i32_0 : i32, i32, i32
  }
  func.func @transform_2(%arg0: i32) -> (i32, i32) {
    %c0_i32 = arith.constant 0 : i32
    %c0_i32_0 = arith.constant 0 : i32
    %c0_i32_1 = arith.constant 0 : i32
    return %c0_i32, %c0_i32_0 : i32, i32
  }
  func.func @transform_3(%arg0: i32) -> (i32, i32) {
    %c0_i32 = arith.constant 0 : i32
    %c0_i32_0 = arith.constant 0 : i32
    %c0_i32_1 = arith.constant 0 : i32
    return %c0_i32, %c0_i32_0 : i32, i32
  }
  func.func @transform_4(%arg0: i32) -> (i32, i32, i32) {
    %c0_i32 = arith.constant 0 : i32
    %c0_i32_0 = arith.constant 0 : i32
    %c0_i32_1 = arith.constant 0 : i32
    return %arg0, %c0_i32, %c0_i32_0 : i32, i32, i32
  }
}

module attributes {stable_mosaic.version = 11 : i64} {
  func.func @ln_qkv_kernel(%arg0: i32, %arg1: memref<16x128xf32, #tpu.memory_space<vmem>>, %arg2: memref<1x128xf32, #tpu.memory_space<vmem>>, %arg3: memref<1x128xf32, #tpu.memory_space<vmem>>, %arg4: memref<128x384xbf16, #tpu.memory_space<vmem>>, %arg5: memref<1x384xf32, #tpu.memory_space<vmem>>, %arg6: memref<16x384xf32, #tpu.memory_space<vmem>>) attributes {dimension_semantics = [#tpu.dimension_semantics<parallel>], iteration_bounds = array<i64: 1>, scalar_prefetch = 0 : i64, scratch_operands = 0 : i64, tpu.core_type = #tpu.core_type<tc>, window_params = [{transform_indices = @transform_0, window_bounds = array<i64: 16, 128>}, {pipeline_mode = #tpu.pipeline_mode<synchronous>, transform_indices = @transform_1, window_bounds = array<i64: 1, 128>}, {pipeline_mode = #tpu.pipeline_mode<synchronous>, transform_indices = @transform_2, window_bounds = array<i64: 1, 128>}, {pipeline_mode = #tpu.pipeline_mode<synchronous>, transform_indices = @transform_3, window_bounds = array<i64: 128, 384>}, {pipeline_mode = #tpu.pipeline_mode<synchronous>, transform_indices = @transform_4, window_bounds = array<i64: 1, 384>}, {transform_indices = @transform_5, window_bounds = array<i64: 16, 384>}]} {
    %c0 = arith.constant 0 : index
    %c0_0 = arith.constant 0 : index
    %0 = vector.load %arg1[%c0, %c0_0] : memref<16x128xf32, #tpu.memory_space<vmem>>, vector<16x128xf32>
    %cst = arith.constant dense<0.000000e+00> : vector<16xf32>
    %1 = vector.multi_reduction <add>, %0, %cst [1] : vector<16x128xf32> to vector<16xf32>
    %2 = vector.shape_cast %1 : vector<16xf32> to vector<16x1xf32>
    %cst_1 = arith.constant 1.280000e+02 : f32
    %3 = vector.broadcast %cst_1 : f32 to vector<16x1xf32>
    %4 = arith.divf %2, %3 : vector<16x1xf32>
    %5 = vector.broadcast %4 : vector<16x1xf32> to vector<16x128xf32>
    %6 = arith.subf %0, %5 : vector<16x128xf32>
    %7 = arith.mulf %6, %6 : vector<16x128xf32>
    %cst_2 = arith.constant dense<0.000000e+00> : vector<16xf32>
    %8 = vector.multi_reduction <add>, %7, %cst_2 [1] : vector<16x128xf32> to vector<16xf32>
    %9 = vector.shape_cast %8 : vector<16xf32> to vector<16x1xf32>
    %cst_3 = arith.constant 1.280000e+02 : f32
    %10 = vector.broadcast %cst_3 : f32 to vector<16x1xf32>
    %11 = arith.divf %9, %10 : vector<16x1xf32>
    %12 = vector.broadcast %4 : vector<16x1xf32> to vector<16x128xf32>
    %13 = arith.subf %0, %12 : vector<16x128xf32>
    %cst_4 = arith.constant 9.99999974E-6 : f32
    %14 = vector.broadcast %cst_4 : f32 to vector<16x1xf32>
    %15 = arith.addf %11, %14 : vector<16x1xf32>
    %16 = math.rsqrt %15 : vector<16x1xf32>
    %17 = vector.broadcast %16 : vector<16x1xf32> to vector<16x128xf32>
    %18 = arith.mulf %13, %17 : vector<16x128xf32>
    %c0_5 = arith.constant 0 : index
    %c0_6 = arith.constant 0 : index
    %19 = vector.load %arg2[%c0_5, %c0_6] : memref<1x128xf32, #tpu.memory_space<vmem>>, vector<1x128xf32>
    %20 = vector.broadcast %19 : vector<1x128xf32> to vector<16x128xf32>
    %21 = arith.mulf %18, %20 : vector<16x128xf32>
    %c0_7 = arith.constant 0 : index
    %c0_8 = arith.constant 0 : index
    %22 = vector.load %arg3[%c0_7, %c0_8] : memref<1x128xf32, #tpu.memory_space<vmem>>, vector<1x128xf32>
    %23 = vector.broadcast %22 : vector<1x128xf32> to vector<16x128xf32>
    %24 = arith.addf %21, %23 : vector<16x128xf32>
    %25 = arith.truncf %24 : vector<16x128xf32> to vector<16x128xbf16>
    %c0_9 = arith.constant 0 : index
    %c0_10 = arith.constant 0 : index
    %26 = vector.load %arg4[%c0_9, %c0_10] : memref<128x384xbf16, #tpu.memory_space<vmem>>, vector<128x384xbf16>
    %cst_11 = arith.constant dense<0.000000e+00> : vector<16x384xf32>
    %27 = tpu.matmul %25, %26, %cst_11 {dimension_numbers = #tpu.dot_dimension_numbers<[1], [0], [0], [1], [0, 0, 1, 1], [], []>} : vector<16x128xbf16>, vector<128x384xbf16>, vector<16x384xf32> -> vector<16x384xf32>
    %c0_12 = arith.constant 0 : index
    %c0_13 = arith.constant 0 : index
    %28 = vector.load %arg5[%c0_12, %c0_13] : memref<1x384xf32, #tpu.memory_space<vmem>>, vector<1x384xf32>
    %29 = vector.broadcast %28 : vector<1x384xf32> to vector<16x384xf32>
    %30 = arith.addf %27, %29 : vector<16x384xf32>
    %c0_14 = arith.constant 0 : index
    %c0_15 = arith.constant 0 : index
    %31 = vector.load %arg6[%c0_14, %c0_15] : memref<16x384xf32, #tpu.memory_space<vmem>>, vector<16x384xf32>
    tpu.vector_store %arg6[%c0_14, %c0_15], %30 {strides = array<i32>} : memref<16x384xf32, #tpu.memory_space<vmem>>, vector<16x384xf32>,
    return
  }
  func.func @transform_0(%arg0: i32) -> (i32, i32) {
    %c0_i32 = arith.constant 0 : i32
    %c0_i32_0 = arith.constant 0 : i32
    return %arg0, %c0_i32 : i32, i32
  }
  func.func @transform_1(%arg0: i32) -> (i32, i32) {
    %c0_i32 = arith.constant 0 : i32
    %c0_i32_0 = arith.constant 0 : i32
    %c0_i32_1 = arith.constant 0 : i32
    return %c0_i32, %c0_i32_0 : i32, i32
  }
  func.func @transform_2(%arg0: i32) -> (i32, i32) {
    %c0_i32 = arith.constant 0 : i32
    %c0_i32_0 = arith.constant 0 : i32
    %c0_i32_1 = arith.constant 0 : i32
    return %c0_i32, %c0_i32_0 : i32, i32
  }
  func.func @transform_3(%arg0: i32) -> (i32, i32) {
    %c0_i32 = arith.constant 0 : i32
    %c0_i32_0 = arith.constant 0 : i32
    %c0_i32_1 = arith.constant 0 : i32
    return %c0_i32, %c0_i32_0 : i32, i32
  }
  func.func @transform_4(%arg0: i32) -> (i32, i32) {
    %c0_i32 = arith.constant 0 : i32
    %c0_i32_0 = arith.constant 0 : i32
    %c0_i32_1 = arith.constant 0 : i32
    return %c0_i32, %c0_i32_0 : i32, i32
  }
  func.func @transform_5(%arg0: i32) -> (i32, i32) {
    %c0_i32 = arith.constant 0 : i32
    %c0_i32_0 = arith.constant 0 : i32
    return %arg0, %c0_i32 : i32, i32
  }
}

module attributes {stable_mosaic.version = 11 : i64} {
  func.func @ln2_router_kernel(%arg0: i32, %arg1: memref<16x128xf32, #tpu.memory_space<vmem>>, %arg2: memref<1x128xf32, #tpu.memory_space<vmem>>, %arg3: memref<1x128xf32, #tpu.memory_space<vmem>>, %arg4: memref<128x128xbf16, #tpu.memory_space<vmem>>, %arg5: memref<1x128xf32, #tpu.memory_space<vmem>>, %arg6: memref<16x128xf32, #tpu.memory_space<vmem>>, %arg7: memref<16x128xf32, #tpu.memory_space<vmem>>) attributes {dimension_semantics = [#tpu.dimension_semantics<parallel>], iteration_bounds = array<i64: 1>, scalar_prefetch = 0 : i64, scratch_operands = 0 : i64, tpu.core_type = #tpu.core_type<tc>, window_params = [{transform_indices = @transform_0, window_bounds = array<i64: 16, 128>}, {pipeline_mode = #tpu.pipeline_mode<synchronous>, transform_indices = @transform_1, window_bounds = array<i64: 1, 128>}, {pipeline_mode = #tpu.pipeline_mode<synchronous>, transform_indices = @transform_2, window_bounds = array<i64: 1, 128>}, {pipeline_mode = #tpu.pipeline_mode<synchronous>, transform_indices = @transform_3, window_bounds = array<i64: 128, 128>}, {pipeline_mode = #tpu.pipeline_mode<synchronous>, transform_indices = @transform_4, window_bounds = array<i64: 1, 128>}, {transform_indices = @transform_5, window_bounds = array<i64: 16, 128>}, {transform_indices = @transform_6, window_bounds = array<i64: 16, 128>}]} {
    %c0 = arith.constant 0 : index
    %c0_0 = arith.constant 0 : index
    %0 = vector.load %arg1[%c0, %c0_0] : memref<16x128xf32, #tpu.memory_space<vmem>>, vector<16x128xf32>
    %cst = arith.constant dense<0.000000e+00> : vector<16xf32>
    %1 = vector.multi_reduction <add>, %0, %cst [1] : vector<16x128xf32> to vector<16xf32>
    %2 = vector.shape_cast %1 : vector<16xf32> to vector<16x1xf32>
    %cst_1 = arith.constant 1.280000e+02 : f32
    %3 = vector.broadcast %cst_1 : f32 to vector<16x1xf32>
    %4 = arith.divf %2, %3 : vector<16x1xf32>
    %5 = vector.broadcast %4 : vector<16x1xf32> to vector<16x128xf32>
    %6 = arith.subf %0, %5 : vector<16x128xf32>
    %7 = arith.mulf %6, %6 : vector<16x128xf32>
    %cst_2 = arith.constant dense<0.000000e+00> : vector<16xf32>
    %8 = vector.multi_reduction <add>, %7, %cst_2 [1] : vector<16x128xf32> to vector<16xf32>
    %9 = vector.shape_cast %8 : vector<16xf32> to vector<16x1xf32>
    %cst_3 = arith.constant 1.280000e+02 : f32
    %10 = vector.broadcast %cst_3 : f32 to vector<16x1xf32>
    %11 = arith.divf %9, %10 : vector<16x1xf32>
    %12 = vector.broadcast %4 : vector<16x1xf32> to vector<16x128xf32>
    %13 = arith.subf %0, %12 : vector<16x128xf32>
    %cst_4 = arith.constant 9.99999974E-6 : f32
    %14 = vector.broadcast %cst_4 : f32 to vector<16x1xf32>
    %15 = arith.addf %11, %14 : vector<16x1xf32>
    %16 = math.rsqrt %15 : vector<16x1xf32>
    %17 = vector.broadcast %16 : vector<16x1xf32> to vector<16x128xf32>
    %18 = arith.mulf %13, %17 : vector<16x128xf32>
    %c0_5 = arith.constant 0 : index
    %c0_6 = arith.constant 0 : index
    %19 = vector.load %arg2[%c0_5, %c0_6] : memref<1x128xf32, #tpu.memory_space<vmem>>, vector<1x128xf32>
    %20 = vector.broadcast %19 : vector<1x128xf32> to vector<16x128xf32>
    %21 = arith.mulf %18, %20 : vector<16x128xf32>
    %c0_7 = arith.constant 0 : index
    %c0_8 = arith.constant 0 : index
    %22 = vector.load %arg3[%c0_7, %c0_8] : memref<1x128xf32, #tpu.memory_space<vmem>>, vector<1x128xf32>
    %23 = vector.broadcast %22 : vector<1x128xf32> to vector<16x128xf32>
    %24 = arith.addf %21, %23 : vector<16x128xf32>
    %cst_9 = arith.constant dense<0.000000e+00> : vector<16xf32>
    %25 = vector.multi_reduction <add>, %24, %cst_9 [1] : vector<16x128xf32> to vector<16xf32>
    %26 = vector.shape_cast %25 : vector<16xf32> to vector<16x1xf32>
    %cst_10 = arith.constant 1.280000e+02 : f32
    %27 = vector.broadcast %cst_10 : f32 to vector<16x1xf32>
    %28 = arith.divf %26, %27 : vector<16x1xf32>
    %29 = vector.broadcast %28 : vector<16x1xf32> to vector<16x128xf32>
    %30 = arith.subf %24, %29 : vector<16x128xf32>
    %31 = arith.mulf %30, %30 : vector<16x128xf32>
    %cst_11 = arith.constant dense<0.000000e+00> : vector<16xf32>
    %32 = vector.multi_reduction <add>, %31, %cst_11 [1] : vector<16x128xf32> to vector<16xf32>
    %33 = vector.shape_cast %32 : vector<16xf32> to vector<16x1xf32>
    %cst_12 = arith.constant 1.280000e+02 : f32
    %34 = vector.broadcast %cst_12 : f32 to vector<16x1xf32>
    %35 = arith.divf %33, %34 : vector<16x1xf32>
    %36 = vector.broadcast %28 : vector<16x1xf32> to vector<16x128xf32>
    %37 = arith.subf %24, %36 : vector<16x128xf32>
    %cst_13 = arith.constant 9.99999974E-6 : f32
    %38 = vector.broadcast %cst_13 : f32 to vector<16x1xf32>
    %39 = arith.addf %35, %38 : vector<16x1xf32>
    %40 = math.rsqrt %39 : vector<16x1xf32>
    %41 = vector.broadcast %40 : vector<16x1xf32> to vector<16x128xf32>
    %42 = arith.mulf %37, %41 : vector<16x128xf32>
    %c0_14 = arith.constant 0 : index
    %c0_15 = arith.constant 0 : index
    %43 = vector.load %arg6[%c0_14, %c0_15] : memref<16x128xf32, #tpu.memory_space<vmem>>, vector<16x128xf32>
    tpu.vector_store %arg6[%c0_14, %c0_15], %42 {strides = array<i32>} : memref<16x128xf32, #tpu.memory_space<vmem>>, vector<16x128xf32>,
    %44 = arith.truncf %24 : vector<16x128xf32> to vector<16x128xbf16>
    %c0_16 = arith.constant 0 : index
    %c0_17 = arith.constant 0 : index
    %45 = vector.load %arg4[%c0_16, %c0_17] : memref<128x128xbf16, #tpu.memory_space<vmem>>, vector<128x128xbf16>
    %cst_18 = arith.constant dense<0.000000e+00> : vector<16x128xf32>
    %46 = tpu.matmul %44, %45, %cst_18 {dimension_numbers = #tpu.dot_dimension_numbers<[1], [0], [0], [1], [0, 0, 1, 1], [], []>} : vector<16x128xbf16>, vector<128x128xbf16>, vector<16x128xf32> -> vector<16x128xf32>
    %c0_19 = arith.constant 0 : index
    %c0_20 = arith.constant 0 : index
    %47 = vector.load %arg5[%c0_19, %c0_20] : memref<1x128xf32, #tpu.memory_space<vmem>>, vector<1x128xf32>
    %48 = vector.broadcast %47 : vector<1x128xf32> to vector<16x128xf32>
    %49 = arith.addf %46, %48 : vector<16x128xf32>
    %c0_21 = arith.constant 0 : index
    %c0_22 = arith.constant 0 : index
    %50 = vector.load %arg7[%c0_21, %c0_22] : memref<16x128xf32, #tpu.memory_space<vmem>>, vector<16x128xf32>
    tpu.vector_store %arg7[%c0_21, %c0_22], %49 {strides = array<i32>} : memref<16x128xf32, #tpu.memory_space<vmem>>, vector<16x128xf32>,
    return
  }
  func.func @transform_0(%arg0: i32) -> (i32, i32) {
    %c0_i32 = arith.constant 0 : i32
    %c0_i32_0 = arith.constant 0 : i32
    return %arg0, %c0_i32 : i32, i32
  }
  func.func @transform_1(%arg0: i32) -> (i32, i32) {
    %c0_i32 = arith.constant 0 : i32
    %c0_i32_0 = arith.constant 0 : i32
    %c0_i32_1 = arith.constant 0 : i32
    return %c0_i32, %c0_i32_0 : i32, i32
  }
  func.func @transform_2(%arg0: i32) -> (i32, i32) {
    %c0_i32 = arith.constant 0 : i32
    %c0_i32_0 = arith.constant 0 : i32
    %c0_i32_1 = arith.constant 0 : i32
    return %c0_i32, %c0_i32_0 : i32, i32
  }
  func.func @transform_3(%arg0: i32) -> (i32, i32) {
    %c0_i32 = arith.constant 0 : i32
    %c0_i32_0 = arith.constant 0 : i32
    %c0_i32_1 = arith.constant 0 : i32
    return %c0_i32, %c0_i32_0 : i32, i32
  }
  func.func @transform_4(%arg0: i32) -> (i32, i32) {
    %c0_i32 = arith.constant 0 : i32
    %c0_i32_0 = arith.constant 0 : i32
    %c0_i32_1 = arith.constant 0 : i32
    return %c0_i32, %c0_i32_0 : i32, i32
  }
  func.func @transform_5(%arg0: i32) -> (i32, i32) {
    %c0_i32 = arith.constant 0 : i32
    %c0_i32_0 = arith.constant 0 : i32
    return %arg0, %c0_i32 : i32, i32
  }
  func.func @transform_6(%arg0: i32) -> (i32, i32) {
    %c0_i32 = arith.constant 0 : i32
    %c0_i32_0 = arith.constant 0 : i32
    return %arg0, %c0_i32 : i32, i32
  }
}

module attributes {stable_mosaic.version = 11 : i64} {
  func.func @base_experts_kernel(%arg0: i32, %arg1: i32, %arg2: memref<16x128xf32, #tpu.memory_space<vmem>>, %arg3: memref<16x128xf32, #tpu.memory_space<vmem>>, %arg4: memref<128x1024xbf16, #tpu.memory_space<vmem>>, %arg5: memref<1x1024xf32, #tpu.memory_space<vmem>>, %arg6: memref<1024x128xbf16, #tpu.memory_space<vmem>>, %arg7: memref<1x128xf32, #tpu.memory_space<vmem>>, %arg8: memref<16x128xf32, #tpu.memory_space<vmem>>, %arg9: memref<16x128xf32, #tpu.memory_space<vmem>>) attributes {dimension_semantics = [#tpu.dimension_semantics<parallel>, #tpu.dimension_semantics<arbitrary>], iteration_bounds = array<i64: 1, 1>, scalar_prefetch = 0 : i64, scratch_operands = 1 : i64, tpu.core_type = #tpu.core_type<tc>, window_params = [{transform_indices = @transform_0, window_bounds = array<i64: 16, 128>}, {transform_indices = @transform_1, window_bounds = array<i64: 16, 128>}, {transform_indices = @transform_2, window_bounds = array<i64: 128, 1024>}, {transform_indices = @transform_3, window_bounds = array<i64: 1, 1024>}, {transform_indices = @transform_4, window_bounds = array<i64: 1024, 128>}, {pipeline_mode = #tpu.pipeline_mode<synchronous>, transform_indices = @transform_5, window_bounds = array<i64: 1, 128>}, {transform_indices = @transform_6, window_bounds = array<i64: 16, 128>}]} {
    %c0_i32 = arith.constant 0 : i32
    %0 = arith.cmpi eq, %arg1, %c0_i32 : i32
    %1 = arith.extui %0 : i1 to i32
    %c0_i32_0 = arith.constant 0 : i32
    %2 = arith.cmpi ne, %1, %c0_i32_0 : i32
    scf.if %2 {
      %c0_18 = arith.constant 0 : index
      %c0_19 = arith.constant 0 : index
      %27 = vector.load %arg3[%c0_18, %c0_19] : memref<16x128xf32, #tpu.memory_space<vmem>>, vector<16x128xf32>
      %c0_20 = arith.constant 0 : index
      %c0_21 = arith.constant 0 : index
      %28 = vector.load %arg7[%c0_20, %c0_21] : memref<1x128xf32, #tpu.memory_space<vmem>>, vector<1x128xf32>
      %29 = vector.broadcast %28 : vector<1x128xf32> to vector<16x128xf32>
      %30 = arith.addf %27, %29 : vector<16x128xf32>
      %c0_22 = arith.constant 0 : index
      %c0_23 = arith.constant 0 : index
      %31 = vector.load %arg9[%c0_22, %c0_23] : memref<16x128xf32, #tpu.memory_space<vmem>>, vector<16x128xf32>
      tpu.vector_store %arg9[%c0_22, %c0_23], %30 {strides = array<i32>} : memref<16x128xf32, #tpu.memory_space<vmem>>, vector<16x128xf32>,
    } else {
    }
    %c0 = arith.constant 0 : index
    %c0_1 = arith.constant 0 : index
    %3 = vector.load %arg2[%c0, %c0_1] : memref<16x128xf32, #tpu.memory_space<vmem>>, vector<16x128xf32>
    %4 = arith.truncf %3 : vector<16x128xf32> to vector<16x128xbf16>
    %c0_2 = arith.constant 0 : index
    %c0_3 = arith.constant 0 : index
    %5 = vector.load %arg4[%c0_2, %c0_3] : memref<128x1024xbf16, #tpu.memory_space<vmem>>, vector<128x1024xbf16>
    %cst = arith.constant dense<0.000000e+00> : vector<16x1024xf32>
    %6 = tpu.matmul %4, %5, %cst {dimension_numbers = #tpu.dot_dimension_numbers<[1], [0], [0], [1], [0, 0, 1, 1], [], []>} : vector<16x128xbf16>, vector<128x1024xbf16>, vector<16x1024xf32> -> vector<16x1024xf32>
    %c0_4 = arith.constant 0 : index
    %c0_5 = arith.constant 0 : index
    %7 = vector.load %arg5[%c0_4, %c0_5] : memref<1x1024xf32, #tpu.memory_space<vmem>>, vector<1x1024xf32>
    %8 = vector.broadcast %7 : vector<1x1024xf32> to vector<16x1024xf32>
    %9 = arith.addf %6, %8 : vector<16x1024xf32>
    %cst_6 = arith.constant 5.000000e-01 : f32
    %10 = vector.broadcast %cst_6 : f32 to vector<16x1024xf32>
    %11 = arith.mulf %10, %9 : vector<16x1024xf32>
    %cst_7 = arith.constant 0.707106769 : f32
    %12 = vector.broadcast %cst_7 : f32 to vector<16x1024xf32>
    %13 = arith.mulf %9, %12 : vector<16x1024xf32>
    %14 = math.erf %13 : vector<16x1024xf32>
    %cst_8 = arith.constant 1.000000e+00 : f32
    %15 = vector.broadcast %cst_8 : f32 to vector<16x1024xf32>
    %16 = arith.addf %15, %14 : vector<16x1024xf32>
    %17 = arith.mulf %11, %16 : vector<16x1024xf32>
    %c0_9 = arith.constant 0 : index
    %c0_10 = arith.constant 0 : index
    %18 = vector.load %arg9[%c0_9, %c0_10] : memref<16x128xf32, #tpu.memory_space<vmem>>, vector<16x128xf32>
    %19 = arith.truncf %17 : vector<16x1024xf32> to vector<16x1024xbf16>
    %c0_11 = arith.constant 0 : index
    %c0_12 = arith.constant 0 : index
    %20 = vector.load %arg6[%c0_11, %c0_12] : memref<1024x128xbf16, #tpu.memory_space<vmem>>, vector<1024x128xbf16>
    %cst_13 = arith.constant dense<0.000000e+00> : vector<16x128xf32>
    %21 = tpu.matmul %19, %20, %cst_13 {dimension_numbers = #tpu.dot_dimension_numbers<[1], [0], [0], [1], [0, 0, 1, 1], [], []>} : vector<16x1024xbf16>, vector<1024x128xbf16>, vector<16x128xf32> -> vector<16x128xf32>
    %22 = arith.addf %18, %21 : vector<16x128xf32>
    %c0_14 = arith.constant 0 : index
    %c0_15 = arith.constant 0 : index
    %23 = vector.load %arg9[%c0_14, %c0_15] : memref<16x128xf32, #tpu.memory_space<vmem>>, vector<16x128xf32>
    tpu.vector_store %arg9[%c0_14, %c0_15], %22 {strides = array<i32>} : memref<16x128xf32, #tpu.memory_space<vmem>>, vector<16x128xf32>,
    %c0_i32_16 = arith.constant 0 : i32
    %24 = arith.cmpi eq, %arg1, %c0_i32_16 : i32
    %25 = arith.extui %24 : i1 to i32
    %c0_i32_17 = arith.constant 0 : i32
    %26 = arith.cmpi ne, %25, %c0_i32_17 : i32
    scf.if %26 {
      %c0_18 = arith.constant 0 : index
      %c0_19 = arith.constant 0 : index
      %27 = vector.load %arg9[%c0_18, %c0_19] : memref<16x128xf32, #tpu.memory_space<vmem>>, vector<16x128xf32>
      %c0_20 = arith.constant 0 : index
      %c0_21 = arith.constant 0 : index
      %28 = vector.load %arg8[%c0_20, %c0_21] : memref<16x128xf32, #tpu.memory_space<vmem>>, vector<16x128xf32>
      tpu.vector_store %arg8[%c0_20, %c0_21], %27 {strides = array<i32>} : memref<16x128xf32, #tpu.memory_space<vmem>>, vector<16x128xf32>,
    } else {
    }
    return
  }
  func.func @transform_0(%arg0: i32, %arg1: i32) -> (i32, i32) {
    %c0_i32 = arith.constant 0 : i32
    %c0_i32_0 = arith.constant 0 : i32
    return %arg0, %c0_i32 : i32, i32
  }
  func.func @transform_1(%arg0: i32, %arg1: i32) -> (i32, i32) {
    %c0_i32 = arith.constant 0 : i32
    %c0_i32_0 = arith.constant 0 : i32
    return %arg0, %c0_i32 : i32, i32
  }
  func.func @transform_2(%arg0: i32, %arg1: i32) -> (i32, i32) {
    %c0_i32 = arith.constant 0 : i32
    %c0_i32_0 = arith.constant 0 : i32
    return %c0_i32, %arg1 : i32, i32
  }
  func.func @transform_3(%arg0: i32, %arg1: i32) -> (i32, i32) {
    %c0_i32 = arith.constant 0 : i32
    %c0_i32_0 = arith.constant 0 : i32
    return %c0_i32, %arg1 : i32, i32
  }
  func.func @transform_4(%arg0: i32, %arg1: i32) -> (i32, i32) {
    %c0_i32 = arith.constant 0 : i32
    %c0_i32_0 = arith.constant 0 : i32
    return %arg1, %c0_i32 : i32, i32
  }
  func.func @transform_5(%arg0: i32, %arg1: i32) -> (i32, i32) {
    %c0_i32 = arith.constant 0 : i32
    %c0_i32_0 = arith.constant 0 : i32
    %c0_i32_1 = arith.constant 0 : i32
    return %c0_i32, %c0_i32_0 : i32, i32
  }
  func.func @transform_6(%arg0: i32, %arg1: i32) -> (i32, i32) {
    %c0_i32 = arith.constant 0 : i32
    %c0_i32_0 = arith.constant 0 : i32
    return %arg0, %c0_i32 : i32, i32
  }
}

module attributes {stable_mosaic.version = 11 : i64} {
  func.func @grouped_expert_kernel(%arg0: i32, %arg1: memref<9xi32, #tpu.memory_space<smem>>, %arg2: memref<128x128xf32, #tpu.memory_space<vmem>>, %arg3: memref<128x1xf32, #tpu.memory_space<vmem>>, %arg4: memref<1x128x512xbf16, #tpu.memory_space<vmem>>, %arg5: memref<1x1x512xf32, #tpu.memory_space<vmem>>, %arg6: memref<1x512x128xbf16, #tpu.memory_space<vmem>>, %arg7: memref<1x1x128xf32, #tpu.memory_space<vmem>>, %arg8: memref<128x128xf32, #tpu.memory_space<vmem>>) attributes {dimension_semantics = [#tpu.dimension_semantics<parallel>], iteration_bounds = array<i64: 9>, scalar_prefetch = 1 : i64, scratch_operands = 0 : i64, tpu.core_type = #tpu.core_type<tc>, window_params = [{transform_indices = @transform_0, window_bounds = array<i64: 128, 128>}, {transform_indices = @transform_1, window_bounds = array<i64: 128, 1>}, {transform_indices = @transform_2, window_bounds = array<i64: 1, 128, 512>}, {transform_indices = @transform_3, window_bounds = array<i64: 1, 1, 512>}, {transform_indices = @transform_4, window_bounds = array<i64: 1, 512, 128>}, {transform_indices = @transform_5, window_bounds = array<i64: 1, 1, 128>}, {transform_indices = @transform_6, window_bounds = array<i64: 128, 128>}]} {
    %c0 = arith.constant 0 : index
    %c0_0 = arith.constant 0 : index
    %0 = vector.load %arg2[%c0, %c0_0] : memref<128x128xf32, #tpu.memory_space<vmem>>, vector<128x128xf32>
    %1 = arith.truncf %0 : vector<128x128xf32> to vector<128x128xbf16>
    %c0_1 = arith.constant 0 : index
    %c0_2 = arith.constant 0 : index
    %c0_3 = arith.constant 0 : index
    %2 = vector.load %arg4[%c0_1, %c0_2, %c0_3] : memref<1x128x512xbf16, #tpu.memory_space<vmem>>, vector<1x128x512xbf16>
    %3 = vector.shape_cast %2 : vector<1x128x512xbf16> to vector<128x512xbf16>
    %cst = arith.constant dense<0.000000e+00> : vector<128x512xf32>
    %4 = tpu.matmul %1, %3, %cst {dimension_numbers = #tpu.dot_dimension_numbers<[1], [0], [0], [1], [0, 0, 1, 1], [], []>} : vector<128x128xbf16>, vector<128x512xbf16>, vector<128x512xf32> -> vector<128x512xf32>
    %c0_4 = arith.constant 0 : index
    %c0_5 = arith.constant 0 : index
    %c0_6 = arith.constant 0 : index
    %5 = vector.load %arg5[%c0_4, %c0_5, %c0_6] : memref<1x1x512xf32, #tpu.memory_space<vmem>>, vector<1x1x512xf32>
    %6 = vector.shape_cast %5 : vector<1x1x512xf32> to vector<1x512xf32>
    %7 = vector.broadcast %6 : vector<1x512xf32> to vector<128x512xf32>
    %8 = arith.addf %4, %7 : vector<128x512xf32>
    %cst_7 = arith.constant 5.000000e-01 : f32
    %9 = vector.broadcast %cst_7 : f32 to vector<128x512xf32>
    %10 = arith.mulf %9, %8 : vector<128x512xf32>
    %cst_8 = arith.constant 0.707106769 : f32
    %11 = vector.broadcast %cst_8 : f32 to vector<128x512xf32>
    %12 = arith.mulf %8, %11 : vector<128x512xf32>
    %13 = math.erf %12 : vector<128x512xf32>
    %cst_9 = arith.constant 1.000000e+00 : f32
    %14 = vector.broadcast %cst_9 : f32 to vector<128x512xf32>
    %15 = arith.addf %14, %13 : vector<128x512xf32>
    %16 = arith.mulf %10, %15 : vector<128x512xf32>
    %17 = arith.truncf %16 : vector<128x512xf32> to vector<128x512xbf16>
    %c0_10 = arith.constant 0 : index
    %c0_11 = arith.constant 0 : index
    %c0_12 = arith.constant 0 : index
    %18 = vector.load %arg6[%c0_10, %c0_11, %c0_12] : memref<1x512x128xbf16, #tpu.memory_space<vmem>>, vector<1x512x128xbf16>
    %19 = vector.shape_cast %18 : vector<1x512x128xbf16> to vector<512x128xbf16>
    %cst_13 = arith.constant dense<0.000000e+00> : vector<128x128xf32>
    %20 = tpu.matmul %17, %19, %cst_13 {dimension_numbers = #tpu.dot_dimension_numbers<[1], [0], [0], [1], [0, 0, 1, 1], [], []>} : vector<128x512xbf16>, vector<512x128xbf16>, vector<128x128xf32> -> vector<128x128xf32>
    %c0_14 = arith.constant 0 : index
    %c0_15 = arith.constant 0 : index
    %c0_16 = arith.constant 0 : index
    %21 = vector.load %arg7[%c0_14, %c0_15, %c0_16] : memref<1x1x128xf32, #tpu.memory_space<vmem>>, vector<1x1x128xf32>
    %22 = vector.shape_cast %21 : vector<1x1x128xf32> to vector<1x128xf32>
    %23 = vector.broadcast %22 : vector<1x128xf32> to vector<128x128xf32>
    %24 = arith.addf %20, %23 : vector<128x128xf32>
    %c0_17 = arith.constant 0 : index
    %c0_18 = arith.constant 0 : index
    %25 = vector.load %arg3[%c0_17, %c0_18] : memref<128x1xf32, #tpu.memory_space<vmem>>, vector<128x1xf32>
    %26 = vector.broadcast %25 : vector<128x1xf32> to vector<128x128xf32>
    %27 = arith.mulf %24, %26 : vector<128x128xf32>
    %c0_19 = arith.constant 0 : index
    %c0_20 = arith.constant 0 : index
    %28 = vector.load %arg8[%c0_19, %c0_20] : memref<128x128xf32, #tpu.memory_space<vmem>>, vector<128x128xf32>
    tpu.vector_store %arg8[%c0_19, %c0_20], %27 {strides = array<i32>} : memref<128x128xf32, #tpu.memory_space<vmem>>, vector<128x128xf32>,
    return
  }
  func.func @transform_0(%arg0: i32, %arg1: memref<9xi32, #tpu.memory_space<smem>>) -> (i32, i32) {
    %c0_i32 = arith.constant 0 : i32
    %c0_i32_0 = arith.constant 0 : i32
    return %arg0, %c0_i32 : i32, i32
  }
  func.func @transform_1(%arg0: i32, %arg1: memref<9xi32, #tpu.memory_space<smem>>) -> (i32, i32) {
    %c0_i32 = arith.constant 0 : i32
    %c0_i32_0 = arith.constant 0 : i32
    return %arg0, %c0_i32 : i32, i32
  }
  func.func @transform_2(%arg0: i32, %arg1: memref<9xi32, #tpu.memory_space<smem>>) -> (i32, i32, i32) {
    %0 = arith.index_cast %arg0 : i32 to index
    %1 = memref.load %arg1[%0] : memref<9xi32, #tpu.memory_space<smem>>
    %c0_i32 = arith.constant 0 : i32
    %c0_i32_0 = arith.constant 0 : i32
    %c0_i32_1 = arith.constant 0 : i32
    return %1, %c0_i32, %c0_i32_0 : i32, i32, i32
  }
  func.func @transform_3(%arg0: i32, %arg1: memref<9xi32, #tpu.memory_space<smem>>) -> (i32, i32, i32) {
    %0 = arith.index_cast %arg0 : i32 to index
    %1 = memref.load %arg1[%0] : memref<9xi32, #tpu.memory_space<smem>>
    %c0_i32 = arith.constant 0 : i32
    %c0_i32_0 = arith.constant 0 : i32
    %c0_i32_1 = arith.constant 0 : i32
    return %1, %c0_i32, %c0_i32_0 : i32, i32, i32
  }
  func.func @transform_4(%arg0: i32, %arg1: memref<9xi32, #tpu.memory_space<smem>>) -> (i32, i32, i32) {
    %0 = arith.index_cast %arg0 : i32 to index
    %1 = memref.load %arg1[%0] : memref<9xi32, #tpu.memory_space<smem>>
    %c0_i32 = arith.constant 0 : i32
    %c0_i32_0 = arith.constant 0 : i32
    %c0_i32_1 = arith.constant 0 : i32
    return %1, %c0_i32, %c0_i32_0 : i32, i32, i32
  }
  func.func @transform_5(%arg0: i32, %arg1: memref<9xi32, #tpu.memory_space<smem>>) -> (i32, i32, i32) {
    %0 = arith.index_cast %arg0 : i32 to index
    %1 = memref.load %arg1[%0] : memref<9xi32, #tpu.memory_space<smem>>
    %c0_i32 = arith.constant 0 : i32
    %c0_i32_0 = arith.constant 0 : i32
    %c0_i32_1 = arith.constant 0 : i32
    return %1, %c0_i32, %c0_i32_0 : i32, i32, i32
  }
  func.func @transform_6(%arg0: i32, %arg1: memref<9xi32, #tpu.memory_space<smem>>) -> (i32, i32) {
    %c0_i32 = arith.constant 0 : i32
    %c0_i32_0 = arith.constant 0 : i32
    return %arg0, %c0_i32 : i32, i32
  }
}

module attributes {stable_mosaic.version = 11 : i64} {
  func.func @ln_qkv_kernel(%arg0: i32, %arg1: memref<16x128xf32, #tpu.memory_space<vmem>>, %arg2: memref<1x128xf32, #tpu.memory_space<vmem>>, %arg3: memref<1x128xf32, #tpu.memory_space<vmem>>, %arg4: memref<128x384xbf16, #tpu.memory_space<vmem>>, %arg5: memref<1x384xf32, #tpu.memory_space<vmem>>, %arg6: memref<16x384xf32, #tpu.memory_space<vmem>>) attributes {dimension_semantics = [#tpu.dimension_semantics<parallel>], iteration_bounds = array<i64: 1>, scalar_prefetch = 0 : i64, scratch_operands = 0 : i64, tpu.core_type = #tpu.core_type<tc>, window_params = [{transform_indices = @transform_0, window_bounds = array<i64: 16, 128>}, {pipeline_mode = #tpu.pipeline_mode<synchronous>, transform_indices = @transform_1, window_bounds = array<i64: 1, 128>}, {pipeline_mode = #tpu.pipeline_mode<synchronous>, transform_indices = @transform_2, window_bounds = array<i64: 1, 128>}, {pipeline_mode = #tpu.pipeline_mode<synchronous>, transform_indices = @transform_3, window_bounds = array<i64: 128, 384>}, {pipeline_mode = #tpu.pipeline_mode<synchronous>, transform_indices = @transform_4, window_bounds = array<i64: 1, 384>}, {transform_indices = @transform_5, window_bounds = array<i64: 16, 384>}]} {
    %c0 = arith.constant 0 : index
    %c0_0 = arith.constant 0 : index
    %0 = vector.load %arg1[%c0, %c0_0] : memref<16x128xf32, #tpu.memory_space<vmem>>, vector<16x128xf32>
    %cst = arith.constant dense<0.000000e+00> : vector<16xf32>
    %1 = vector.multi_reduction <add>, %0, %cst [1] : vector<16x128xf32> to vector<16xf32>
    %2 = vector.shape_cast %1 : vector<16xf32> to vector<16x1xf32>
    %cst_1 = arith.constant 1.280000e+02 : f32
    %3 = vector.broadcast %cst_1 : f32 to vector<16x1xf32>
    %4 = arith.divf %2, %3 : vector<16x1xf32>
    %5 = vector.broadcast %4 : vector<16x1xf32> to vector<16x128xf32>
    %6 = arith.subf %0, %5 : vector<16x128xf32>
    %7 = arith.mulf %6, %6 : vector<16x128xf32>
    %cst_2 = arith.constant dense<0.000000e+00> : vector<16xf32>
    %8 = vector.multi_reduction <add>, %7, %cst_2 [1] : vector<16x128xf32> to vector<16xf32>
    %9 = vector.shape_cast %8 : vector<16xf32> to vector<16x1xf32>
    %cst_3 = arith.constant 1.280000e+02 : f32
    %10 = vector.broadcast %cst_3 : f32 to vector<16x1xf32>
    %11 = arith.divf %9, %10 : vector<16x1xf32>
    %12 = vector.broadcast %4 : vector<16x1xf32> to vector<16x128xf32>
    %13 = arith.subf %0, %12 : vector<16x128xf32>
    %cst_4 = arith.constant 9.99999974E-6 : f32
    %14 = vector.broadcast %cst_4 : f32 to vector<16x1xf32>
    %15 = arith.addf %11, %14 : vector<16x1xf32>
    %16 = math.rsqrt %15 : vector<16x1xf32>
    %17 = vector.broadcast %16 : vector<16x1xf32> to vector<16x128xf32>
    %18 = arith.mulf %13, %17 : vector<16x128xf32>
    %c0_5 = arith.constant 0 : index
    %c0_6 = arith.constant 0 : index
    %19 = vector.load %arg2[%c0_5, %c0_6] : memref<1x128xf32, #tpu.memory_space<vmem>>, vector<1x128xf32>
    %20 = vector.broadcast %19 : vector<1x128xf32> to vector<16x128xf32>
    %21 = arith.mulf %18, %20 : vector<16x128xf32>
    %c0_7 = arith.constant 0 : index
    %c0_8 = arith.constant 0 : index
    %22 = vector.load %arg3[%c0_7, %c0_8] : memref<1x128xf32, #tpu.memory_space<vmem>>, vector<1x128xf32>
    %23 = vector.broadcast %22 : vector<1x128xf32> to vector<16x128xf32>
    %24 = arith.addf %21, %23 : vector<16x128xf32>
    %25 = arith.truncf %24 : vector<16x128xf32> to vector<16x128xbf16>
    %c0_9 = arith.constant 0 : index
    %c0_10 = arith.constant 0 : index
    %26 = vector.load %arg4[%c0_9, %c0_10] : memref<128x384xbf16, #tpu.memory_space<vmem>>, vector<128x384xbf16>
    %cst_11 = arith.constant dense<0.000000e+00> : vector<16x384xf32>
    %27 = tpu.matmul %25, %26, %cst_11 {dimension_numbers = #tpu.dot_dimension_numbers<[1], [0], [0], [1], [0, 0, 1, 1], [], []>} : vector<16x128xbf16>, vector<128x384xbf16>, vector<16x384xf32> -> vector<16x384xf32>
    %c0_12 = arith.constant 0 : index
    %c0_13 = arith.constant 0 : index
    %28 = vector.load %arg5[%c0_12, %c0_13] : memref<1x384xf32, #tpu.memory_space<vmem>>, vector<1x384xf32>
    %29 = vector.broadcast %28 : vector<1x384xf32> to vector<16x384xf32>
    %30 = arith.addf %27, %29 : vector<16x384xf32>
    %c0_14 = arith.constant 0 : index
    %c0_15 = arith.constant 0 : index
    %31 = vector.load %arg6[%c0_14, %c0_15] : memref<16x384xf32, #tpu.memory_space<vmem>>, vector<16x384xf32>
    tpu.vector_store %arg6[%c0_14, %c0_15], %30 {strides = array<i32>} : memref<16x384xf32, #tpu.memory_space<vmem>>, vector<16x384xf32>,
    return
  }
  func.func @transform_0(%arg0: i32) -> (i32, i32) {
    %c0_i32 = arith.constant 0 : i32
    %c0_i32_0 = arith.constant 0 : i32
    return %arg0, %c0_i32 : i32, i32
  }
  func.func @transform_1(%arg0: i32) -> (i32, i32) {
    %c0_i32 = arith.constant 0 : i32
    %c0_i32_0 = arith.constant 0 : i32
    %c0_i32_1 = arith.constant 0 : i32
    return %c0_i32, %c0_i32_0 : i32, i32
  }
  func.func @transform_2(%arg0: i32) -> (i32, i32) {
    %c0_i32 = arith.constant 0 : i32
    %c0_i32_0 = arith.constant 0 : i32
    %c0_i32_1 = arith.constant 0 : i32
    return %c0_i32, %c0_i32_0 : i32, i32
  }
  func.func @transform_3(%arg0: i32) -> (i32, i32) {
    %c0_i32 = arith.constant 0 : i32
    %c0_i32_0 = arith.constant 0 : i32
    %c0_i32_1 = arith.constant 0 : i32
    return %c0_i32, %c0_i32_0 : i32, i32
  }
  func.func @transform_4(%arg0: i32) -> (i32, i32) {
    %c0_i32 = arith.constant 0 : i32
    %c0_i32_0 = arith.constant 0 : i32
    %c0_i32_1 = arith.constant 0 : i32
    return %c0_i32, %c0_i32_0 : i32, i32
  }
  func.func @transform_5(%arg0: i32) -> (i32, i32) {
    %c0_i32 = arith.constant 0 : i32
    %c0_i32_0 = arith.constant 0 : i32
    return %arg0, %c0_i32 : i32, i32
  }
}

module attributes {stable_mosaic.version = 11 : i64} {
  func.func @final_ln_kernel(%arg0: i32, %arg1: memref<16x128xf32, #tpu.memory_space<vmem>>, %arg2: memref<1x128xf32, #tpu.memory_space<vmem>>, %arg3: memref<1x128xf32, #tpu.memory_space<vmem>>, %arg4: memref<16x128xf32, #tpu.memory_space<vmem>>) attributes {dimension_semantics = [#tpu.dimension_semantics<parallel>], iteration_bounds = array<i64: 1>, scalar_prefetch = 0 : i64, scratch_operands = 0 : i64, tpu.core_type = #tpu.core_type<tc>, window_params = [{transform_indices = @transform_0, window_bounds = array<i64: 16, 128>}, {pipeline_mode = #tpu.pipeline_mode<synchronous>, transform_indices = @transform_1, window_bounds = array<i64: 1, 128>}, {pipeline_mode = #tpu.pipeline_mode<synchronous>, transform_indices = @transform_2, window_bounds = array<i64: 1, 128>}, {transform_indices = @transform_3, window_bounds = array<i64: 16, 128>}]} {
    %c0 = arith.constant 0 : index
    %c0_0 = arith.constant 0 : index
    %0 = vector.load %arg1[%c0, %c0_0] : memref<16x128xf32, #tpu.memory_space<vmem>>, vector<16x128xf32>
    %cst = arith.constant dense<0.000000e+00> : vector<16xf32>
    %1 = vector.multi_reduction <add>, %0, %cst [1] : vector<16x128xf32> to vector<16xf32>
    %2 = vector.shape_cast %1 : vector<16xf32> to vector<16x1xf32>
    %cst_1 = arith.constant 1.280000e+02 : f32
    %3 = vector.broadcast %cst_1 : f32 to vector<16x1xf32>
    %4 = arith.divf %2, %3 : vector<16x1xf32>
    %5 = vector.broadcast %4 : vector<16x1xf32> to vector<16x128xf32>
    %6 = arith.subf %0, %5 : vector<16x128xf32>
    %7 = arith.mulf %6, %6 : vector<16x128xf32>
    %cst_2 = arith.constant dense<0.000000e+00> : vector<16xf32>
    %8 = vector.multi_reduction <add>, %7, %cst_2 [1] : vector<16x128xf32> to vector<16xf32>
    %9 = vector.shape_cast %8 : vector<16xf32> to vector<16x1xf32>
    %cst_3 = arith.constant 1.280000e+02 : f32
    %10 = vector.broadcast %cst_3 : f32 to vector<16x1xf32>
    %11 = arith.divf %9, %10 : vector<16x1xf32>
    %12 = vector.broadcast %4 : vector<16x1xf32> to vector<16x128xf32>
    %13 = arith.subf %0, %12 : vector<16x128xf32>
    %cst_4 = arith.constant 9.99999974E-6 : f32
    %14 = vector.broadcast %cst_4 : f32 to vector<16x1xf32>
    %15 = arith.addf %11, %14 : vector<16x1xf32>
    %16 = math.rsqrt %15 : vector<16x1xf32>
    %17 = vector.broadcast %16 : vector<16x1xf32> to vector<16x128xf32>
    %18 = arith.mulf %13, %17 : vector<16x128xf32>
    %c0_5 = arith.constant 0 : index
    %c0_6 = arith.constant 0 : index
    %19 = vector.load %arg2[%c0_5, %c0_6] : memref<1x128xf32, #tpu.memory_space<vmem>>, vector<1x128xf32>
    %20 = vector.broadcast %19 : vector<1x128xf32> to vector<16x128xf32>
    %21 = arith.mulf %18, %20 : vector<16x128xf32>
    %c0_7 = arith.constant 0 : index
    %c0_8 = arith.constant 0 : index
    %22 = vector.load %arg3[%c0_7, %c0_8] : memref<1x128xf32, #tpu.memory_space<vmem>>, vector<1x128xf32>
    %23 = vector.broadcast %22 : vector<1x128xf32> to vector<16x128xf32>
    %24 = arith.addf %21, %23 : vector<16x128xf32>
    %c0_9 = arith.constant 0 : index
    %c0_10 = arith.constant 0 : index
    %25 = vector.load %arg4[%c0_9, %c0_10] : memref<16x128xf32, #tpu.memory_space<vmem>>, vector<16x128xf32>
    tpu.vector_store %arg4[%c0_9, %c0_10], %24 {strides = array<i32>} : memref<16x128xf32, #tpu.memory_space<vmem>>, vector<16x128xf32>,
    return
  }
  func.func @transform_0(%arg0: i32) -> (i32, i32) {
    %c0_i32 = arith.constant 0 : i32
    %c0_i32_0 = arith.constant 0 : i32
    return %arg0, %c0_i32 : i32, i32
  }
  func.func @transform_1(%arg0: i32) -> (i32, i32) {
    %c0_i32 = arith.constant 0 : i32
    %c0_i32_0 = arith.constant 0 : i32
    %c0_i32_1 = arith.constant 0 : i32
    return %c0_i32, %c0_i32_0 : i32, i32
  }
  func.func @transform_2(%arg0: i32) -> (i32, i32) {
    %c0_i32 = arith.constant 0 : i32
    %c0_i32_0 = arith.constant 0 : i32
    %c0_i32_1 = arith.constant 0 : i32
    return %c0_i32, %c0_i32_0 : i32, i32
  }
  func.func @transform_3(%arg0: i32) -> (i32, i32) {
    %c0_i32 = arith.constant 0 : i32
    %c0_i32_0 = arith.constant 0 : i32
    return %arg0, %c0_i32 : i32, i32
  }
}

</mosaic_0001>

<bundles_post_ra>
// kernel: tpu_custom_call.1
= control target key start
LH: loop header
LB: loop body
LE: loop exit
PB: predicated region body
PF: predicated region fallthrough
CT: control target
= control target key end

     0   :  { %6 = vsyncpa [#allocation3], 0  ;;  %s341_s0 = inlined_call_operand.hbm [shape: f32[8,128], index: 0, kind: input, shape index: {}]   ;;  %s342_s1 = inlined_call_operand.hbm [shape: f32[8,128], index: 1, kind: output, shape index: {}]  }
   0x1   :  { %7 = vsyncpa [#allocation4], 0  ;;  %s262_s6 = smov 0  }
   0x2 LB: > { %s145_s7 = sadd.s32 4294967295, %s248_s6   ;;  %p146_p0 = scmp.ge.s32.totalorder %s248_s6, 1  ;;  %s248_s6 = sphi %s262_s6, %s13_s6  }
   0x3   : > { %p60_p1 = scmp.lt.s32.totalorder %s248_s6, 3  ;;  %p276_p3 = scmp.eq.s32.totalorder %s145_s7, 0 }
   0x4   : > { %s250_s10 = smov [#allocation2]   ;;  %s180_s15 = scalar_lea.hbm %s341_s0, 128 }
   0x5   : > { %p270_p2 = pnand %p146_p0, %p60_p1  ;;  %s73_s11 = sshll.u32 %s250_s10, 4  ;;  %s74_s11 = int_to_ptr.vmem [resolvable:$true] %s73_s11 }
   0x6   : > { %s347_s9 = scalar_select %p276_p3, 1, 0 }
   0x7   : > { %s346_s8 = scalar_select %p270_p2, 1, 0 }
   0x8   : > { %p162_p4 = pneg %p270_p2  ;;  %p181_p6 = scmp.ne.s32.totalorder %s341_s0, %s180_s15 }
   0x9   : > { %p187_p10 = scmp.lt.u32.totalorder %s180_s15, %s341_s0 }
   0xa   : > { %p284_p5 = pnand %p276_p3, %p162_p4 }
   0xc   : > { %p182_p7 = pneg %p284_p5 }
   0xe   : > { %p183_p8 = pnand %p182_p7, %p181_p6 }
  0x10   : > { %p184_p9 = pneg %p183_p8 }
  0x12   : > { %p189_p11 = pnand %p187_p10, %p184_p9 }
  0x14   : > { %192 = shalt.err (!%p189_p11)
}
  0x15   : > { %s193_s20 = scalar_lea.vmem %s74_s11, 128  ;;  %p201_p1 = scmp.lt.s32.totalorder %s74_s11, %s74_s11 }
  0x16   : > { %p194_p12 = scmp.ne.s32.totalorder %s74_s11, %s193_s20  ;;  %p202_p4 = scmp.lt.s32.totalorder %s193_s20, %s193_s20 }
  0x18   : > { %p196_p13 = pnand %p194_p12, %p182_p7  ;;  %p203_p3 = por %p202_p4, %p201_p1 }
  0x1a   : > { %p197_p0 = pneg %p196_p13 }
  0x1c   : > { %p204_p2 = pnand %p203_p3, %p197_p0 }
  0x1e   : > { %207 = shalt.err (!%p204_p2)
}
  0x1f   : > { %165 = dma.hbm_to_vmem [thread:$0]  (!%p284_p5), %s341_s0, 128, %s74_s11, [#allocation3]  }
  0x20   : > { %p349_p6 = scmp.ne.s32.totalorder %s346_s8, 0 }
  0x21   : > { %p350_p8 = scmp.ne.s32.totalorder (!%p349_p6), %s347_s9, 0 }
  0x22   : > { %86 = sbr.rel (%p349_p6) target bundleno = 67 (0x43), region = 24 }
  0x29   : > { %239 = dma.done.wait (%p350_p8), [#allocation3], 128  }
  0x2a   : > { %241 = vsyncadd (%p350_p8), [#allocation3], 4294967168  ;;  %s251_s23 = smov [#allocation5]   ;;  %v96_v0 = vld [vmem:[#allocation2] sm:$0xff]  ;;  %p312_p2 = scmp.eq.s32.totalorder %s145_s7, 1 }
  0x2b   : > { %s106_s24 = sshll.u32 %s251_s23, 4  ;;  %v97_v1 = vadd.f32 1.0, %v96_v0  ;;  %s107_s24 = int_to_ptr.vmem [resolvable:$true] %s106_s24 }
  0x2c   : > { %s208_s26 = scalar_lea.vmem %s107_s24, 128  ;;  %p215_p9 = scmp.lt.s32.totalorder %s107_s24, %s107_s24 }
  0x2d   : > { %98 = vst [vmem:[#allocation5] sm:$0xff] %v97_v1  ;;  %p209_p3 = scmp.ne.s32.totalorder %s107_s24, %s208_s26  ;;  %p216_p10 = scmp.lt.s32.totalorder %s208_s26, %s208_s26 }
  0x2f   : > { %p210_p5 = pnand %p209_p3, %p312_p2  ;;  %p217_p11 = por %p216_p10, %p215_p9 }
  0x31   : > { %p211_p7 = pneg %p210_p5 }
  0x33   : > { %p218_p12 = pnand %p217_p11, %p211_p7 }
  0x35   : > { %221 = shalt.err (!%p218_p12)
}
  0x36   : > { %s222_s29 = scalar_lea.hbm %s342_s1, 128 }
  0x37   : > { %p223_p13 = scmp.ne.s32.totalorder %s342_s1, %s222_s29  ;;  %p228_p4 = scmp.lt.u32.totalorder %s222_s29, %s342_s1 }
  0x39   : > { %p224_p0 = pnand %p223_p13, %p312_p2 }
  0x3b   : > { %p225_p1 = pneg %p224_p0 }
  0x3d   : > { %p230_p6 = pnand %p228_p4, %p225_p1 }
  0x3f   : > { %233 = shalt.err (!%p230_p6)
}
  0x40   : > { %159 = dma.vmem_to_hbm [thread:$0]  (%p312_p2), %s107_s24, 128, %s342_s1, [#allocation4]  }
  0x41   : > { %243 = dma.done.wait (%p312_p2), [#allocation4], 128  }
  0x42   : > { %245 = vsyncadd (%p312_p2), [#allocation4], 4294967168 }
  0x43 PF: > { %s13_s6 = sadd.s32 1, %s248_s6  }
  0x44   : > { %p10_p8 = scmp.ge.s32.totalorder %s13_s6, 4  }
  0x46   :  { %12 = sbr.rel (!%p10_p8) target bundleno = 2 (0x2), region = 53 }
  0x4d   :  { %119 = vsyncpa [#allocation3], 1 }
  0x4e   :  { %121 = vsyncpa [#allocation3 + $0x1], 1 }
  0x4f   :  { %122 = vsyncpa [#allocation4], 1 }
  0x50   :  { %124 = vsyncpa [#allocation4 + $0x1], 1 }

// kernel: custom-call.2
= control target key start
LH: loop header
LB: loop body
LE: loop exit
PB: predicated region body
PF: predicated region fallthrough
CT: control target
= control target key end

     0   :  { %s6_s0 = inlined_call_operand.vmem [shape: u32[1152], index: 0, kind: output, shape index: {}]  }

// kernel: custom-call
= control target key start
LH: loop header
LB: loop body
LE: loop exit
PB: predicated region body
PF: predicated region fallthrough
CT: control target
= control target key end

     0   :  { %s6_s0 = inlined_call_operand.vmem [shape: u32[9], index: 0, kind: output, shape index: {}]  }

// kernel: image_encoder_forward.11
= control target key start
LH: loop header
LB: loop body
LE: loop exit
PB: predicated region body
PF: predicated region fallthrough
CT: control target
= control target key end

     0   :  { %10 = vsyncpa [#allocation3], 0  ;;  %s472_s18 = smov [#allocation2]   ;;  %s572_s0 = inlined_call_operand.vmem [shape: f32[16,128], index: 0, kind: input, shape index: {}]   ;;  %s573_s1 = inlined_call_operand.vmem [shape: f32[1,128], index: 1, kind: input, shape index: {}]   ;;  %s574_s2 = inlined_call_operand.vmem [shape: f32[1,128], index: 2, kind: input, shape index: {}]   ;;  %s575_s3 = inlined_call_operand.hbm [shape: bf16[128,384], index: 3, kind: input, shape index: {}]   ;;  %s576_s4 = inlined_call_operand.vmem [shape: f32[1,384], index: 4, kind: input, shape index: {}]   ;;  %s577_s5 = inlined_call_operand.vmem [shape: f32[16,384], index: 5, kind: output, shape index: {}]  }
   0x1   :  { %s22_s19 = sshll.u32 %s472_s18, 4  ;;  %s448_s22 = scalar_lea.hbm %s575_s3, 3072  ;;  %s23_s19 = int_to_ptr.vmem [resolvable:$true] %s22_s19 }
   0x2   :  { %p449_p0 = scmp.ne.s32.totalorder %s575_s3, %s448_s22  ;;  %p452_p1 = scmp.lt.u32.totalorder %s448_s22, %s575_s3 }
   0x4   :  { %p454_p2 = pnand %p452_p1, %p449_p0 }
   0x6   :  { %457 = shalt.err (!%p454_p2)
}
   0x7   :  { %s458_s27 = scalar_lea.vmem %s23_s19, 3072  ;;  %p463_p4 = scmp.lt.s32.totalorder %s23_s19, %s23_s19 }
   0x8   :  { %p459_p3 = scmp.ne.s32.totalorder %s23_s19, %s458_s27  ;;  %p464_p5 = scmp.lt.s32.totalorder %s458_s27, %s458_s27 }
   0xa   :  { %p465_p6 = por %p464_p5, %p463_p4 }
   0xc   :  { %p466_p7 = pnand %p465_p6, %p459_p3 }
   0xe   :  { %469 = shalt.err (!%p466_p7)
}
   0xf   :  { %s473_s28 = smov 192   ;;  %s474_s29 = smov 12  }
  0x10   :  { %28 = dma.hbm_to_vmem [thread:$0]  %s575_s3, 3072, %s23_s19, [#allocation3], %s473_s28, %s473_s28, %s474_s29  }
  0x11   :  { %470 = dma.done.wait [#allocation3], 3072  }
  0x12   :  { %471 = vsyncadd [#allocation3], 4294964224  ;;  %v35_v0 = vld [vmem:[%s572_s0] sm:$0xff]  ;;  %v36_v1 = vld [vmem:[%s572_s0 + $0x8] sm:$0xff]  ;;  %v475_v4 = vmov 0.0   ;;  %v476_v30 = vmov 0   ;;  %v113_v53 = vlaneseq }
  0x13   :  { %37 = vadd.xlane.f32.xlu0 %v35_v0  ;;  %v412_v2 = vld [vmem:[#allocation2 + $0x4] ss:$12 sps:$4 sm:$0xff]   ;;  %v414_v3 = vld [vmem:[#allocation2] ss:$12 sps:$4 sm:$0xff]   ;;  %386 = vmatprep.subr.bf16.mxu1 %v475_v4  ;;  %v415_v5 = vld [vmem:[#allocation2 + $0x8] ss:$12 sps:$4 sm:$0xff]  }
  0x14   :  { %v416_v6 = vld [vmem:[#allocation2 + $0x1c] ss:$12 sps:$4 sm:$0xff]   ;;  %256 = vmatprep.subr.bf16.mxu0 %v412_v2  ;;  %387 = vmatpush3.bf16.msra.mxu1 %v415_v5  ;;  %v418_v15 = vld [vmem:[#allocation2 + $0x18] ss:$12 sps:$4 sm:$0xff]   ;;  %v419_v16 = vld [vmem:[#allocation2 + $0x20] ss:$12 sps:$4 sm:$0xff]  }
  0x15   :  { %257 = vmatpush1.bf16.msra.mxu0 %v414_v3  ;;  %388 = vmatprep.subr.bf16.mxu1 %v475_v4  ;;  %v420_v17 = vld [vmem:[#allocation2 + $0x34] ss:$12 sps:$4 sm:$0xff]   ;;  %v422_v18 = vld [vmem:[#allocation2 + $0x30] ss:$12 sps:$4 sm:$0xff]   ;;  %v423_v19 = vld [vmem:[#allocation2 + $0x38] ss:$12 sps:$4 sm:$0xff]  }
  0x16   :  { %258 = vmatprep.subr.bf16.mxu0 %v416_v6  ;;  %v424_v20 = vld [vmem:[#allocation2 + $0x4c] ss:$12 sps:$4 sm:$0xff]   ;;  %v426_v21 = vld [vmem:[#allocation2 + $0x48] ss:$12 sps:$4 sm:$0xff]   ;;  %v427_v22 = vld [vmem:[#allocation2 + $0x50] ss:$12 sps:$4 sm:$0xff]   ;;  %288 = vmatprep.mubr.bf16.mxu0 %v476_v30 }
  0x17   :  { %39 = vadd.xlane.f32.xlu0 %v36_v1  ;;  %v428_v23 = vld [vmem:[#allocation2 + $0x64] ss:$12 sps:$4 sm:$0xff]   ;;  %v430_v24 = vld [vmem:[#allocation2 + $0x60] ss:$12 sps:$4 sm:$0xff]   ;;  %v431_v25 = vld [vmem:[#allocation2 + $0x68] ss:$12 sps:$4 sm:$0xff]  }
  0x18   :  { %389 = vmatpush3.bf16.msra.mxu1 %v419_v16  ;;  %v432_v26 = vld [vmem:[#allocation2 + $0x7c] ss:$12 sps:$4 sm:$0xff]   ;;  %v434_v27 = vld [vmem:[#allocation2 + $0x78] ss:$12 sps:$4 sm:$0xff]   ;;  %v435_v28 = vld [vmem:[#allocation2 + $0x80] ss:$12 sps:$4 sm:$0xff]  }
  0x19   :  { %259 = vmatpush1.bf16.msra.mxu0 %v418_v15  ;;  %390 = vmatprep.subr.bf16.mxu1 %v475_v4  ;;  %v436_v29 = vld [vmem:[#allocation2 + $0x94] ss:$12 sps:$4 sm:$0xff]   ;;  %vm477_vm0 = vmmov 0   ;;  %v438_v31 = vld [vmem:[#allocation2 + $0x90] ss:$12 sps:$4 sm:$0xff]   ;;  %v114_v54 = vshrl.u32 %v113_v53, 7 }
  0x1a   :  { %260 = vmatprep.subr.bf16.mxu0 %v420_v17  ;;  %402 = vmatprep.mubr.msk.bf16.mxu1 %vm477_vm0, %v475_v4  ;;  %v439_v32 = vld [vmem:[#allocation2 + $0x98] ss:$12 sps:$4 sm:$0xff]   ;;  %v442_v34 = vld [vmem:[#allocation2 + $0xa8] ss:$12 sps:$4 sm:$0xff]   ;;  %v443_v35 = vld [vmem:[#allocation2 + $0xb0] ss:$12 sps:$4 sm:$0xff]  }
  0x1b   :  { %v440_v33 = vld [vmem:[#allocation2 + $0xac] ss:$12 sps:$4 sm:$0xff]   ;;  %v351_v44 = vld [vmem:[%s573_s1] ss:$0 sm:$0xff]  ;;  %v115_v55 = vsub.s32 0, %v114_v54  ;;  %v123_v56 = vsub.s32 2, %v114_v54 }
  0x1c   :  { %391 = vmatpush3.bf16.msra.mxu1 %v423_v19  ;;  %v352_v48 = vld [vmem:[%s574_s2] ss:$0 sm:$0xff]  ;;  %v119_v58 = vsub.s32 1, %v114_v54 }
  0x1d   :  { %261 = vmatpush1.bf16.msra.mxu0 %v422_v18  ;;  %392 = vmatprep.subr.bf16.mxu1 %v475_v4  ;;  %v111_v57 = vld [vmem:[%s576_s4] sm:$0x7] }
  0x1e   :  { %262 = vmatprep.subr.bf16.mxu0 %v424_v20  ;;  %v116_v59 = vrot.slane %v111_v57, %v115_v55  ;;  %v124_v60 = vrot.slane %v111_v57, %v123_v56  ;;  %v120_v61 = vrot.slane %v111_v57, %v119_v58 }
  0x20   :  { %393 = vmatpush3.bf16.msra.mxu1 %v427_v22 }
  0x21   :  { %263 = vmatpush1.bf16.msra.mxu0 %v426_v21  ;;  %394 = vmatprep.subr.bf16.mxu1 %v475_v4 }
  0x22   :  { %264 = vmatprep.subr.bf16.mxu0 %v428_v23 }
  0x24   :  { %395 = vmatpush3.bf16.msra.mxu1 %v431_v25 }
  0x25   :  { %265 = vmatpush1.bf16.msra.mxu0 %v430_v24  ;;  %396 = vmatprep.subr.bf16.mxu1 %v475_v4 }
  0x26   :  { %266 = vmatprep.subr.bf16.mxu0 %v432_v26 }
  0x28   :  { %397 = vmatpush3.bf16.msra.mxu1 %v435_v28 }
  0x29   :  { %267 = vmatpush1.bf16.msra.mxu0 %v434_v27  ;;  %398 = vmatprep.subr.bf16.mxu1 %v475_v4 }
  0x2a   :  { %268 = vmatprep.subr.bf16.mxu0 %v436_v29 }
  0x2c   :  { %399 = vmatpush3.bf16.msra.mxu1 %v439_v32 }
  0x2d   :  { %269 = vmatpush1.bf16.msra.mxu0 %v438_v31  ;;  %400 = vmatprep.subr.bf16.mxu1 %v475_v4 }
  0x2e   :  { %270 = vmatprep.subr.bf16.mxu0 %v440_v33 }
  0x30   :  { %401 = vmatpush3.bf16.msra.mxu1 %v443_v35 }
  0x31   :  { %271 = vmatpush1.bf16.msra.mxu0 %v442_v34 }
  0xa0   :  { %v38_v7 = vpop.xlane.xlu0 %37 }
  0xa1   :  { %v42_v8 = vmul.f32 0.0078125, %v38_v7 }
  0xa3   :  { %v528_v9 = vsub.f32 %v35_v0, %v42_v8 }
  0xa4   :  { %v40_v10 = vpop.xlane.xlu0 %39 }
  0xa5   :  { %v43_v11 = vmul.f32 0.0078125, %v40_v10  ;;  %v46_v12 = vmul.f32 %v528_v9, %v528_v9 }
  0xa7   :  { %v532_v13 = vsub.f32 %v36_v1, %v43_v11  ;;  %48 = vadd.xlane.f32.xlu1 %v46_v12 }
  0xa9   :  { %v47_v14 = vmul.f32 %v532_v13, %v532_v13 }
  0xab   :  { %50 = vadd.xlane.f32.xlu1 %v47_v14 }
 0x134   :  { %v49_v36 = vpop.xlane.xlu1 %48 }
 0x135   :  { %v52_v37 = vmul.f32 0.0078125, %v49_v36 }
 0x137   :  { %v54_v38 = vadd.f32 1e-05, %v52_v37 }
 0x138   :  { %v51_v39 = vpop.xlane.xlu1 %50 }
 0x139   :  { %444 = vrsqrt.f32 %v54_v38  ;;  %v53_v40 = vmul.f32 0.0078125, %v51_v39 }
 0x13b   :  { %v55_v41 = vadd.f32 1e-05, %v53_v40 }
 0x13d   :  { %446 = vrsqrt.f32 %v55_v41 }
 0x143   :  { %v445_v42 = vpop.eup %444 }
 0x144   :  { %v58_v43 = vmul.f32 %v445_v42, %v528_v9 }
 0x146   :  { %v67_v47 = vmul.f32 %v351_v44, %v58_v43 }
 0x147   :  { %v447_v45 = vpop.eup %446 }
 0x148   :  { %v59_v46 = vmul.f32 %v447_v45, %v532_v13  ;;  %v76_v50 = vadd.f32 %v352_v48, %v67_v47 }
 0x14a   :  { %v68_v49 = vmul.f32 %v351_v44, %v59_v46 }
 0x14c   :  { %v77_v51 = vadd.f32 %v352_v48, %v68_v49 }
 0x14e   :  { %v78_v52 = vpack.c.bf16 %v77_v51, %v76_v50 }
 0x150   :  { %289 = vmatmul.mubr.bf16.vlgmr.msra.gmra.mrb[0].mxu0 %v78_v52  ;;  %403 = vmatmul.mubr.bf16.vlgmr.msra.gmra.mrb[0].mxu1 %v78_v52 }
 0x223   :  { %v290_v62 = vpop.f32.mrb[0].mxu0  ;;  %v333_v63 = vpop.f32.mrb[0].mxu1 }
 0x224   :  { %v291_v0 = vadd.f32 %v290_v62, %v116_v59  ;;  %v334_v1 = vadd.f32 %v333_v63, %v124_v60  ;;  %v292_v2 = vpop.f32.mrb[1].mxu0  ;;  %v404_v3 = vpop.f32.mrb[1].mxu1 }
 0x225   :  { %v293_v4 = vadd.f32 %v292_v2, %v120_v61  ;;  %v294_v5 = vpop.f32.mrb[2].mxu0  ;;  %v336_v6 = vpop.f32.mrb[2].mxu1 }
 0x226   :  { %340 = vst [vmem:[%s577_s5] sm:$0xff] %v291_v0  ;;  %342 = vst [vmem:[%s577_s5 + $0x10] sm:$0xff] %v334_v1  ;;  %v295_v7 = vadd.f32 %v294_v5, %v116_v59  ;;  %v337_v8 = vadd.f32 %v336_v6, %v124_v60  ;;  %v296_v9 = vpop.f32.mrb[3].mxu0  ;;  %v405_v10 = vpop.f32.mrb[3].mxu1 }
 0x227   :  { %341 = vst [vmem:[%s577_s5 + $0x8] sm:$0xff] %v293_v4  ;;  %v297_v11 = vadd.f32 %v296_v9, %v120_v61 }
 0x228   :  { %343 = vst [vmem:[%s577_s5 + $0x18] sm:$0xff] %v295_v7  ;;  %345 = vst [vmem:[%s577_s5 + $0x28] sm:$0xff] %v337_v8 }
 0x229   :  { %344 = vst [vmem:[%s577_s5 + $0x20] sm:$0xff] %v297_v11 }
 0x22a   :  { %350 = vsyncpa [#allocation3], 1 }

// kernel: image_encoder_forward.13
= control target key start
LH: loop header
LB: loop body
LE: loop exit
PB: predicated region body
PF: predicated region fallthrough
CT: control target
= control target key end

     0   :  { %v271_v2 = vmov 0.0   ;;  %vm272_vm0 = vmmov 0   ;;  %s359_s0 = inlined_call_operand.vmem [shape: f32[16,128], index: 0, kind: input, shape index: {}]   ;;  %s360_s3 = inlined_call_operand.vmem [shape: bf16[128,128], index: 3, kind: input, shape index: {}]   ;;  %s361_s1 = inlined_call_operand.vmem [shape: f32[1,128], index: 1, kind: input, shape index: {}]   ;;  %s362_s2 = inlined_call_operand.vmem [shape: f32[1,128], index: 2, kind: input, shape index: {}]   ;;  %s363_s4 = inlined_call_operand.vmem [shape: f32[1,128], index: 4, kind: input, shape index: {}]   ;;  %s364_s6 = inlined_call_operand.vmem [shape: f32[16,128], index: 6, kind: output, shape index: {1}]   ;;  %s365_s5 = inlined_call_operand.vmem [shape: f32[16,128], index: 5, kind: output, shape index: {0}]  }
   0x1   :  { %v23_v0 = vld [vmem:[%s359_s0] sm:$0xff]  ;;  %v24_v1 = vld [vmem:[%s359_s0 + $0x8] sm:$0xff]  ;;  %233 = vmatprep.subr.bf16.mxu0 %v271_v2  ;;  %v257_v13 = vld [vmem:[%s360_s3 + $0x10] sm:$0xff]   ;;  %249 = vmatprep.mubr.msk.bf16.mxu0 %vm272_vm0, %v271_v2 }
   0x2   :  { %25 = vadd.xlane.f32.xlu0 %v23_v0  ;;  %v255_v3 = vld [vmem:[%s360_s3] sm:$0xff]   ;;  %v256_v12 = vld [vmem:[%s360_s3 + $0x8] sm:$0xff]   ;;  %v258_v14 = vld [vmem:[%s360_s3 + $0x18] sm:$0xff]  }
   0x3   :  { %234 = vmatpush3.bf16.msra.mxu0 %v255_v3  ;;  %v259_v15 = vld [vmem:[%s360_s3 + $0x20] sm:$0xff]   ;;  %v260_v16 = vld [vmem:[%s360_s3 + $0x28] sm:$0xff]   ;;  %v261_v17 = vld [vmem:[%s360_s3 + $0x30] sm:$0xff]  }
   0x4   :  { %235 = vmatprep.subr.bf16.mxu0 %v271_v2  ;;  %v262_v18 = vld [vmem:[%s360_s3 + $0x38] sm:$0xff]   ;;  %v213_v26 = vld [vmem:[%s361_s1] ss:$0 sm:$0xff] }
   0x5   :  { %v214_v28 = vld [vmem:[%s362_s2] ss:$0 sm:$0xff] }
   0x6   :  { %27 = vadd.xlane.f32.xlu0 %v24_v1  ;;  %v215_v44 = vld [vmem:[%s363_s4] ss:$0 sm:$0xff] }
   0x7   :  { %236 = vmatpush3.bf16.msra.mxu0 %v256_v12 }
   0x8   :  { %237 = vmatprep.subr.bf16.mxu0 %v271_v2 }
   0xb   :  { %238 = vmatpush3.bf16.msra.mxu0 %v257_v13 }
   0xc   :  { %239 = vmatprep.subr.bf16.mxu0 %v271_v2 }
   0xf   :  { %240 = vmatpush3.bf16.msra.mxu0 %v258_v14 }
  0x10   :  { %241 = vmatprep.subr.bf16.mxu0 %v271_v2 }
  0x13   :  { %242 = vmatpush3.bf16.msra.mxu0 %v259_v15 }
  0x14   :  { %243 = vmatprep.subr.bf16.mxu0 %v271_v2 }
  0x17   :  { %244 = vmatpush3.bf16.msra.mxu0 %v260_v16 }
  0x18   :  { %245 = vmatprep.subr.bf16.mxu0 %v271_v2 }
  0x1b   :  { %246 = vmatpush3.bf16.msra.mxu0 %v261_v17 }
  0x1c   :  { %247 = vmatprep.subr.bf16.mxu0 %v271_v2 }
  0x1f   :  { %248 = vmatpush3.bf16.msra.mxu0 %v262_v18 }
  0x8f   :  { %v26_v4 = vpop.xlane.xlu0 %25 }
  0x90   :  { %v30_v5 = vmul.f32 0.0078125, %v26_v4 }
  0x92   :  { %v32_v6 = vsub.f32 %v23_v0, %v30_v5 }
  0x93   :  { %v28_v7 = vpop.xlane.xlu0 %27 }
  0x94   :  { %v31_v8 = vmul.f32 0.0078125, %v28_v7  ;;  %v34_v9 = vmul.f32 %v32_v6, %v32_v6 }
  0x96   :  { %v33_v10 = vsub.f32 %v24_v1, %v31_v8  ;;  %36 = vadd.xlane.f32.xlu1 %v34_v9 }
  0x98   :  { %v35_v11 = vmul.f32 %v33_v10, %v33_v10 }
  0x9a   :  { %38 = vadd.xlane.f32.xlu1 %v35_v11 }
 0x123   :  { %v37_v19 = vpop.xlane.xlu1 %36 }
 0x124   :  { %v40_v20 = vmul.f32 0.0078125, %v37_v19 }
 0x126   :  { %v42_v21 = vadd.f32 1e-05, %v40_v20 }
 0x127   :  { %v39_v22 = vpop.xlane.xlu1 %38 }
 0x128   :  { %263 = vrsqrt.f32 %v42_v21  ;;  %v41_v23 = vmul.f32 0.0078125, %v39_v22 }
 0x12a   :  { %v43_v24 = vadd.f32 1e-05, %v41_v23 }
 0x12c   :  { %265 = vrsqrt.f32 %v43_v24 }
 0x132   :  { %v264_v25 = vpop.eup %263 }
 0x133   :  { %v46_v27 = vmul.f32 %v264_v25, %v32_v6 }
 0x135   :  { %v55_v29 = vmul.f32 %v213_v26, %v46_v27 }
 0x136   :  { %v266_v30 = vpop.eup %265 }
 0x137   :  { %v64_v31 = vadd.f32 %v214_v28, %v55_v29  ;;  %v47_v32 = vmul.f32 %v266_v30, %v33_v10 }
 0x139   :  { %66 = vadd.xlane.f32.xlu0 %v64_v31  ;;  %v56_v33 = vmul.f32 %v213_v26, %v47_v32 }
 0x13b   :  { %v65_v34 = vadd.f32 %v214_v28, %v56_v33 }
 0x13d   :  { %68 = vadd.xlane.f32.xlu1 %v65_v34  ;;  %v90_v35 = vpack.c.bf16 %v65_v34, %v64_v31 }
 0x13f   :  { %250 = vmatmul.mubr.bf16.vlgmr.msra.gmra.mrb[0].mxu0 %v90_v35 }
 0x1c6   :  { %v67_v36 = vpop.xlane.xlu0 %66 }
 0x1c7   :  { %v70_v37 = vmul.f32 0.0078125, %v67_v36 }
 0x1c9   :  { %v72_v38 = vsub.f32 %v64_v31, %v70_v37 }
 0x1ca   :  { %v69_v39 = vpop.xlane.xlu1 %68 }
 0x1cb   :  { %v71_v40 = vmul.f32 0.0078125, %v69_v39  ;;  %v74_v41 = vmul.f32 %v72_v38, %v72_v38 }
 0x1cd   :  { %v73_v42 = vsub.f32 %v65_v34, %v71_v40  ;;  %76 = vadd.xlane.f32.xlu0 %v74_v41 }
 0x1cf   :  { %v75_v43 = vmul.f32 %v73_v42, %v73_v42 }
 0x1d1   :  { %78 = vadd.xlane.f32.xlu1 %v75_v43 }
 0x212   :  { %v196_v45 = vpop.f32.mrb[0].mxu0 }
 0x213   :  { %v197_v46 = vadd.f32 %v215_v44, %v196_v45  ;;  %v251_v47 = vpop.f32.mrb[1].mxu0 }
 0x214   :  { %v199_v48 = vpop.f32.mrb[2].mxu0 }
 0x215   :  { %203 = vst [vmem:[%s364_s6] sm:$0xff] %v197_v46  ;;  %v200_v49 = vadd.f32 %v215_v44, %v199_v48  ;;  %v252_v50 = vpop.f32.mrb[3].mxu0 }
 0x217   :  { %204 = vst [vmem:[%s364_s6 + $0x8] sm:$0xff] %v200_v49 }
 0x25a   :  { %v77_v51 = vpop.xlane.xlu0 %76 }
 0x25b   :  { %v80_v52 = vmul.f32 0.0078125, %v77_v51 }
 0x25d   :  { %v82_v53 = vadd.f32 1e-05, %v80_v52 }
 0x25e   :  { %v79_v54 = vpop.xlane.xlu1 %78 }
 0x25f   :  { %267 = vrsqrt.f32 %v82_v53  ;;  %v81_v55 = vmul.f32 0.0078125, %v79_v54 }
 0x261   :  { %v83_v56 = vadd.f32 1e-05, %v81_v55 }
 0x263   :  { %269 = vrsqrt.f32 %v83_v56 }
 0x269   :  { %v268_v57 = vpop.eup %267 }
 0x26a   :  { %v86_v58 = vmul.f32 %v268_v57, %v72_v38 }
 0x26c   :  { %88 = vst [vmem:[%s365_s5] sm:$0xff] %v86_v58 }
 0x26d   :  { %v270_v59 = vpop.eup %269 }
 0x26e   :  { %v87_v60 = vmul.f32 %v270_v59, %v73_v42 }
 0x270   :  { %89 = vst [vmem:[%s365_s5 + $0x8] sm:$0xff] %v87_v60 }

// kernel: image_encoder_forward.12
= control target key start
LH: loop header
LB: loop body
LE: loop exit
PB: predicated region body
PF: predicated region fallthrough
CT: control target
= control target key end

     0   :  { %s1836_s15 = smov 0   ;;  %s2090_s0 = inlined_call_operand.vmem [shape: f32[2,8,384], index: 0, kind: input, shape index: {}]   ;;  %s2091_s1 = inlined_call_operand.vmem [shape: f32[2,8,128], index: 1, kind: input, shape index: {}]   ;;  %s2092_s2 = inlined_call_operand.vmem [shape: bf16[128,128], index: 2, kind: input, shape index: {}]   ;;  %s2093_s3 = inlined_call_operand.vmem [shape: f32[1,128], index: 3, kind: input, shape index: {}]   ;;  %s2094_s4 = inlined_call_operand.vmem [shape: f32[2,8,128], index: 4, kind: output, shape index: {}]  }
   0x1 LB: > { %s1544_s16 = sadd.s32 4294967295, %s1800_s15   ;;  %p1548_p0 = scmp.ge.s32.totalorder %s1800_s15, 1  ;;  %s1800_s15 = sphi %s1836_s15, %s14_s15  }
   0x2   : > { %p171_p1 = scmp.lt.s32.totalorder %s1800_s15, 3 }
   0x4   : > { %p172_p2 = pnand %p1548_p0, %p171_p1 }
   0x5   : > { %p200_p3 = scmp.lt.s32.totalorder (!%p172_p2), %s1544_s16, 1  ;;  %v1802_v0 = vmov (!%p172_p2), 0.0   ;;  %vm1803_vm0 = vmmov (!%p172_p2), 0   ;;  %vm218_vm1 = vcmask (!%p172_p2), 130048   ;;  %s1804_s21 = smov (!%p172_p2), 112   ;;  %vm295_vm2 = vcmask (!%p172_p2), 64512  }
   0x6   : > { %175 = sbr.rel (%p172_p2) target bundleno = 2466 (0x9a2), region = 36  ;;  %1628 = vmatprep.subr.mxu0 (!%p172_p2), %v1802_v0  ;;  %1630 = vmatprep.mubr.msk.f32.mxu0 (!%p172_p2), %vm1803_vm0, %v1802_v0  ;;  %vm307_vm3 = vcmask (!%p172_p2), 1043456   ;;  %s1805_s22 = smov (!%p172_p2), 96   ;;  %vm1352_vm4 = vcmask (!%p172_p2), 261120   ;;  %vm1354_vm5 = vcmask (!%p172_p2), 392192   ;;  %vm1356_vm6 = vcmask (!%p172_p2), 523264  }
   0x7   : > { %1655 = vmatprep.subr.bf16.mxu1 (!%p172_p2), %v1802_v0  ;;  %1657 = vmatprep.mubr.msk.bf16.mxu1 (!%p172_p2), %vm1803_vm0, %v1802_v0  ;;  %s1806_s23 = smov (!%p172_p2), 80   ;;  %s1807_s24 = smov (!%p172_p2), 64   ;;  %vm1358_vm7 = vcmask (!%p172_p2), 654336   ;;  %vm1360_vm8 = vcmask (!%p172_p2), 785408   ;;  %vm1362_vm9 = vcmask (!%p172_p2), 916480  }
   0x8   : > { %s1808_s25 = smov (!%p172_p2), 48   ;;  %s1809_s26 = smov (!%p172_p2), 32  }
   0x9   : > { %s1810_s27 = smov (!%p172_p2), 16  }
   0xd   : > { %s2096_s16 = smov (!%p200_p3, %s1544_s16), 1 }
   0xe   : > { %s1736_s17 = smul.u32 24, %s2096_s16 }
  0x10   : > { %s204_s20 = scalar_lea.vmem %s2090_s0, %s1736_s17 }
  0x11   : > { %v214_v1 = vld [vmem:[%s204_s20] sm:$0xff]  ;;  %v1856_v2 = vld [vmem:[%s204_s20 + $0x8] sm:$0xff]  ;;  %v216_v7 = vld [vmem:[%s204_s20 + $0x10] sm:$0xff]  ;;  %s1550_s20 = sshll.u32 %s2096_s16, 3 }
  0x12   : > { %v1858_v3 = vmul.f32 0.25, %v214_v1  ;;  %1629 = vmatpush3.xpose.msk.msra.mxu0 %vm218_vm1, %v1856_v2  ;;  %v1870_v8 = vpack.c.bf16 %v216_v7, %v216_v7  ;;  %s212_s28 = scalar_lea.vmem %s2094_s4, %s1550_s20 }
  0x13   : > { %1633 = vmatprep.subr.bf16.mxu0 %v1802_v0 }
  0x14   : > { %356 = vrot.lane.b32.xlu1 %v1858_v3, %s1804_s21  ;;  %v309_v9 = vsel %vm307_vm3, %v1870_v8, 0 }
  0x15   : > { %1631 = vmatmul.mubr.msk.f32.vlgmr.msra.gmra.mrb[0].mxu0 %vm218_vm1, %v1858_v3 }
  0x16   : > { %1635 = vmatprep.mubr.msk.bf16.mxu0 %vm1803_vm0, %v1802_v0  ;;  %1634 = vmatpush3.bf16.msra.mxu0 %v309_v9 }
  0x17   : > { %1639 = vmatprep.subr.mxu0 %v1802_v0 }
  0x86   : > { %v357_v16 = vpop.permute.xlu1 %356 }
  0xe8   : > { %v291_v4 = vpop.f32.mrb[0].mxu0 }
  0xe9   : > { %v1632_v5 = vpop.f32.mrb[1].mxu0  ;;  %v296_v6 = vsel %vm295_vm2, %v291_v4, -inf }
  0xea   : > { %297 = vmax.xlane.f32.xlu0 %v296_v6 }
 0x100   : > { %358 = vrot.lane.b32.xlu0 %v1856_v2, %s1804_s21 }
 0x104   : > { %442 = vrot.lane.b32.xlu0 %v1870_v8, %s1804_s21 }
 0x108   : > { %497 = vrot.lane.b32.xlu0 %v1856_v2, %s1805_s22 }
 0x10c   : > { %495 = vrot.lane.b32.xlu0 %v1858_v3, %s1805_s22 }
 0x110   : > { %635 = vrot.lane.b32.xlu0 %v1856_v2, %s1806_s23 }
 0x114   : > { %580 = vrot.lane.b32.xlu0 %v1870_v8, %s1805_s22 }
 0x177   : > { %v298_v10 = vpop.xlane.xlu0 %297 }
 0x178   : > { %v299_v11 = vsub.f32 %v291_v4, %v298_v10 }
 0x17a   : > { %v300_v12 = vmul.f32 1.442695, %v299_v11 }
 0x17b   : > { %v359_v14 = vpop.permute.xlu0 %358 }
 0x17c   : > { %1762 = vpow2.f32 %v300_v12 }
 0x17f   : > { %v443_v24 = vpop.permute.xlu0 %442 }
 0x180   : > { %v448_v25 = vsel %vm307_vm3, %v443_v24, 0 }
 0x183   : > { %v498_v29 = vpop.permute.xlu0 %497 }
 0x186   : > { %v1879_v13 = vpop.eup %1762 }
 0x187   : > { %v302_v15 = vpack.c.bf16 %v1879_v13, %v1879_v13  ;;  %v496_v32 = vpop.permute.xlu0 %495 }
 0x189   : > { %1636 = vmatmul.mubr.msk.bf16.vlgmr.msra.gmra.mrb[4].mxu0 %vm295_vm2, %v302_v15 }
 0x18a   : > { %1640 = vmatpush3.xpose.msk.msra.mxu0 %vm218_vm1, %v359_v14  ;;  %1641 = vmatprep.mubr.msk.f32.mxu0 %vm1803_vm0, %v1802_v0 }
 0x18b   : > { %1644 = vmatprep.subr.bf16.mxu0 %v1802_v0  ;;  %v636_v33 = vpop.permute.xlu0 %635 }
 0x18f   : > { %v581_v35 = vpop.permute.xlu0 %580 }
 0x190   : > { %v586_v36 = vsel %vm307_vm3, %v581_v35, 0 }
 0x191   : > { %1642 = vmatmul.mubr.msk.f32.vlgmr.msra.gmra.mrb[2].mxu0 %vm218_vm1, %v357_v16  ;;  %1656 = vmatpush3.bf16.msra.mxu1 %v586_v36 }
 0x192   : > { %1646 = vmatprep.mubr.msk.bf16.mxu0 %vm1803_vm0, %v1802_v0  ;;  %1645 = vmatpush3.bf16.msra.mxu0 %v448_v25 }
 0x193   : > { %1650 = vmatprep.subr.mxu0 %v1802_v0  ;;  %1672 = vmatprep.subr.mxu1 %v1802_v0 }
 0x25c   : > { %v1899_v17 = vpop.f32.mrb[4].mxu0 }
 0x25d   : > { %v1637_v18 = vpop.f32.mrb[5].mxu0 }
 0x25e   : > { %v348_v19 = vpop.f32.mrb[6].mxu0 }
 0x25f   : > { %v1638_v20 = vpop.f32.mrb[7].mxu0 }
 0x264   : > { %v430_v21 = vpop.f32.mrb[2].mxu0 }
 0x265   : > { %v1643_v22 = vpop.f32.mrb[3].mxu0  ;;  %v434_v23 = vsel %vm295_vm2, %v430_v21, -inf }
 0x266   : > { %435 = vmax.xlane.f32.xlu1 %v434_v23 }
 0x277   : > { %633 = vrot.lane.b32.xlu1 %v1858_v3, %s1806_s23 }
 0x2f3   : > { %v436_v26 = vpop.xlane.xlu1 %435 }
 0x2f4   : > { %v437_v27 = vsub.f32 %v430_v21, %v436_v26 }
 0x2f6   : > { %v438_v28 = vmul.f32 1.442695, %v437_v27 }
 0x2f7   : > { %v634_v34 = vpop.permute.xlu1 %633 }
 0x2f8   : > { %1764 = vpow2.f32 %v438_v28 }
 0x302   : > { %v1906_v30 = vpop.eup %1764 }
 0x303   : > { %v440_v31 = vpack.c.bf16 %v1906_v30, %v1906_v30 }
 0x305   : > { %1647 = vmatmul.mubr.msk.bf16.vlgmr.msra.gmra.mrb[8].mxu0 %vm295_vm2, %v440_v31 }
 0x306   : > { %1651 = vmatpush3.xpose.msk.msra.mxu0 %vm218_vm1, %v498_v29  ;;  %1652 = vmatprep.mubr.msk.f32.mxu0 %vm1803_vm0, %v1802_v0 }
 0x307   : > { %1661 = vmatprep.subr.mxu0 %v1802_v0 }
 0x30d   : > { %1653 = vmatmul.mubr.msk.f32.vlgmr.msra.gmra.mrb[12].mxu0 %vm218_vm1, %v496_v32 }
 0x30e   : > { %1662 = vmatpush3.xpose.msk.msra.mxu0 %vm218_vm1, %v636_v33  ;;  %1663 = vmatprep.mubr.msk.f32.mxu0 %vm1803_vm0, %v1802_v0 }
 0x30f   : > { %1666 = vmatprep.subr.bf16.mxu0 %v1802_v0 }
 0x311   : > { %1664 = vmatmul.mubr.msk.f32.vlgmr.msra.gmra.mrb[14].mxu0 %vm218_vm1, %v634_v34 }
 0x312   : > { %1668 = vmatprep.mubr.msk.bf16.mxu0 %vm1803_vm0, %v1802_v0 }
 0x3d8   : > { %v1925_v37 = vpop.f32.mrb[8].mxu0 }
 0x3d9   : > { %v1648_v38 = vpop.f32.mrb[9].mxu0 }
 0x3da   : > { %v487_v39 = vpop.f32.mrb[10].mxu0 }
 0x3db   : > { %v1649_v40 = vpop.f32.mrb[11].mxu0 }
 0x3e0   : > { %v569_v41 = vpop.f32.mrb[12].mxu0 }
 0x3e1   : > { %v1654_v42 = vpop.f32.mrb[13].mxu0  ;;  %v573_v43 = vsel %vm295_vm2, %v569_v41, -inf }
 0x3e2   : > { %574 = vmax.xlane.f32.xlu0 %v573_v43 }
 0x3e4   : > { %v707_v44 = vpop.f32.mrb[14].mxu0 }
 0x3e5   : > { %v1665_v45 = vpop.f32.mrb[15].mxu0  ;;  %v711_v46 = vsel %vm295_vm2, %v707_v44, -inf }
 0x3e6   : > { %712 = vmax.xlane.f32.xlu1 %v711_v46 }
 0x3f7   : > { %718 = vrot.lane.b32.xlu1 %v1870_v8, %s1806_s23 }
 0x3f8   : > { %773 = vrot.lane.b32.xlu0 %v1856_v2, %s1807_s24 }
 0x3fc   : > { %911 = vrot.lane.b32.xlu0 %v1856_v2, %s1808_s25 }
 0x400   : > { %771 = vrot.lane.b32.xlu0 %v1858_v3, %s1807_s24 }
 0x404   : > { %909 = vrot.lane.b32.xlu0 %v1858_v3, %s1808_s25 }
 0x46f   : > { %v575_v47 = vpop.xlane.xlu0 %574 }
 0x470   : > { %v576_v48 = vsub.f32 %v569_v41, %v575_v47 }
 0x472   : > { %v577_v49 = vmul.f32 1.442695, %v576_v48 }
 0x473   : > { %v713_v50 = vpop.xlane.xlu1 %712  ;;  %v774_v55 = vpop.permute.xlu0 %773 }
 0x474   : > { %1766 = vpow2.f32 %v577_v49  ;;  %v714_v51 = vsub.f32 %v707_v44, %v713_v50 }
 0x476   : > { %v715_v52 = vmul.f32 1.442695, %v714_v51  ;;  %v490_v51 = vsel %vm295_vm2, %v1906_v30, 0.0 }
 0x477   : > { %v719_v53 = vpop.permute.xlu1 %718  ;;  %v912_v57 = vpop.permute.xlu0 %911 }
 0x478   : > { %1768 = vpow2.f32 %v715_v52  ;;  %v724_v54 = vsel %vm307_vm3, %v719_v53, 0 }
 0x479   : > { %1667 = vmatpush3.bf16.msra.mxu0 %v724_v54 }
 0x47a   : > { %1683 = vmatprep.subr.mxu0 %v1802_v0 }
 0x47b   : > { %v772_v61 = vpop.permute.xlu0 %771 }
 0x47e   : > { %v1941_v56 = vpop.eup %1766 }
 0x47f   : > { %v579_v58 = vpack.c.bf16 %v1941_v56, %v1941_v56  ;;  %v910_v62 = vpop.permute.xlu0 %909  ;;  %v628_v53 = vsel %vm295_vm2, %v1941_v56, 0.0 }
 0x481   : > { %1658 = vmatmul.mubr.msk.bf16.vlgmr.msra.gmra.mrb[0].mxu1 %vm295_vm2, %v579_v58 }
 0x482   : > { %v1946_v59 = vpop.eup %1768  ;;  %1673 = vmatpush3.xpose.msk.msra.mxu1 %vm218_vm1, %v774_v55  ;;  %1674 = vmatprep.mubr.msk.f32.mxu1 %vm1803_vm0, %v1802_v0 }
 0x483   : > { %v717_v60 = vpack.c.bf16 %v1946_v59, %v1946_v59  ;;  %1677 = vmatprep.subr.bf16.mxu1 %v1802_v0  ;;  %v766_v54 = vsel %vm295_vm2, %v1946_v59, 0.0 }
 0x485   : > { %1669 = vmatmul.mubr.msk.bf16.vlgmr.msra.gmra.mrb[16].mxu0 %vm295_vm2, %v717_v60 }
 0x486   : > { %1684 = vmatpush3.xpose.msk.msra.mxu0 %vm218_vm1, %v912_v57  ;;  %1685 = vmatprep.mubr.msk.f32.mxu0 %vm1803_vm0, %v1802_v0 }
 0x487   : > { %1688 = vmatprep.subr.bf16.mxu0 %v1802_v0 }
 0x489   : > { %1675 = vmatmul.mubr.msk.f32.vlgmr.msra.gmra.mrb[4].mxu1 %vm218_vm1, %v772_v61 }
 0x48a   : > { %1679 = vmatprep.mubr.msk.bf16.mxu1 %vm1803_vm0, %v1802_v0 }
 0x48d   : > { %1686 = vmatmul.mubr.msk.f32.vlgmr.msra.gmra.mrb[20].mxu0 %vm218_vm1, %v910_v62 }
 0x48e   : > { %1690 = vmatprep.mubr.msk.bf16.mxu0 %vm1803_vm0, %v1802_v0 }
 0x554   : > { %v1965_v63 = vpop.f32.mrb[0].mxu1 }
 0x555   : > { %v1659_v1 = vpop.f32.mrb[1].mxu1 }
 0x556   : > { %v625_v4 = vpop.f32.mrb[2].mxu1 }
 0x557   : > { %v1660_v5 = vpop.f32.mrb[3].mxu1 }
 0x558   : > { %v1967_v6 = vpop.f32.mrb[16].mxu0 }
 0x559   : > { %v1670_v7 = vpop.f32.mrb[17].mxu0 }
 0x55a   : > { %v763_v9 = vpop.f32.mrb[18].mxu0 }
 0x55b   : > { %v1671_v10 = vpop.f32.mrb[19].mxu0 }
 0x55c   : > { %v845_v11 = vpop.f32.mrb[4].mxu1  ;;  %v351_v10 = vsel %vm295_vm2, %v1879_v13, 0.0 }
 0x55d   : > { %v1676_v12 = vpop.f32.mrb[5].mxu1  ;;  %v849_v14 = vsel %vm295_vm2, %v845_v11, -inf }
 0x55e   : > { %850 = vmax.xlane.f32.xlu1 %v849_v14 }
 0x560   : > { %v983_v15 = vpop.f32.mrb[20].mxu0 }
 0x561   : > { %v1687_v16 = vpop.f32.mrb[21].mxu0  ;;  %v987_v18 = vsel %vm295_vm2, %v983_v15, -inf }
 0x562   : > { %988 = vmax.xlane.f32.xlu0 %v987_v18 }
 0x56f   : > { %994 = vrot.lane.b32.xlu1 %v1870_v8, %s1808_s25 }
 0x573   : > { %1049 = vrot.lane.b32.xlu1 %v1856_v2, %s1809_s26 }
 0x577   : > { %1047 = vrot.lane.b32.xlu1 %v1858_v3, %s1809_s26 }
 0x578   : > { %856 = vrot.lane.b32.xlu0 %v1870_v8, %s1807_s24 }
 0x57c   : > { %1187 = vrot.lane.b32.xlu0 %v1856_v2, %s1810_s27 }
 0x580   : > { %1185 = vrot.lane.b32.xlu0 %v1858_v3, %s1810_s27 }
 0x5eb   : > { %v851_v19 = vpop.xlane.xlu1 %850 }
 0x5ec   : > { %v852_v20 = vsub.f32 %v845_v11, %v851_v19 }
 0x5ee   : > { %v853_v21 = vmul.f32 1.442695, %v852_v20 }
 0x5ef   : > { %v989_v22 = vpop.xlane.xlu0 %988  ;;  %v995_v23 = vpop.permute.xlu1 %994 }
 0x5f0   : > { %1770 = vpow2.f32 %v853_v21  ;;  %v990_v24 = vsub.f32 %v983_v15, %v989_v22  ;;  %v1000_v25 = vsel %vm307_vm3, %v995_v23, 0 }
 0x5f1   : > { %1689 = vmatpush3.bf16.msra.mxu0 %v1000_v25 }
 0x5f2   : > { %v991_v26 = vmul.f32 1.442695, %v990_v24  ;;  %1705 = vmatprep.subr.mxu0 %v1802_v0 }
 0x5f3   : > { %v857_v27 = vpop.permute.xlu0 %856  ;;  %v1050_v29 = vpop.permute.xlu1 %1049 }
 0x5f4   : > { %1772 = vpow2.f32 %v991_v26  ;;  %v862_v2 = vsel %vm307_vm3, %v857_v27, 0 }
 0x5f5   : > { %1678 = vmatpush3.bf16.msra.mxu1 %v862_v2  ;;  %v1756_v2 = vld [vmem:[%s2092_s2 + $0x10] sm:$0xff]  }
 0x5f6   : > { %1694 = vmatprep.subr.mxu1 %v1802_v0 }
 0x5f7   : > { %v1188_v32 = vpop.permute.xlu0 %1187  ;;  %v1048_v34 = vpop.permute.xlu1 %1047 }
 0x5fa   : > { %v1771_v3 = vpop.eup %1770 }
 0x5fb   : > { %v855_v28 = vpack.c.bf16 %v1771_v3, %v1771_v3  ;;  %v1186_v35 = vpop.permute.xlu0 %1185  ;;  %v904_v55 = vsel %vm295_vm2, %v1771_v3, 0.0  ;;  %v1757_v3 = vld [vmem:[%s2092_s2 + $0x18] sm:$0xff]  }
 0x5fd   : > { %1680 = vmatmul.mubr.msk.bf16.vlgmr.msra.gmra.mrb[8].mxu1 %vm295_vm2, %v855_v28  ;;  %v1758_v28 = vld [vmem:[%s2092_s2 + $0x20] sm:$0xff]  }
 0x5fe   : > { %v1773_v31 = vpop.eup %1772  ;;  %1695 = vmatpush3.xpose.msk.msra.mxu1 %vm218_vm1, %v1050_v29  ;;  %1696 = vmatprep.mubr.msk.f32.mxu1 %vm1803_vm0, %v1802_v0  ;;  %v1759_v29 = vld [vmem:[%s2092_s2 + $0x28] sm:$0xff]  }
 0x5ff   : > { %v993_v33 = vpack.c.bf16 %v1773_v31, %v1773_v31  ;;  %1699 = vmatprep.subr.bf16.mxu1 %v1802_v0  ;;  %v1042_v52 = vsel %vm295_vm2, %v1773_v31, 0.0 }
 0x601   : > { %1691 = vmatmul.mubr.msk.bf16.vlgmr.msra.gmra.mrb[24].mxu0 %vm295_vm2, %v993_v33 }
 0x602   : > { %1706 = vmatpush3.xpose.msk.msra.mxu0 %vm218_vm1, %v1188_v32  ;;  %1707 = vmatprep.mubr.msk.f32.mxu0 %vm1803_vm0, %v1802_v0  ;;  %v1760_v32 = vld [vmem:[%s2092_s2 + $0x30] sm:$0xff]  }
 0x603   : > { %1710 = vmatprep.subr.bf16.mxu0 %v1802_v0 }
 0x605   : > { %1697 = vmatmul.mubr.msk.f32.vlgmr.msra.gmra.mrb[6].mxu1 %vm218_vm1, %v1048_v34  ;;  %v1761_v34 = vld [vmem:[%s2092_s2 + $0x38] sm:$0xff]  }
 0x606   : > { %1701 = vmatprep.mubr.msk.bf16.mxu1 %vm1803_vm0, %v1802_v0 }
 0x609   : > { %1708 = vmatmul.mubr.msk.f32.vlgmr.msra.gmra.mrb[22].mxu0 %vm218_vm1, %v1186_v35 }
 0x60a   : > { %1712 = vmatprep.mubr.msk.bf16.mxu0 %vm1803_vm0, %v1802_v0 }
 0x6d0   : > { %v2003_v36 = vpop.f32.mrb[8].mxu1 }
 0x6d1   : > { %v1681_v38 = vpop.f32.mrb[9].mxu1 }
 0x6d2   : > { %v901_v39 = vpop.f32.mrb[10].mxu1 }
 0x6d3   : > { %v1682_v40 = vpop.f32.mrb[11].mxu1 }
 0x6d4   : > { %v2005_v41 = vpop.f32.mrb[24].mxu0 }
 0x6d5   : > { %v1692_v42 = vpop.f32.mrb[25].mxu0 }
 0x6d6   : > { %v1039_v43 = vpop.f32.mrb[26].mxu0 }
 0x6d7   : > { %v1693_v44 = vpop.f32.mrb[27].mxu0 }
 0x6d8   : > { %v1121_v45 = vpop.f32.mrb[6].mxu1 }
 0x6d9   : > { %v1125_v46 = vsel %vm295_vm2, %v1121_v45, -inf  ;;  %v1698_v47 = vpop.f32.mrb[7].mxu1 }
 0x6da   : > { %1126 = vmax.xlane.f32.xlu1 %v1125_v46 }
 0x6dc   : > { %v1259_v48 = vpop.f32.mrb[22].mxu0 }
 0x6dd   : > { %v1709_v49 = vpop.f32.mrb[23].mxu0  ;;  %v1263_v50 = vsel %vm295_vm2, %v1259_v48, -inf }
 0x6de   : > { %1264 = vmax.xlane.f32.xlu0 %v1263_v50 }
 0x6eb   : > { %1270 = vrot.lane.b32.xlu1 %v1870_v8, %s1810_s27 }
 0x6f4   : > { %1132 = vrot.lane.b32.xlu0 %v1870_v8, %s1809_s26 }
 0x70f   : > { %491 = vadd.xlane.f32.xlu1 %v490_v51 }
 0x713   : > { %1043 = vadd.xlane.f32.xlu1 %v1042_v52  ;;  %629 = vadd.xlane.f32.xlu0 %v628_v53 }
 0x717   : > { %767 = vadd.xlane.f32.xlu0 %v766_v54 }
 0x71b   : > { %905 = vadd.xlane.f32.xlu0 %v904_v55 }
 0x767   : > { %v1127_v57 = vpop.xlane.xlu1 %1126 }
 0x768   : > { %v1128_v8 = vsub.f32 %v1121_v45, %v1127_v57 }
 0x76a   : > { %v1129_v58 = vmul.f32 1.442695, %v1128_v8 }
 0x76b   : > { %v1265_v60 = vpop.xlane.xlu0 %1264  ;;  %v1271_v30 = vpop.permute.xlu1 %1270 }
 0x76c   : > { %1774 = vpow2.f32 %v1129_v58  ;;  %v1266_v61 = vsub.f32 %v1259_v48, %v1265_v60  ;;  %v1276_v62 = vsel %vm307_vm3, %v1271_v30, 0 }
 0x76d   : > { %1711 = vmatpush3.bf16.msra.mxu0 %v1276_v62 }
 0x76e   : > { %v1267_v56 = vmul.f32 1.442695, %v1266_v61 }
 0x76f   : > { %v1133_v1 = vpop.permute.xlu0 %1132 }
 0x770   : > { %1776 = vpow2.f32 %v1267_v56  ;;  %v1138_v4 = vsel %vm307_vm3, %v1133_v1, 0  ;;  %v1576_v1 = vld [vmem:[%s2093_s3] ss:$0 sm:$0xff] }
 0x771   : > { %1700 = vmatpush3.bf16.msra.mxu1 %v1138_v4 }
 0x772   : > { %1716 = vmatprep.subr.bf16.mxu1 %v1802_v0 }
 0x776   : > { %v1775_v59 = vpop.eup %1774 }
 0x777   : > { %v1180_v5 = vsel %vm295_vm2, %v1775_v59, 0.0  ;;  %v1131_v7 = vpack.c.bf16 %v1775_v59, %v1775_v59 }
 0x778   : > { %1181 = vadd.xlane.f32.xlu0 %v1180_v5 }
 0x779   : > { %1702 = vmatmul.mubr.msk.bf16.vlgmr.msra.gmra.mrb[12].mxu1 %vm295_vm2, %v1131_v7 }
 0x77a   : > { %v1777_v9 = vpop.eup %1776  ;;  %1732 = vmatprep.mubr.msk.bf16.mxu1 %vm1803_vm0, %v1802_v0 }
 0x77b   : > { %v1318_v11 = vsel %vm295_vm2, %v1777_v9, 0.0  ;;  %v1269_v12 = vpack.c.bf16 %v1777_v9, %v1777_v9 }
 0x77c   : > { %352 = vadd.xlane.f32.xlu0 %v351_v10  ;;  %1319 = vadd.xlane.f32.xlu1 %v1318_v11 }
 0x77d   : > { %1713 = vmatmul.mubr.msk.bf16.vlgmr.msra.gmra.mrb[28].mxu0 %vm295_vm2, %v1269_v12 }
 0x79c   : > { %v492_v14 = vpop.xlane.xlu1 %491 }
 0x79d   : > { %1778 = vrcp.f32 %v492_v14 }
 0x7a0   : > { %v630_v15 = vpop.xlane.xlu0 %629  ;;  %v1044_v19 = vpop.xlane.xlu1 %1043 }
 0x7a1   : > { %1780 = vrcp.f32 %v630_v15 }
 0x7a4   : > { %v768_v16 = vpop.xlane.xlu0 %767 }
 0x7a5   : > { %1782 = vrcp.f32 %v768_v16 }
 0x7a7   : > { %v1779_v18 = vpop.eup %1778 }
 0x7a8   : > { %v906_v20 = vpop.xlane.xlu0 %905  ;;  %v494_v21 = vmul.f32 %v1779_v18, %v1925_v37 }
 0x7a9   : > { %1784 = vrcp.f32 %v906_v20 }
 0x7aa   : > { %1324 = vrot.lane.b32.xlu1 %v494_v21, %s1810_s27  ;;  %1786 = vrcp.f32 %v1044_v19 }
 0x7ab   : > { %v1781_v13 = vpop.eup %1780 }
 0x7ac   : > { %v632_v22 = vmul.f32 %v1781_v13, %v1965_v63  ;;  %v1754_v63 = vld [vmem:[%s2092_s2] sm:$0xff]  }
 0x7ad   : > { %1717 = vmatpush3.bf16.msra.mxu1 %v1754_v63 }
 0x7ae   : > { %1328 = vrot.lane.b32.xlu0 %v632_v22, %s1809_s26  ;;  %1718 = vmatprep.subr.bf16.mxu1 %v1802_v0 }
 0x7af   : > { %v1783_v23 = vpop.eup %1782 }
 0x7b0   : > { %v770_v24 = vmul.f32 %v1783_v23, %v1967_v6  ;;  %v1755_v6 = vld [vmem:[%s2092_s2 + $0x8] sm:$0xff]  }
 0x7b1   : > { %1719 = vmatpush3.bf16.msra.mxu1 %v1755_v6 }
 0x7b2   : > { %1332 = vrot.lane.b32.xlu1 %v770_v24, %s1808_s25  ;;  %1720 = vmatprep.subr.bf16.mxu1 %v1802_v0 }
 0x7b3   : > { %v1785_v25 = vpop.eup %1784 }
 0x7b4   : > { %v908_v26 = vmul.f32 %v1785_v25, %v2003_v36  ;;  %v1787_v27 = vpop.eup %1786 }
 0x7b5   : > { %v1046_v37 = vmul.f32 %v1787_v27, %v2005_v41  ;;  %1721 = vmatpush3.bf16.msra.mxu1 %v1756_v2 }
 0x7b6   : > { %1336 = vrot.lane.b32.xlu1 %v908_v26, %s1807_s24  ;;  %1722 = vmatprep.subr.bf16.mxu1 %v1802_v0 }
 0x7b9   : > { %1723 = vmatpush3.bf16.msra.mxu1 %v1757_v3 }
 0x7ba   : > { %1340 = vrot.lane.b32.xlu1 %v1046_v37, %s1806_s23  ;;  %1724 = vmatprep.subr.bf16.mxu1 %v1802_v0  ;;  %s208_s23 = scalar_lea.vmem %s2091_s1, %s1550_s20 }
 0x7bb   : > { %v1476_v59 = vld [vmem:[%s208_s23] sm:$0xff] }
 0x7bd   : > { %1725 = vmatpush3.bf16.msra.mxu1 %v1758_v28 }
 0x7be   : > { %1726 = vmatprep.subr.bf16.mxu1 %v1802_v0 }
 0x7c1   : > { %1727 = vmatpush3.bf16.msra.mxu1 %v1759_v29 }
 0x7c2   : > { %1728 = vmatprep.subr.bf16.mxu1 %v1802_v0 }
 0x7c5   : > { %1729 = vmatpush3.bf16.msra.mxu1 %v1760_v32 }
 0x7c6   : > { %1730 = vmatprep.subr.bf16.mxu1 %v1802_v0 }
 0x7c9   : > { %1731 = vmatpush3.bf16.msra.mxu1 %v1761_v34 }
 0x805   : > { %v1182_v31 = vpop.xlane.xlu0 %1181 }
 0x806   : > { %1788 = vrcp.f32 %v1182_v31 }
 0x809   : > { %v1320_v33 = vpop.xlane.xlu1 %1319  ;;  %v353_v47 = vpop.xlane.xlu0 %352 }
 0x80a   : > { %1790 = vrcp.f32 %v1320_v33 }
 0x80b   : > { %1792 = vrcp.f32 %v353_v47 }
 0x810   : > { %v1789_v35 = vpop.eup %1788 }
 0x814   : > { %v1791_v42 = vpop.eup %1790 }
 0x815   : > { %v1793_v50 = vpop.eup %1792 }
 0x816   : > { %v355_v52 = vmul.f32 %v1793_v50, %v1899_v17 }
 0x81c   : > { %v1325_v48 = vpop.permute.xlu1 %1324 }
 0x81d   : > { %v1351_v54 = vsel %vm218_vm1, %v355_v52, %v1325_v48 }
 0x820   : > { %v1329_v53 = vpop.permute.xlu0 %1328 }
 0x821   : > { %v1353_v55 = vsel %vm1352_vm4, %v1351_v54, %v1329_v53 }
 0x824   : > { %v1333_v49 = vpop.permute.xlu1 %1332 }
 0x825   : > { %v1355_v8 = vsel %vm1354_vm5, %v1353_v55, %v1333_v49 }
 0x828   : > { %v1337_v51 = vpop.permute.xlu1 %1336 }
 0x829   : > { %v1357_v60 = vsel %vm1356_vm6, %v1355_v8, %v1337_v51 }
 0x82c   : > { %v1341_v57 = vpop.permute.xlu1 %1340 }
 0x82d   : > { %v1359_v30 = vsel %vm1358_vm7, %v1357_v60, %v1341_v57 }
 0x84c   : > { %v1174_v36 = vpop.f32.mrb[12].mxu1 }
 0x84d   : > { %v1184_v38 = vmul.f32 %v1789_v35, %v1174_v36  ;;  %v1703_v39 = vpop.f32.mrb[13].mxu1 }
 0x84e   : > { %v1177_v40 = vpop.f32.mrb[14].mxu1 }
 0x84f   : > { %v1704_v41 = vpop.f32.mrb[15].mxu1  ;;  %1344 = vrot.lane.b32.xlu0 %v1184_v38, %s1805_s22 }
 0x850   : > { %v1312_v43 = vpop.f32.mrb[28].mxu0 }
 0x851   : > { %v1322_v44 = vmul.f32 %v1791_v42, %v1312_v43  ;;  %v1714_v45 = vpop.f32.mrb[29].mxu0 }
 0x852   : > { %v1315_v46 = vpop.f32.mrb[30].mxu0 }
 0x853   : > { %1348 = vrot.lane.b32.xlu1 %v1322_v44, %s1804_s21  ;;  %v1715_v0 = vpop.f32.mrb[31].mxu0 }
 0x8c1   : > { %v1345_v58 = vpop.permute.xlu0 %1344 }
 0x8c2   : > { %v1361_v61 = vsel %vm1360_vm8, %v1359_v30, %v1345_v58 }
 0x8c5   : > { %v1349_v62 = vpop.permute.xlu1 %1348 }
 0x8c6   : > { %v1363_v56 = vsel %vm1362_vm9, %v1361_v61, %v1349_v62 }
 0x8c7   : > { %v1364_v17 = vpack.c.bf16 %v1363_v56, %v1363_v56 }
 0x8c9   : > { %1733 = vmatmul.mubr.bf16.vlgmr.msra.gmra.mrb[16].mxu1 %v1364_v17 }
 0x99c   : > { %v1470_v4 = vpop.f32.mrb[16].mxu1 }
 0x99d   : > { %v1471_v5 = vadd.f32 %v1576_v1, %v1470_v4  ;;  %v1734_v7 = vpop.f32.mrb[17].mxu1 }
 0x99e   : > { %v1473_v9 = vpop.f32.mrb[18].mxu1 }
 0x99f   : > { %v1477_v10 = vadd.f32 %v1476_v59, %v1471_v5  ;;  %v1735_v11 = vpop.f32.mrb[19].mxu1 }
 0x9a1   : > { %1478 = vst [vmem:[%s212_s28] sm:$0xff] %v1477_v10 }
 0x9a2 PF: > { %s14_s15 = sadd.s32 1, %s1800_s15  }
 0x9a3   : > { %p11_p4 = scmp.ge.s32.totalorder %s14_s15, 4  }
 0x9a5   :  { %13 = sbr.rel (!%p11_p4) target bundleno = 1 (0x1), region = 69 }

// kernel: image_encoder_forward.14
= control target key start
LH: loop header
LB: loop body
LE: loop exit
PB: predicated region body
PF: predicated region fallthrough
CT: control target
= control target key end

     0   :  { %v1737_v3 = vmov 0   ;;  %s2239_s2 = inlined_call_operand.vmem [shape: bf16[128,1024], index: 2, kind: input, shape index: {}]   ;;  %s2240_s4 = inlined_call_operand.vmem [shape: bf16[1024,128], index: 4, kind: input, shape index: {}]   ;;  %s2241_s0 = inlined_call_operand.vmem [shape: f32[16,128], index: 0, kind: input, shape index: {}]   ;;  %s2242_s3 = inlined_call_operand.vmem [shape: f32[1,1024], index: 3, kind: input, shape index: {}]   ;;  %s2243_s1 = inlined_call_operand.vmem [shape: f32[16,128], index: 1, kind: input, shape index: {}]   ;;  %s2244_s5 = inlined_call_operand.vmem [shape: f32[1,128], index: 5, kind: input, shape index: {}]   ;;  %s2245_s6 = inlined_call_operand.vmem [shape: f32[16,128], index: 6, kind: output, shape index: {}]  }
   0x1   :  { %v44_v0 = vld [vmem:[%s2239_s2] sm:$0xff]  ;;  %v45_v2 = vld [vmem:[%s2239_s2 + $0x8] sm:$0xff]  ;;  %502 = vmatprep.mubr.bf16.mxu0 %v1737_v3  ;;  %545 = vmatprep.mubr.bf16.mxu1 %v1737_v3  ;;  %v46_v60 = vld [vmem:[%s2239_s2 + $0x10] sm:$0xff] }
   0x2   :  { %v48_v1 = vld [vmem:[%s2239_s2 + $0x20] sm:$0xff]  ;;  %v49_v5 = vld [vmem:[%s2239_s2 + $0x28] sm:$0xff]  ;;  %v50_v63 = vld [vmem:[%s2239_s2 + $0x30] sm:$0xff] }
   0x3   :  { %v1425_v4 = vcombine.high %v44_v0, %v48_v1  ;;  %v1424_v6 = vcombine.low %v44_v0, %v48_v1  ;;  %v52_v7 = vld [vmem:[%s2239_s2 + $0x40] sm:$0xff]  ;;  %v1427_v9 = vcombine.high %v45_v2, %v49_v5  ;;  %v1426_v10 = vcombine.low %v45_v2, %v49_v5  ;;  %v53_v12 = vld [vmem:[%s2239_s2 + $0x48] sm:$0xff]  ;;  %v51_v5 = vld [vmem:[%s2239_s2 + $0x38] sm:$0xff] }
   0x4   :  { %v56_v8 = vld [vmem:[%s2239_s2 + $0x60] sm:$0xff]  ;;  %v57_v13 = vld [vmem:[%s2239_s2 + $0x68] sm:$0xff] }
   0x5   :  { %v1433_v11 = vcombine.high %v52_v7, %v56_v8  ;;  %v60_v14 = vld [vmem:[%s2239_s2 + $0x80] sm:$0xff]  ;;  %470 = vmatprep.subr.bf16.mxu0 %v1425_v4  ;;  %v1435_v15 = vcombine.high %v53_v12, %v57_v13  ;;  %v61_v17 = vld [vmem:[%s2239_s2 + $0x88] sm:$0xff]  ;;  %513 = vmatprep.subr.bf16.mxu1 %v1427_v9  ;;  %v1432_v19 = vcombine.low %v52_v7, %v56_v8  ;;  %v47_v4 = vld [vmem:[%s2239_s2 + $0x18] sm:$0xff] }
   0x6   :  { %v64_v16 = vld [vmem:[%s2239_s2 + $0xa0] sm:$0xff]  ;;  %v65_v18 = vld [vmem:[%s2239_s2 + $0xa8] sm:$0xff]  ;;  %471 = vmatpush1.bf16.msra.mxu0 %v1424_v6  ;;  %514 = vmatpush1.bf16.msra.mxu1 %v1426_v10  ;;  %v1434_v20 = vcombine.low %v53_v12, %v57_v13  ;;  %v54_v7 = vld [vmem:[%s2239_s2 + $0x50] sm:$0xff]  ;;  %v1429_v10 = vcombine.high %v46_v60, %v50_v63  ;;  %v1431_v12 = vcombine.high %v47_v4, %v51_v5 }
   0x7   :  { %472 = vmatprep.subr.bf16.mxu0 %v1433_v11  ;;  %v1441_v21 = vcombine.high %v60_v14, %v64_v16  ;;  %515 = vmatprep.subr.bf16.mxu1 %v1435_v15  ;;  %v1443_v22 = vcombine.high %v61_v17, %v65_v18  ;;  %v68_v23 = vld [vmem:[%s2239_s2 + $0xc0] sm:$0xff]  ;;  %v69_v25 = vld [vmem:[%s2239_s2 + $0xc8] sm:$0xff]  ;;  %v1440_v27 = vcombine.low %v60_v14, %v64_v16  ;;  %v58_v8 = vld [vmem:[%s2239_s2 + $0x70] sm:$0xff] }
   0x8   :  { %v72_v24 = vld [vmem:[%s2239_s2 + $0xe0] sm:$0xff]  ;;  %v73_v26 = vld [vmem:[%s2239_s2 + $0xe8] sm:$0xff]  ;;  %v1442_v28 = vcombine.low %v61_v17, %v65_v18  ;;  %v55_v11 = vld [vmem:[%s2239_s2 + $0x58] sm:$0xff]  ;;  %v1428_v15 = vcombine.low %v46_v60, %v50_v63  ;;  %v1430_v18 = vcombine.low %v47_v4, %v51_v5 }
   0x9   :  { %v1449_v29 = vcombine.high %v68_v23, %v72_v24  ;;  %v1451_v30 = vcombine.high %v69_v25, %v73_v26  ;;  %v76_v31 = vld [vmem:[%s2239_s2 + $0x100] sm:$0xff]  ;;  %v77_v33 = vld [vmem:[%s2239_s2 + $0x108] sm:$0xff]  ;;  %v1448_v35 = vcombine.low %v68_v23, %v72_v24  ;;  %v1450_v36 = vcombine.low %v69_v25, %v73_v26  ;;  %v59_v13 = vld [vmem:[%s2239_s2 + $0x78] sm:$0xff] }
   0xa   :  { %473 = vmatpush1.bf16.msra.mxu0 %v1432_v19  ;;  %516 = vmatpush1.bf16.msra.mxu1 %v1434_v20  ;;  %v80_v32 = vld [vmem:[%s2239_s2 + $0x120] sm:$0xff]  ;;  %v81_v34 = vld [vmem:[%s2239_s2 + $0x128] sm:$0xff]  ;;  %v62_v16 = vld [vmem:[%s2239_s2 + $0x90] sm:$0xff]  ;;  %v1437_v19 = vcombine.high %v54_v7, %v58_v8  ;;  %v1436_v23 = vcombine.low %v54_v7, %v58_v8  ;;  %v1438_v26 = vcombine.low %v55_v11, %v59_v13 }
   0xb   :  { %474 = vmatprep.subr.bf16.mxu0 %v1441_v21  ;;  %517 = vmatprep.subr.bf16.mxu1 %v1443_v22  ;;  %v1457_v37 = vcombine.high %v76_v31, %v80_v32  ;;  %v1459_v38 = vcombine.high %v77_v33, %v81_v34  ;;  %v84_v39 = vld [vmem:[%s2239_s2 + $0x140] sm:$0xff]  ;;  %v85_v41 = vld [vmem:[%s2239_s2 + $0x148] sm:$0xff]  ;;  %v1456_v43 = vcombine.low %v76_v31, %v80_v32  ;;  %v66_v17 = vld [vmem:[%s2239_s2 + $0xb0] sm:$0xff] }
   0xc   :  { %v88_v40 = vld [vmem:[%s2239_s2 + $0x160] sm:$0xff]  ;;  %v89_v42 = vld [vmem:[%s2239_s2 + $0x168] sm:$0xff]  ;;  %v1458_v44 = vcombine.low %v77_v33, %v81_v34  ;;  %v63_v20 = vld [vmem:[%s2239_s2 + $0x98] sm:$0xff]  ;;  %v1439_v22 = vcombine.high %v55_v11, %v59_v13  ;;  %v1444_v31 = vcombine.low %v62_v16, %v66_v17 }
   0xd   :  { %v1465_v45 = vcombine.high %v84_v39, %v88_v40  ;;  %v1467_v46 = vcombine.high %v85_v41, %v89_v42  ;;  %v92_v47 = vld [vmem:[%s2239_s2 + $0x180] sm:$0xff]  ;;  %v93_v49 = vld [vmem:[%s2239_s2 + $0x188] sm:$0xff]  ;;  %v1464_v51 = vcombine.low %v84_v39, %v88_v40  ;;  %v1466_v52 = vcombine.low %v85_v41, %v89_v42  ;;  %v67_v21 = vld [vmem:[%s2239_s2 + $0xb8] sm:$0xff] }
   0xe   :  { %475 = vmatpush1.bf16.msra.mxu0 %v1440_v27  ;;  %518 = vmatpush1.bf16.msra.mxu1 %v1442_v28  ;;  %v96_v48 = vld [vmem:[%s2239_s2 + $0x1a0] sm:$0xff]  ;;  %v97_v50 = vld [vmem:[%s2239_s2 + $0x1a8] sm:$0xff]  ;;  %v70_v24 = vld [vmem:[%s2239_s2 + $0xd0] sm:$0xff]  ;;  %v1445_v27 = vcombine.high %v62_v16, %v66_v17  ;;  %v1446_v34 = vcombine.low %v63_v20, %v67_v21 }
   0xf   :  { %476 = vmatprep.subr.bf16.mxu0 %v1449_v29  ;;  %519 = vmatprep.subr.bf16.mxu1 %v1451_v30  ;;  %v1473_v53 = vcombine.high %v92_v47, %v96_v48  ;;  %v100_v54 = vld [vmem:[%s2239_s2 + $0x1c0] sm:$0xff]  ;;  %v1475_v56 = vcombine.high %v93_v49, %v97_v50  ;;  %v101_v57 = vld [vmem:[%s2239_s2 + $0x1c8] sm:$0xff]  ;;  %v1472_v59 = vcombine.low %v92_v47, %v96_v48  ;;  %v74_v25 = vld [vmem:[%s2239_s2 + $0xf0] sm:$0xff] }
  0x10   :  { %v104_v55 = vld [vmem:[%s2239_s2 + $0x1e0] sm:$0xff]  ;;  %v105_v58 = vld [vmem:[%s2239_s2 + $0x1e8] sm:$0xff]  ;;  %v1474_v61 = vcombine.low %v93_v49, %v97_v50  ;;  %v71_v28 = vld [vmem:[%s2239_s2 + $0xd8] sm:$0xff]  ;;  %v1447_v30 = vcombine.high %v63_v20, %v67_v21 }
  0x11   :  { %v1481_v62 = vcombine.high %v100_v54, %v104_v55  ;;  %v1483_v0 = vcombine.high %v101_v57, %v105_v58  ;;  %v41_v1 = vld [vmem:[%s2241_s0] sm:$0xff]  ;;  %v42_v2 = vld [vmem:[%s2241_s0 + $0x8] sm:$0xff]  ;;  %v1480_v6 = vcombine.low %v100_v54, %v104_v55  ;;  %v1482_v9 = vcombine.low %v101_v57, %v105_v58  ;;  %v75_v29 = vld [vmem:[%s2239_s2 + $0xf8] sm:$0xff] }
  0x12   :  { %477 = vmatpush1.bf16.msra.mxu0 %v1448_v35  ;;  %520 = vmatpush1.bf16.msra.mxu1 %v1450_v36  ;;  %v1901_v14 = vpack.c.bf16 %v42_v2, %v41_v1  ;;  %v78_v32 = vld [vmem:[%s2239_s2 + $0x110] sm:$0xff]  ;;  %v1453_v35 = vcombine.high %v70_v24, %v74_v25  ;;  %v79_v36 = vld [vmem:[%s2239_s2 + $0x118] sm:$0xff]  ;;  %v1454_v41 = vcombine.low %v71_v28, %v75_v29  ;;  %v1641_v2 = vld [vmem:[%s2240_s4 + $0x40] sm:$0xff]  }
  0x13   :  { %478 = vmatprep.subr.bf16.mxu0 %v1457_v37  ;;  %521 = vmatprep.subr.bf16.mxu1 %v1459_v38  ;;  %v82_v33 = vld [vmem:[%s2239_s2 + $0x130] sm:$0xff]  ;;  %v1455_v37 = vcombine.high %v71_v28, %v75_v29  ;;  %v1452_v38 = vcombine.low %v70_v24, %v74_v25  ;;  %v107_v60 = vld [vmem:[%s2239_s2 + $0x1f8] sm:$0xff]  ;;  %v1642_v5 = vld [vmem:[%s2240_s4 + $0xc0] sm:$0xff]  }
  0x14   :  { %v86_v39 = vld [vmem:[%s2239_s2 + $0x150] sm:$0xff]  ;;  %v1461_v42 = vcombine.high %v78_v32, %v82_v33  ;;  %v1643_v7 = vld [vmem:[%s2240_s4] sm:$0xff]   ;;  %v1647_v11 = vld [vmem:[%s2240_s4 + $0x8] sm:$0xff]  }
  0x15   :  { %v90_v40 = vld [vmem:[%s2239_s2 + $0x170] sm:$0xff]  ;;  %v1644_v8 = vld [vmem:[%s2240_s4 + $0x80] sm:$0xff]   ;;  %v1653_v17 = vld [vmem:[%s2240_s4 + $0x58] sm:$0xff]  }
  0x16   :  { %479 = vmatpush1.bf16.msra.mxu0 %v1456_v43  ;;  %522 = vmatpush1.bf16.msra.mxu1 %v1458_v44  ;;  %v87_v43 = vld [vmem:[%s2239_s2 + $0x158] sm:$0xff]  ;;  %v94_v47 = vld [vmem:[%s2239_s2 + $0x190] sm:$0xff]  ;;  %v1469_v50 = vcombine.high %v86_v39, %v90_v40  ;;  %v1468_v54 = vcombine.low %v86_v39, %v90_v40  ;;  %v1657_v21 = vld [vmem:[%s2240_s4 + $0x60] sm:$0xff]  }
  0x17   :  { %480 = vmatprep.subr.bf16.mxu0 %v1465_v45  ;;  %523 = vmatprep.subr.bf16.mxu1 %v1467_v46  ;;  %v91_v44 = vld [vmem:[%s2239_s2 + $0x178] sm:$0xff]  ;;  %v1460_v46 = vcombine.low %v78_v32, %v82_v33  ;;  %v98_v48 = vld [vmem:[%s2239_s2 + $0x1b0] sm:$0xff]  ;;  %v1660_v24 = vld [vmem:[%s2240_s4 + $0xa0] sm:$0xff]  }
  0x18   :  { %v102_v55 = vld [vmem:[%s2239_s2 + $0x1d0] sm:$0xff]  ;;  %v1470_v57 = vcombine.low %v87_v43, %v91_v44  ;;  %v1477_v58 = vcombine.high %v94_v47, %v98_v48  ;;  %v1656_v20 = vld [vmem:[%s2240_s4 + $0x98] sm:$0xff]   ;;  %v1661_v25 = vld [vmem:[%s2240_s4 + $0x68] sm:$0xff]  }
  0x19   :  { %v1649_v13 = vld [vmem:[%s2240_s4 + $0x50] sm:$0xff]   ;;  %v1664_v28 = vld [vmem:[%s2240_s4 + $0xa8] sm:$0xff]   ;;  %v1669_v33 = vld [vmem:[%s2240_s4 + $0x78] sm:$0xff]  }
  0x1a   :  { %481 = vmatpush1.bf16.msra.mxu0 %v1464_v51  ;;  %524 = vmatpush1.bf16.msra.mxu1 %v1466_v52  ;;  %v95_v51 = vld [vmem:[%s2239_s2 + $0x198] sm:$0xff]  ;;  %v1652_v16 = vld [vmem:[%s2240_s4 + $0x90] sm:$0xff]  }
  0x1b   :  { %482 = vmatprep.subr.bf16.mxu0 %v1473_v53  ;;  %525 = vmatprep.subr.bf16.mxu1 %v1475_v56  ;;  %v99_v52 = vld [vmem:[%s2239_s2 + $0x1b8] sm:$0xff]  ;;  %v1471_v53 = vcombine.high %v87_v43, %v91_v44  ;;  %v106_v56 = vld [vmem:[%s2239_s2 + $0x1f0] sm:$0xff] }
  0x1c   :  { %v1478_v63 = vcombine.low %v95_v51, %v99_v52  ;;  %v1484_v4 = vcombine.low %v102_v55, %v106_v56  ;;  %v1665_v29 = vld [vmem:[%s2240_s4 + $0x70] sm:$0xff]  }
  0x1d   :  { %v1668_v32 = vld [vmem:[%s2240_s4 + $0xb0] sm:$0xff]  }
  0x1e   :  { %483 = vmatpush1.bf16.msra.mxu0 %v1472_v59  ;;  %526 = vmatpush1.bf16.msra.mxu1 %v1474_v61  ;;  %v103_v59 = vld [vmem:[%s2239_s2 + $0x1d8] sm:$0xff]  ;;  %v1479_v61 = vcombine.high %v95_v51, %v99_v52 }
  0x1f   :  { %484 = vmatprep.subr.bf16.mxu0 %v1481_v62  ;;  %527 = vmatprep.subr.bf16.mxu1 %v1483_v0  ;;  %v1476_v62 = vcombine.low %v94_v47, %v98_v48  ;;  %v1485_v0 = vcombine.high %v102_v55, %v106_v56  ;;  %v1487_v1 = vcombine.high %v103_v59, %v107_v60 }
  0x22   :  { %485 = vmatpush1.bf16.msra.mxu0 %v1480_v6  ;;  %528 = vmatpush1.bf16.msra.mxu1 %v1482_v9  ;;  %v1486_v6 = vcombine.low %v103_v59, %v107_v60  ;;  %v1645_v9 = vld [vmem:[%s2240_s4 + $0x48] sm:$0xff]  }
  0x23   :  { %556 = vmatprep.subr.bf16.mxu0 %v1429_v10  ;;  %599 = vmatprep.subr.bf16.mxu1 %v1431_v12  ;;  %v1646_v10 = vld [vmem:[%s2240_s4 + $0xc8] sm:$0xff]  }
  0x24   :  { %v1648_v12 = vld [vmem:[%s2240_s4 + $0x88] sm:$0xff]  }
  0x25   :  { %503 = vmatmul.mubr.bf16.vlgmr.msra.gmra.mrb[0].mxu0 %v1901_v14  ;;  %546 = vmatmul.mubr.bf16.vlgmr.msra.gmra.mrb[0].mxu1 %v1901_v14 }
  0x26   :  { %557 = vmatpush1.bf16.msra.mxu0 %v1428_v15  ;;  %600 = vmatpush1.bf16.msra.mxu1 %v1430_v18  ;;  %v1651_v15 = vld [vmem:[%s2240_s4 + $0x10] sm:$0xff]   ;;  %v1654_v18 = vld [vmem:[%s2240_s4 + $0xd8] sm:$0xff]  }
  0x27   :  { %558 = vmatprep.subr.bf16.mxu0 %v1437_v19  ;;  %601 = vmatprep.subr.bf16.mxu1 %v1439_v22  ;;  %v1655_v19 = vld [vmem:[%s2240_s4 + $0x18] sm:$0xff]   ;;  %v1658_v22 = vld [vmem:[%s2240_s4 + $0xe0] sm:$0xff]  }
  0x28   :  { %588 = vmatprep.mubr.bf16.mxu0 %v1737_v3  ;;  %631 = vmatprep.mubr.bf16.mxu1 %v1737_v3  ;;  %v83_v3 = vld [vmem:[%s2239_s2 + $0x138] sm:$0xff] }
  0x29   :  { %v1463_v45 = vcombine.high %v79_v36, %v83_v3  ;;  %v1462_v49 = vcombine.low %v79_v36, %v83_v3  ;;  %v1672_v36 = vld [vmem:[%s2240_s4 + $0xb8] sm:$0xff]   ;;  %v1673_v3 = vld [vmem:[%s2240_s4 + $0x140] sm:$0xff]  }
  0x2a   :  { %559 = vmatpush1.bf16.msra.mxu0 %v1436_v23  ;;  %602 = vmatpush1.bf16.msra.mxu1 %v1438_v26  ;;  %v1659_v23 = vld [vmem:[%s2240_s4 + $0x20] sm:$0xff]   ;;  %v1662_v26 = vld [vmem:[%s2240_s4 + $0xe8] sm:$0xff]  }
  0x2b   :  { %560 = vmatprep.subr.bf16.mxu0 %v1445_v27  ;;  %603 = vmatprep.subr.bf16.mxu1 %v1447_v30  ;;  %v1663_v27 = vld [vmem:[%s2240_s4 + $0x28] sm:$0xff]   ;;  %v1666_v30 = vld [vmem:[%s2240_s4 + $0xf0] sm:$0xff]  }
  0x2e   :  { %561 = vmatpush1.bf16.msra.mxu0 %v1444_v31  ;;  %604 = vmatpush1.bf16.msra.mxu1 %v1446_v34  ;;  %v1667_v31 = vld [vmem:[%s2240_s4 + $0x30] sm:$0xff]   ;;  %v1670_v34 = vld [vmem:[%s2240_s4 + $0xf8] sm:$0xff]  }
  0x2f   :  { %562 = vmatprep.subr.bf16.mxu0 %v1453_v35  ;;  %605 = vmatprep.subr.bf16.mxu1 %v1455_v37  ;;  %v1671_v35 = vld [vmem:[%s2240_s4 + $0x38] sm:$0xff]   ;;  %v1674_v37 = vld [vmem:[%s2240_s4 + $0x1c0] sm:$0xff]  }
  0x32   :  { %563 = vmatpush1.bf16.msra.mxu0 %v1452_v38  ;;  %606 = vmatpush1.bf16.msra.mxu1 %v1454_v41  ;;  %v110_v38 = vlaneseq  ;;  %v2089_v41 = vld [vmem:[%s2242_s3] sm:$0xff] }
  0x33   :  { %564 = vmatprep.subr.bf16.mxu0 %v1461_v42  ;;  %607 = vmatprep.subr.bf16.mxu1 %v1463_v45 }
  0x34   :  { %v2083_v39 = vshrl.u32 %v110_v38, 7 }
  0x36   :  { %565 = vmatpush1.bf16.msra.mxu0 %v1460_v46  ;;  %608 = vmatpush1.bf16.msra.mxu1 %v1462_v49  ;;  %v112_v40 = vsub.s32 0, %v2083_v39  ;;  %v120_v42 = vsub.s32 2, %v2083_v39  ;;  %v116_v43 = vsub.s32 1, %v2083_v39  ;;  %v124_v44 = vsub.s32 3, %v2083_v39 }
  0x37   :  { %566 = vmatprep.subr.bf16.mxu0 %v1469_v50  ;;  %609 = vmatprep.subr.bf16.mxu1 %v1471_v53 }
  0x38   :  { %v113_v45 = vrot.slane %v2089_v41, %v112_v40  ;;  %v121_v46 = vrot.slane %v2089_v41, %v120_v42  ;;  %v117_v47 = vrot.slane %v2089_v41, %v116_v43  ;;  %v125_v48 = vrot.slane %v2089_v41, %v124_v44 }
  0x3a   :  { %567 = vmatpush1.bf16.msra.mxu0 %v1468_v54  ;;  %610 = vmatpush1.bf16.msra.mxu1 %v1470_v57 }
  0x3b   :  { %568 = vmatprep.subr.bf16.mxu0 %v1477_v58  ;;  %611 = vmatprep.subr.bf16.mxu1 %v1479_v61 }
  0x3e   :  { %569 = vmatpush1.bf16.msra.mxu0 %v1476_v62  ;;  %612 = vmatpush1.bf16.msra.mxu1 %v1478_v63 }
  0x3f   :  { %570 = vmatprep.subr.bf16.mxu0 %v1485_v0  ;;  %613 = vmatprep.subr.bf16.mxu1 %v1487_v1 }
  0x42   :  { %571 = vmatpush1.bf16.msra.mxu0 %v1484_v4  ;;  %614 = vmatpush1.bf16.msra.mxu1 %v1486_v6 }
  0x43   :  { %1552 = vmatprep.subr.bf16.mxu0 %v1641_v2  ;;  %1574 = vmatprep.subr.bf16.mxu1 %v1642_v5 }
  0x45   :  { %589 = vmatmul.mubr.bf16.vlgmr.msra.gmra.mrb[4].mxu0 %v1901_v14  ;;  %632 = vmatmul.mubr.bf16.vlgmr.msra.gmra.mrb[4].mxu1 %v1901_v14  ;;  %v1650_v14 = vld [vmem:[%s2240_s4 + $0xd0] sm:$0xff]  }
  0x46   :  { %1553 = vmatpush3.bf16.msra.mxu0 %v1643_v7  ;;  %1575 = vmatpush3.bf16.msra.mxu1 %v1644_v8 }
  0x47   :  { %1554 = vmatprep.subr.bf16.mxu0 %v1645_v9  ;;  %1576 = vmatprep.subr.bf16.mxu1 %v1646_v10 }
  0x4a   :  { %1555 = vmatpush3.bf16.msra.mxu0 %v1647_v11  ;;  %1577 = vmatpush3.bf16.msra.mxu1 %v1648_v12 }
  0x4b   :  { %1556 = vmatprep.subr.bf16.mxu0 %v1649_v13  ;;  %1578 = vmatprep.subr.bf16.mxu1 %v1650_v14 }
  0x4e   :  { %1557 = vmatpush3.bf16.msra.mxu0 %v1651_v15  ;;  %1579 = vmatpush3.bf16.msra.mxu1 %v1652_v16 }
  0x4f   :  { %1558 = vmatprep.subr.bf16.mxu0 %v1653_v17  ;;  %1580 = vmatprep.subr.bf16.mxu1 %v1654_v18 }
  0x52   :  { %1559 = vmatpush3.bf16.msra.mxu0 %v1655_v19  ;;  %1581 = vmatpush3.bf16.msra.mxu1 %v1656_v20 }
  0x53   :  { %1560 = vmatprep.subr.bf16.mxu0 %v1657_v21  ;;  %1582 = vmatprep.subr.bf16.mxu1 %v1658_v22 }
  0x56   :  { %1561 = vmatpush3.bf16.msra.mxu0 %v1659_v23  ;;  %1583 = vmatpush3.bf16.msra.mxu1 %v1660_v24 }
  0x57   :  { %1562 = vmatprep.subr.bf16.mxu0 %v1661_v25  ;;  %1584 = vmatprep.subr.bf16.mxu1 %v1662_v26 }
  0x5a   :  { %1563 = vmatpush3.bf16.msra.mxu0 %v1663_v27  ;;  %1585 = vmatpush3.bf16.msra.mxu1 %v1664_v28 }
  0x5b   :  { %1564 = vmatprep.subr.bf16.mxu0 %v1665_v29  ;;  %1586 = vmatprep.subr.bf16.mxu1 %v1666_v30 }
  0x5e   :  { %1565 = vmatpush3.bf16.msra.mxu0 %v1667_v31  ;;  %1587 = vmatpush3.bf16.msra.mxu1 %v1668_v32 }
  0x5f   :  { %1566 = vmatprep.subr.bf16.mxu0 %v1669_v33  ;;  %1588 = vmatprep.subr.bf16.mxu1 %v1670_v34 }
  0x62   :  { %1567 = vmatpush3.bf16.msra.mxu0 %v1671_v35  ;;  %1589 = vmatpush3.bf16.msra.mxu1 %v1672_v36 }
  0x63   :  { %1596 = vmatprep.subr.bf16.mxu0 %v1673_v3  ;;  %1618 = vmatprep.subr.bf16.mxu1 %v1674_v37 }
  0xf8   :  { %v504_v49 = vpop.f32.mrb[0].mxu0  ;;  %v547_v51 = vpop.f32.mrb[0].mxu1 }
  0xf9   :  { %v505_v50 = vadd.f32 %v504_v49, %v113_v45  ;;  %v506_v52 = vpop.f32.mrb[1].mxu0  ;;  %v548_v53 = vadd.f32 %v547_v51, %v121_v46  ;;  %v549_v55 = vpop.f32.mrb[1].mxu1  ;;  %v132_v49 = vsub.s32 5, %v2083_v39  ;;  %v1676_v51 = vld [vmem:[%s2240_s4 + $0x180] sm:$0xff]  }
  0xfa   :  { %v507_v54 = vadd.f32 %v506_v52, %v117_v47  ;;  %v508_v56 = vpop.f32.mrb[2].mxu0  ;;  %v550_v58 = vadd.f32 %v549_v55, %v125_v48  ;;  %v551_v60 = vpop.f32.mrb[2].mxu1  ;;  %v1677_v52 = vld [vmem:[%s2240_s4 + $0x148] sm:$0xff]  }
  0xfb   :  { %v658_v57 = vmul.f32 0.70710677, %v505_v50  ;;  %v509_v59 = vadd.f32 %v508_v56, %v113_v45  ;;  %v510_v61 = vpop.f32.mrb[3].mxu0  ;;  %v660_v62 = vmul.f32 0.70710677, %v548_v53  ;;  %v553_v1 = vpop.f32.mrb[3].mxu1  ;;  %v552_v4 = vadd.f32 %v551_v60, %v121_v46 }
  0xfc   :  { %v659_v63 = vmul.f32 0.70710677, %v507_v54  ;;  %v661_v0 = vmul.f32 0.70710677, %v550_v58  ;;  %v511_v5 = vadd.f32 %v510_v61, %v117_v47  ;;  %v554_v6 = vadd.f32 %v553_v1, %v125_v48  ;;  %v1675_v47 = vld [vmem:[%s2240_s4 + $0x100] sm:$0xff]   ;;  %v1679_v56 = vld [vmem:[%s2240_s4 + $0x108] sm:$0xff]  }
  0xfd   :  { %1705 = verf.f32 %v658_v57  ;;  %v666_v2 = vmul.f32 0.70710677, %v509_v59  ;;  %v668_v7 = vmul.f32 0.70710677, %v552_v4  ;;  %v642_v16 = vmul.f32 0.5, %v505_v50  ;;  %v1681_v60 = vld [vmem:[%s2240_s4 + $0x150] sm:$0xff]  }
  0xfe   :  { %1707 = verf.f32 %v660_v62  ;;  %v667_v8 = vmul.f32 0.70710677, %v511_v5  ;;  %v669_v9 = vmul.f32 0.70710677, %v554_v6  ;;  %v644_v17 = vmul.f32 0.5, %v548_v53  ;;  %v1682_v62 = vld [vmem:[%s2240_s4 + $0x1d0] sm:$0xff]  }
  0xff   :  { %1709 = verf.f32 %v659_v63  ;;  %v643_v20 = vmul.f32 0.5, %v507_v54  ;;  %v650_v22 = vmul.f32 0.5, %v509_v59  ;;  %v645_v25 = vmul.f32 0.5, %v550_v58  ;;  %v1678_v54 = vld [vmem:[%s2240_s4 + $0x1c8] sm:$0xff]  }
 0x100   :  { %1711 = verf.f32 %v661_v0  ;;  %v652_v27 = vmul.f32 0.5, %v552_v4  ;;  %v651_v32 = vmul.f32 0.5, %v511_v5  ;;  %v653_v36 = vmul.f32 0.5, %v554_v6  ;;  %v1683_v6 = vld [vmem:[%s2240_s4 + $0x110] sm:$0xff]  }
 0x101   :  { %1713 = verf.f32 %v666_v2  ;;  %v128_v45 = vsub.s32 4, %v2083_v39  ;;  %v136_v48 = vsub.s32 6, %v2083_v39  ;;  %v140_v53 = vsub.s32 7, %v2083_v39  ;;  %v1680_v39 = vld [vmem:[%s2240_s4 + $0x188] sm:$0xff]  }
 0x102   :  { %1715 = verf.f32 %v668_v7  ;;  %v133_v58 = vrot.slane %v2089_v41, %v132_v49  ;;  %v1700_v49 = vld [vmem:[%s2240_s4 + $0x1b0] sm:$0xff]  }
 0x103   :  { %1717 = verf.f32 %v667_v8  ;;  %v129_v55 = vrot.slane %v2089_v41, %v128_v45  ;;  %v137_v57 = vrot.slane %v2089_v41, %v136_v48  ;;  %v141_v59 = vrot.slane %v2089_v41, %v140_v53 }
 0x104   :  { %1719 = verf.f32 %v669_v9 }
 0x107   :  { %v1706_v10 = vpop.eup %1705 }
 0x108   :  { %v1708_v11 = vpop.eup %1707  ;;  %v690_v14 = vadd.f32 1.0, %v1706_v10 }
 0x109   :  { %v1710_v12 = vpop.eup %1709  ;;  %v692_v18 = vadd.f32 1.0, %v1708_v11 }
 0x10a   :  { %v1712_v13 = vpop.eup %1711  ;;  %v691_v21 = vadd.f32 1.0, %v1710_v12  ;;  %v706_v30 = vmul.f32 %v690_v14, %v642_v16  ;;  %v1684_v12 = vld [vmem:[%s2240_s4 + $0x190] sm:$0xff]   ;;  %v1686_v16 = vld [vmem:[%s2240_s4 + $0x1d8] sm:$0xff]  }
 0x10b   :  { %v1714_v15 = vpop.eup %1713  ;;  %v693_v26 = vadd.f32 1.0, %v1712_v13  ;;  %v708_v34 = vmul.f32 %v692_v18, %v644_v17  ;;  %v1685_v13 = vld [vmem:[%s2240_s4 + $0x158] sm:$0xff]  }
 0x10c   :  { %v1716_v19 = vpop.eup %1715  ;;  %v698_v23 = vadd.f32 1.0, %v1714_v15  ;;  %v707_v37 = vmul.f32 %v691_v21, %v643_v20 }
 0x10d   :  { %v1718_v24 = vpop.eup %1717  ;;  %v700_v28 = vadd.f32 1.0, %v1716_v19  ;;  %v709_v42 = vmul.f32 %v693_v26, %v645_v25  ;;  %v1689_v25 = vld [vmem:[%s2240_s4 + $0x160] sm:$0xff]  }
 0x10e   :  { %v1720_v29 = vpop.eup %1719  ;;  %v714_v31 = vmul.f32 %v698_v23, %v650_v22  ;;  %v699_v33 = vadd.f32 1.0, %v1718_v24  ;;  %v1687_v22 = vld [vmem:[%s2240_s4 + $0x118] sm:$0xff]  }
 0x10f   :  { %v716_v35 = vmul.f32 %v700_v28, %v652_v27  ;;  %v701_v3 = vadd.f32 1.0, %v1720_v29  ;;  %v1688_v24 = vld [vmem:[%s2240_s4 + $0x198] sm:$0xff]   ;;  %v1690_v27 = vld [vmem:[%s2240_s4 + $0x1e0] sm:$0xff]  }
 0x110   :  { %v724_v38 = vpack.c.bf16 %v714_v31, %v706_v30  ;;  %v715_v40 = vmul.f32 %v699_v33, %v651_v32  ;;  %v1691_v30 = vld [vmem:[%s2240_s4 + $0x120] sm:$0xff]   ;;  %v1693_v32 = vld [vmem:[%s2240_s4 + $0x168] sm:$0xff]  }
 0x111   :  { %v726_v43 = vpack.c.bf16 %v716_v35, %v708_v34  ;;  %v717_v44 = vmul.f32 %v701_v3, %v653_v36  ;;  %v1692_v31 = vld [vmem:[%s2240_s4 + $0x1a0] sm:$0xff]   ;;  %v1694_v33 = vld [vmem:[%s2240_s4 + $0x1e8] sm:$0xff]   ;;  %v1697_v3 = vld [vmem:[%s2240_s4 + $0x170] sm:$0xff]  }
 0x112   :  { %v725_v46 = vpack.c.bf16 %v715_v40, %v707_v37  ;;  %v1695_v34 = vld [vmem:[%s2240_s4 + $0x128] sm:$0xff]  }
 0x113   :  { %v727_v50 = vpack.c.bf16 %v717_v44, %v709_v42  ;;  %v1696_v36 = vld [vmem:[%s2240_s4 + $0x1a8] sm:$0xff]   ;;  %v1699_v44 = vld [vmem:[%s2240_s4 + $0x130] sm:$0xff]  }
 0x114   :  { %1276 = vmatprep.mubr.bf16.mxu0 %v725_v46 }
 0x115   :  { %1317 = vmatprep.mubr.bf16.mxu1 %v727_v50  ;;  %1277 = vmatmul.mubr.bf16.vlgmr.msra.gmra.mrb[8].mxu0 %v724_v38  ;;  %v1698_v38 = vld [vmem:[%s2240_s4 + $0x1f0] sm:$0xff]   ;;  %v1701_v50 = vld [vmem:[%s2240_s4 + $0x178] sm:$0xff]  }
 0x116   :  { %1318 = vmatmul.mubr.bf16.vlgmr.msra.gmra.mrb[8].mxu1 %v726_v43  ;;  %1597 = vmatpush3.bf16.msra.mxu0 %v1675_v47 }
 0x117   :  { %1619 = vmatpush3.bf16.msra.mxu1 %v1676_v51  ;;  %1598 = vmatprep.subr.bf16.mxu0 %v1677_v52 }
 0x118   :  { %1620 = vmatprep.subr.bf16.mxu1 %v1678_v54  ;;  %v590_v61 = vpop.f32.mrb[4].mxu0  ;;  %v633_v0 = vpop.f32.mrb[4].mxu1 }
 0x119   :  { %v2130_v63 = vadd.f32 %v590_v61, %v129_v55  ;;  %v592_v1 = vpop.f32.mrb[5].mxu0  ;;  %v2132_v2 = vadd.f32 %v633_v0, %v137_v57  ;;  %v635_v41 = vpop.f32.mrb[5].mxu1 }
 0x11a   :  { %1599 = vmatpush3.bf16.msra.mxu0 %v1679_v56  ;;  %v2134_v4 = vadd.f32 %v592_v1, %v133_v58  ;;  %v594_v5 = vpop.f32.mrb[6].mxu0  ;;  %v2140_v8 = vadd.f32 %v635_v41, %v141_v59  ;;  %v637_v10 = vpop.f32.mrb[6].mxu1  ;;  %v1702_v56 = vld [vmem:[%s2240_s4 + $0x1f8] sm:$0xff]  }
 0x11b   :  { %1621 = vmatpush3.bf16.msra.mxu1 %v1680_v39  ;;  %v662_v7 = vmul.f32 0.70710677, %v2130_v63  ;;  %v2142_v9 = vadd.f32 %v594_v5, %v129_v55  ;;  %1600 = vmatprep.subr.bf16.mxu0 %v1681_v60  ;;  %v596_v11 = vpop.f32.mrb[7].mxu0  ;;  %v664_v14 = vmul.f32 0.70710677, %v2132_v2  ;;  %v639_v18 = vpop.f32.mrb[7].mxu1  ;;  %v638_v20 = vadd.f32 %v637_v10, %v137_v57 }
 0x11c   :  { %v663_v15 = vmul.f32 0.70710677, %v2134_v4  ;;  %1622 = vmatprep.subr.bf16.mxu1 %v1682_v62  ;;  %v665_v17 = vmul.f32 0.70710677, %v2140_v8  ;;  %v2157_v21 = vadd.f32 %v596_v11, %v133_v58  ;;  %v2162_v23 = vadd.f32 %v639_v18, %v141_v59 }
 0x11d   :  { %1721 = verf.f32 %v662_v7  ;;  %v670_v19 = vmul.f32 0.70710677, %v2142_v9  ;;  %v672_v26 = vmul.f32 0.70710677, %v638_v20  ;;  %v646_v46 = vmul.f32 0.5, %v2130_v63  ;;  %v1704_v7 = vld [vmem:[%s2240_s4 + $0x1b8] sm:$0xff]  }
 0x11e   :  { %1723 = verf.f32 %v664_v14  ;;  %1601 = vmatpush3.bf16.msra.mxu0 %v1683_v6  ;;  %v671_v28 = vmul.f32 0.70710677, %v2157_v21  ;;  %v673_v29 = vmul.f32 0.70710677, %v2162_v23  ;;  %v648_v47 = vmul.f32 0.5, %v2132_v2  ;;  %v1703_v2 = vld [vmem:[%s2240_s4 + $0x138] sm:$0xff]  }
 0x11f   :  { %1725 = verf.f32 %v663_v15  ;;  %1623 = vmatpush3.bf16.msra.mxu1 %v1684_v12  ;;  %1602 = vmatprep.subr.bf16.mxu0 %v1685_v13  ;;  %v647_v52 = vmul.f32 0.5, %v2134_v4  ;;  %v654_v54 = vmul.f32 0.5, %v2142_v9  ;;  %v649_v58 = vmul.f32 0.5, %v2140_v8 }
 0x120   :  { %1727 = verf.f32 %v665_v17  ;;  %1624 = vmatprep.subr.bf16.mxu1 %v1686_v16  ;;  %v656_v59 = vmul.f32 0.5, %v638_v20  ;;  %v655_v0 = vmul.f32 0.5, %v2157_v21  ;;  %v657_v5 = vmul.f32 0.5, %v2162_v23 }
 0x121   :  { %1729 = verf.f32 %v670_v19 }
 0x122   :  { %1731 = verf.f32 %v672_v26  ;;  %1603 = vmatpush3.bf16.msra.mxu0 %v1687_v22 }
 0x123   :  { %1733 = verf.f32 %v671_v28  ;;  %1625 = vmatpush3.bf16.msra.mxu1 %v1688_v24  ;;  %1604 = vmatprep.subr.bf16.mxu0 %v1689_v25 }
 0x124   :  { %1735 = verf.f32 %v673_v29  ;;  %1626 = vmatprep.subr.bf16.mxu1 %v1690_v27 }
 0x126   :  { %1605 = vmatpush3.bf16.msra.mxu0 %v1691_v30 }
 0x127   :  { %v1722_v35 = vpop.eup %1721  ;;  %1627 = vmatpush3.bf16.msra.mxu1 %v1692_v31  ;;  %1606 = vmatprep.subr.bf16.mxu0 %v1693_v32 }
 0x128   :  { %v1724_v37 = vpop.eup %1723  ;;  %1628 = vmatprep.subr.bf16.mxu1 %v1694_v33  ;;  %v694_v43 = vadd.f32 1.0, %v1722_v35  ;;  %v28_v33 = vld [vmem:[%s2243_s1] sm:$0xff] }
 0x129   :  { %v1726_v40 = vpop.eup %1725  ;;  %v696_v48 = vadd.f32 1.0, %v1724_v37 }
 0x12a   :  { %v1728_v42 = vpop.eup %1727  ;;  %1607 = vmatpush3.bf16.msra.mxu0 %v1695_v34  ;;  %v695_v53 = vadd.f32 1.0, %v1726_v40  ;;  %v710_v62 = vmul.f32 %v694_v43, %v646_v46  ;;  %v1423_v34 = vld [vmem:[%s2244_s5] ss:$0 sm:$0xff] }
 0x12b   :  { %v1730_v45 = vpop.eup %1729  ;;  %1629 = vmatpush3.bf16.msra.mxu1 %v1696_v36  ;;  %1608 = vmatprep.subr.bf16.mxu0 %v1697_v3  ;;  %v697_v39 = vadd.f32 1.0, %v1728_v42  ;;  %v712_v4 = vmul.f32 %v696_v48, %v648_v47  ;;  %v29_v42 = vld [vmem:[%s2243_s1 + $0x8] sm:$0xff] }
 0x12c   :  { %v1732_v51 = vpop.eup %1731  ;;  %v702_v55 = vadd.f32 1.0, %v1730_v45  ;;  %1630 = vmatprep.subr.bf16.mxu1 %v1698_v38  ;;  %v711_v8 = vmul.f32 %v695_v53, %v647_v52 }
 0x12d   :  { %v1734_v57 = vpop.eup %1733  ;;  %v704_v60 = vadd.f32 1.0, %v1732_v51  ;;  %v713_v11 = vmul.f32 %v697_v39, %v649_v58 }
 0x12e   :  { %v1736_v61 = vpop.eup %1735  ;;  %v718_v63 = vmul.f32 %v702_v55, %v654_v54  ;;  %v703_v1 = vadd.f32 1.0, %v1734_v57  ;;  %1609 = vmatpush3.bf16.msra.mxu0 %v1699_v44  ;;  %v37_v44 = vadd.f32 %v1423_v34, %v28_v33 }
 0x12f   :  { %v720_v41 = vmul.f32 %v704_v60, %v656_v59  ;;  %v705_v6 = vadd.f32 1.0, %v1736_v61  ;;  %1631 = vmatpush3.bf16.msra.mxu1 %v1700_v49  ;;  %1610 = vmatprep.subr.bf16.mxu0 %v1701_v50  ;;  %v38_v50 = vadd.f32 %v1423_v34, %v29_v42 }
 0x130   :  { %v728_v9 = vpack.c.bf16 %v718_v63, %v710_v62  ;;  %v719_v10 = vmul.f32 %v703_v1, %v655_v0  ;;  %1632 = vmatprep.subr.bf16.mxu1 %v1702_v56 }
 0x131   :  { %v730_v12 = vpack.c.bf16 %v720_v41, %v712_v4  ;;  %v721_v13 = vmul.f32 %v705_v6, %v657_v5 }
 0x132   :  { %1611 = vmatpush3.bf16.msra.mxu0 %v1703_v2  ;;  %v729_v14 = vpack.c.bf16 %v719_v10, %v711_v8 }
 0x133   :  { %1633 = vmatpush3.bf16.msra.mxu1 %v1704_v7  ;;  %v731_v15 = vpack.c.bf16 %v721_v13, %v713_v11 }
 0x134   :  { %1358 = vmatprep.mubr.bf16.mxu0 %v729_v14 }
 0x135   :  { %1399 = vmatprep.mubr.bf16.mxu1 %v731_v15  ;;  %1359 = vmatmul.mubr.bf16.vlgmr.msra.gmra.mrb[12].mxu0 %v728_v9 }
 0x136   :  { %1400 = vmatmul.mubr.bf16.vlgmr.msra.gmra.mrb[12].mxu1 %v730_v12 }
 0x1e8   :  { %v1568_v16 = vpop.f32.mrb[8].mxu0 }
 0x1e9   :  { %v1590_v17 = vpop.f32.mrb[8].mxu1  ;;  %v1569_v18 = vpop.f32.mrb[9].mxu0 }
 0x1ea   :  { %v1570_v19 = vadd.f32 %v1569_v18, %v1568_v16  ;;  %v1591_v20 = vpop.f32.mrb[9].mxu1  ;;  %v1571_v21 = vpop.f32.mrb[10].mxu0 }
 0x1eb   :  { %v1592_v22 = vadd.f32 %v1591_v20, %v1590_v17  ;;  %v1593_v23 = vpop.f32.mrb[10].mxu1  ;;  %v1572_v24 = vpop.f32.mrb[11].mxu0 }
 0x1ec   :  { %v1573_v25 = vadd.f32 %v1572_v24, %v1571_v21  ;;  %v1594_v26 = vpop.f32.mrb[11].mxu1 }
 0x1ed   :  { %v1320_v27 = vadd.f32 %v1592_v22, %v1570_v19  ;;  %v1595_v28 = vadd.f32 %v1594_v26, %v1593_v23 }
 0x1ef   :  { %v1323_v29 = vadd.f32 %v1595_v28, %v1573_v25 }
 0x208   :  { %v1612_v30 = vpop.f32.mrb[12].mxu0 }
 0x209   :  { %v1634_v31 = vpop.f32.mrb[12].mxu1  ;;  %v1613_v32 = vpop.f32.mrb[13].mxu0 }
 0x20a   :  { %v1614_v35 = vadd.f32 %v1613_v32, %v1612_v30  ;;  %v1635_v36 = vpop.f32.mrb[13].mxu1  ;;  %v1615_v3 = vpop.f32.mrb[14].mxu0 }
 0x20b   :  { %v1636_v37 = vadd.f32 %v1635_v36, %v1634_v31  ;;  %v1637_v38 = vpop.f32.mrb[14].mxu1  ;;  %v1616_v40 = vpop.f32.mrb[15].mxu0 }
 0x20c   :  { %v1361_v43 = vadd.f32 %v1614_v35, %v1320_v27  ;;  %v1617_v45 = vadd.f32 %v1616_v40, %v1615_v3  ;;  %v1638_v46 = vpop.f32.mrb[15].mxu1 }
 0x20d   :  { %v1639_v47 = vadd.f32 %v1638_v46, %v1637_v38 }
 0x20e   :  { %v1402_v48 = vadd.f32 %v1636_v37, %v1361_v43  ;;  %v1364_v49 = vadd.f32 %v1617_v45, %v1323_v29 }
 0x210   :  { %v1408_v51 = vadd.f32 %v1402_v48, %v37_v44  ;;  %v1405_v52 = vadd.f32 %v1639_v47, %v1364_v49 }
 0x212   :  { %1417 = vst [vmem:[%s2245_s6] sm:$0xff] %v1408_v51  ;;  %v1409_v53 = vadd.f32 %v1405_v52, %v38_v50 }
 0x214   :  { %1418 = vst [vmem:[%s2245_s6 + $0x8] sm:$0xff] %v1409_v53 }

// kernel: image_encoder_forward.21
= control target key start
LH: loop header
LB: loop body
LE: loop exit
PB: predicated region body
PF: predicated region fallthrough
CT: control target
= control target key end

     0   :  { %s156_s0 = inlined_call_operand.vmem [shape: f32[16,128], index: 0, kind: input, shape index: {}]   ;;  %s157_s1 = inlined_call_operand.vmem [shape: f32[1,128], index: 1, kind: input, shape index: {}]   ;;  %s158_s2 = inlined_call_operand.vmem [shape: f32[1,128], index: 2, kind: input, shape index: {}]   ;;  %s159_s3 = inlined_call_operand.hbm [shape: f32[16,128], index: 3, kind: output, shape index: {}]  }
   0x1   :  { %v15_v0 = vld [vmem:[%s156_s0] sm:$0xff] }
   0x2   :  { %8 = vsyncpa [#allocation3], 0  ;;  %17 = vadd.xlane.f32.xlu0 %v15_v0  ;;  %v16_v1 = vld [vmem:[%s156_s0 + $0x8] sm:$0xff]  ;;  %v76_v17 = vld [vmem:[%s157_s1] ss:$0 sm:$0xff]  ;;  %s109_s19 = smov [#allocation2]  }
   0x3   :  { %v77_v19 = vld [vmem:[%s158_s2] ss:$0 sm:$0xff]  ;;  %s65_s20 = sshll.u32 %s109_s19, 4  ;;  %s66_s20 = int_to_ptr.vmem [resolvable:$true] %s65_s20 }
   0x4   :  { %s85_s21 = scalar_lea.vmem %s66_s20, 256  ;;  %p90_p1 = scmp.lt.s32.totalorder %s66_s20, %s66_s20 }
   0x5   :  { %p86_p0 = scmp.ne.s32.totalorder %s66_s20, %s85_s21  ;;  %p91_p2 = scmp.lt.s32.totalorder %s85_s21, %s85_s21 }
   0x6   :  { %19 = vadd.xlane.f32.xlu0 %v16_v1 }
   0x7   :  { %p92_p3 = por %p91_p2, %p90_p1 }
   0x9   :  { %p93_p4 = pnand %p92_p3, %p86_p0 }
  0x8f   :  { %v18_v2 = vpop.xlane.xlu0 %17 }
  0x90   :  { %v22_v3 = vmul.f32 0.0078125, %v18_v2 }
  0x92   :  { %v24_v4 = vsub.f32 %v15_v0, %v22_v3 }
  0x93   :  { %v20_v5 = vpop.xlane.xlu0 %19 }
  0x94   :  { %v23_v6 = vmul.f32 0.0078125, %v20_v5  ;;  %v26_v7 = vmul.f32 %v24_v4, %v24_v4 }
  0x96   :  { %v25_v8 = vsub.f32 %v16_v1, %v23_v6  ;;  %28 = vadd.xlane.f32.xlu1 %v26_v7 }
  0x98   :  { %v27_v9 = vmul.f32 %v25_v8, %v25_v8 }
  0x9a   :  { %30 = vadd.xlane.f32.xlu1 %v27_v9 }
 0x123   :  { %v29_v10 = vpop.xlane.xlu1 %28 }
 0x124   :  { %v32_v11 = vmul.f32 0.0078125, %v29_v10 }
 0x126   :  { %v34_v12 = vadd.f32 1e-05, %v32_v11 }
 0x127   :  { %v31_v13 = vpop.xlane.xlu1 %30 }
 0x128   :  { %81 = vrsqrt.f32 %v34_v12  ;;  %v33_v14 = vmul.f32 0.0078125, %v31_v13 }
 0x12a   :  { %v35_v15 = vadd.f32 1e-05, %v33_v14 }
 0x12c   :  { %83 = vrsqrt.f32 %v35_v15 }
 0x132   :  { %v82_v16 = vpop.eup %81 }
 0x133   :  { %v38_v18 = vmul.f32 %v82_v16, %v24_v4 }
 0x135   :  { %v47_v20 = vmul.f32 %v76_v17, %v38_v18 }
 0x136   :  { %v84_v21 = vpop.eup %83 }
 0x137   :  { %v39_v22 = vmul.f32 %v84_v21, %v25_v8  ;;  %v56_v23 = vadd.f32 %v77_v19, %v47_v20 }
 0x139   :  { %v48_v24 = vmul.f32 %v76_v17, %v39_v22  ;;  %58 = vst [vmem:[#allocation2] sm:$0xff] %v56_v23 }
 0x13b   :  { %v57_v25 = vadd.f32 %v77_v19, %v48_v24 }
 0x13d   :  { %59 = vst [vmem:[#allocation2 + $0x8] sm:$0xff] %v57_v25 }
 0x13e   :  { %96 = shalt.err (!%p93_p4)
}
 0x13f   :  { %s97_s22 = scalar_lea.hbm %s159_s3, 256 }
 0x140   :  { %p98_p5 = scmp.ne.s32.totalorder %s159_s3, %s97_s22  ;;  %p101_p6 = scmp.lt.u32.totalorder %s97_s22, %s159_s3 }
 0x142   :  { %p103_p7 = pnand %p101_p6, %p98_p5 }
 0x144   :  { %106 = shalt.err (!%p103_p7)
}
 0x145   :  { %s110_s27 = smov 128   ;;  %s111_s28 = smov 8  }
 0x146   :  { %71 = dma.vmem_to_hbm [thread:$0]  %s66_s20, 256, %s159_s3, [#allocation3], %s110_s27, %s110_s27, %s111_s28  }
 0x147   :  { %107 = dma.done.wait [#allocation3], 256  }
 0x148   :  { %108 = vsyncadd [#allocation3], 4294967040 }
 0x149   :  { %75 = vsyncpa [#allocation3], 1 }

// kernel: image_encoder_forward.16
= control target key start
LH: loop header
LB: loop body
LE: loop exit
PB: predicated region body
PF: predicated region fallthrough
CT: control target
= control target key end

     0   :  { %v430_v3 = vmov 0.0   ;;  %v431_v30 = vmov 0   ;;  %vm432_vm0 = vmmov 0   ;;  %v99_v53 = vlaneseq  ;;  %s587_s0 = inlined_call_operand.vmem [shape: f32[16,128], index: 0, kind: input, shape index: {}]   ;;  %s588_s3 = inlined_call_operand.vmem [shape: bf16[128,384], index: 3, kind: input, shape index: {}]   ;;  %s589_s1 = inlined_call_operand.vmem [shape: f32[1,128], index: 1, kind: input, shape index: {}]   ;;  %s590_s2 = inlined_call_operand.vmem [shape: f32[1,128], index: 2, kind: input, shape index: {}]   ;;  %s591_s4 = inlined_call_operand.vmem [shape: f32[1,384], index: 4, kind: input, shape index: {}]   ;;  %s592_s5 = inlined_call_operand.vmem [shape: f32[16,384], index: 5, kind: output, shape index: {}]  }
   0x1   :  { %v21_v0 = vld [vmem:[%s587_s0] sm:$0xff]  ;;  %v22_v1 = vld [vmem:[%s587_s0 + $0x8] sm:$0xff]  ;;  %371 = vmatprep.subr.bf16.mxu1 %v430_v3  ;;  %v404_v18 = vld [vmem:[%s588_s3 + $0x30] ss:$12 sps:$4 sm:$0xff]   ;;  %274 = vmatprep.mubr.bf16.mxu0 %v431_v30 }
   0x2   :  { %23 = vadd.xlane.f32.xlu0 %v21_v0  ;;  %v394_v2 = vld [vmem:[%s588_s3 + $0x4] ss:$12 sps:$4 sm:$0xff]   ;;  %v396_v4 = vld [vmem:[%s588_s3] ss:$12 sps:$4 sm:$0xff]   ;;  %v397_v5 = vld [vmem:[%s588_s3 + $0x8] ss:$12 sps:$4 sm:$0xff]   ;;  %387 = vmatprep.mubr.msk.bf16.mxu1 %vm432_vm0, %v430_v3 }
   0x3   :  { %242 = vmatprep.subr.bf16.mxu0 %v394_v2  ;;  %v398_v6 = vld [vmem:[%s588_s3 + $0x1c] ss:$12 sps:$4 sm:$0xff]   ;;  %372 = vmatpush3.bf16.msra.mxu1 %v397_v5  ;;  %v400_v15 = vld [vmem:[%s588_s3 + $0x18] ss:$12 sps:$4 sm:$0xff]   ;;  %v401_v16 = vld [vmem:[%s588_s3 + $0x20] ss:$12 sps:$4 sm:$0xff]  }
   0x4   :  { %243 = vmatpush1.bf16.msra.mxu0 %v396_v4  ;;  %373 = vmatprep.subr.bf16.mxu1 %v430_v3  ;;  %v402_v17 = vld [vmem:[%s588_s3 + $0x34] ss:$12 sps:$4 sm:$0xff]   ;;  %v405_v19 = vld [vmem:[%s588_s3 + $0x38] ss:$12 sps:$4 sm:$0xff]   ;;  %v409_v22 = vld [vmem:[%s588_s3 + $0x50] ss:$12 sps:$4 sm:$0xff]  }
   0x5   :  { %244 = vmatprep.subr.bf16.mxu0 %v398_v6  ;;  %v406_v20 = vld [vmem:[%s588_s3 + $0x4c] ss:$12 sps:$4 sm:$0xff]   ;;  %v408_v21 = vld [vmem:[%s588_s3 + $0x48] ss:$12 sps:$4 sm:$0xff]   ;;  %v410_v23 = vld [vmem:[%s588_s3 + $0x64] ss:$12 sps:$4 sm:$0xff]  }
   0x6   :  { %25 = vadd.xlane.f32.xlu0 %v22_v1  ;;  %v412_v24 = vld [vmem:[%s588_s3 + $0x60] ss:$12 sps:$4 sm:$0xff]   ;;  %v413_v25 = vld [vmem:[%s588_s3 + $0x68] ss:$12 sps:$4 sm:$0xff]   ;;  %v416_v27 = vld [vmem:[%s588_s3 + $0x78] ss:$12 sps:$4 sm:$0xff]  }
   0x7   :  { %374 = vmatpush3.bf16.msra.mxu1 %v401_v16  ;;  %v414_v26 = vld [vmem:[%s588_s3 + $0x7c] ss:$12 sps:$4 sm:$0xff]   ;;  %v417_v28 = vld [vmem:[%s588_s3 + $0x80] ss:$12 sps:$4 sm:$0xff]   ;;  %v421_v32 = vld [vmem:[%s588_s3 + $0x98] ss:$12 sps:$4 sm:$0xff]  }
   0x8   :  { %245 = vmatpush1.bf16.msra.mxu0 %v400_v15  ;;  %375 = vmatprep.subr.bf16.mxu1 %v430_v3  ;;  %v418_v29 = vld [vmem:[%s588_s3 + $0x94] ss:$12 sps:$4 sm:$0xff]   ;;  %v420_v31 = vld [vmem:[%s588_s3 + $0x90] ss:$12 sps:$4 sm:$0xff]   ;;  %v422_v33 = vld [vmem:[%s588_s3 + $0xac] ss:$12 sps:$4 sm:$0xff]  }
   0x9   :  { %246 = vmatprep.subr.bf16.mxu0 %v402_v17  ;;  %v424_v34 = vld [vmem:[%s588_s3 + $0xa8] ss:$12 sps:$4 sm:$0xff]   ;;  %v425_v35 = vld [vmem:[%s588_s3 + $0xb0] ss:$12 sps:$4 sm:$0xff]   ;;  %v336_v44 = vld [vmem:[%s589_s1] ss:$0 sm:$0xff] }
   0xa   :  { %v337_v48 = vld [vmem:[%s590_s2] ss:$0 sm:$0xff]  ;;  %v100_v54 = vshrl.u32 %v99_v53, 7 }
   0xb   :  { %376 = vmatpush3.bf16.msra.mxu1 %v405_v19  ;;  %v97_v57 = vld [vmem:[%s591_s4] sm:$0x7] }
   0xc   :  { %247 = vmatpush1.bf16.msra.mxu0 %v404_v18  ;;  %377 = vmatprep.subr.bf16.mxu1 %v430_v3  ;;  %v101_v55 = vsub.s32 0, %v100_v54  ;;  %v109_v56 = vsub.s32 2, %v100_v54  ;;  %v105_v58 = vsub.s32 1, %v100_v54 }
   0xd   :  { %248 = vmatprep.subr.bf16.mxu0 %v406_v20 }
   0xe   :  { %v102_v59 = vrot.slane %v97_v57, %v101_v55  ;;  %v110_v60 = vrot.slane %v97_v57, %v109_v56  ;;  %v106_v61 = vrot.slane %v97_v57, %v105_v58 }
   0xf   :  { %378 = vmatpush3.bf16.msra.mxu1 %v409_v22 }
  0x10   :  { %249 = vmatpush1.bf16.msra.mxu0 %v408_v21  ;;  %379 = vmatprep.subr.bf16.mxu1 %v430_v3 }
  0x11   :  { %250 = vmatprep.subr.bf16.mxu0 %v410_v23 }
  0x13   :  { %380 = vmatpush3.bf16.msra.mxu1 %v413_v25 }
  0x14   :  { %251 = vmatpush1.bf16.msra.mxu0 %v412_v24  ;;  %381 = vmatprep.subr.bf16.mxu1 %v430_v3 }
  0x15   :  { %252 = vmatprep.subr.bf16.mxu0 %v414_v26 }
  0x17   :  { %382 = vmatpush3.bf16.msra.mxu1 %v417_v28 }
  0x18   :  { %253 = vmatpush1.bf16.msra.mxu0 %v416_v27  ;;  %383 = vmatprep.subr.bf16.mxu1 %v430_v3 }
  0x19   :  { %254 = vmatprep.subr.bf16.mxu0 %v418_v29 }
  0x1b   :  { %384 = vmatpush3.bf16.msra.mxu1 %v421_v32 }
  0x1c   :  { %255 = vmatpush1.bf16.msra.mxu0 %v420_v31  ;;  %385 = vmatprep.subr.bf16.mxu1 %v430_v3 }
  0x1d   :  { %256 = vmatprep.subr.bf16.mxu0 %v422_v33 }
  0x1f   :  { %386 = vmatpush3.bf16.msra.mxu1 %v425_v35 }
  0x20   :  { %257 = vmatpush1.bf16.msra.mxu0 %v424_v34 }
  0x8f   :  { %v24_v7 = vpop.xlane.xlu0 %23 }
  0x90   :  { %v28_v8 = vmul.f32 0.0078125, %v24_v7 }
  0x92   :  { %v483_v9 = vsub.f32 %v21_v0, %v28_v8 }
  0x93   :  { %v26_v10 = vpop.xlane.xlu0 %25 }
  0x94   :  { %v29_v11 = vmul.f32 0.0078125, %v26_v10  ;;  %v32_v12 = vmul.f32 %v483_v9, %v483_v9 }
  0x96   :  { %v487_v13 = vsub.f32 %v22_v1, %v29_v11  ;;  %34 = vadd.xlane.f32.xlu1 %v32_v12 }
  0x98   :  { %v33_v14 = vmul.f32 %v487_v13, %v487_v13 }
  0x9a   :  { %36 = vadd.xlane.f32.xlu1 %v33_v14 }
 0x123   :  { %v35_v36 = vpop.xlane.xlu1 %34 }
 0x124   :  { %v38_v37 = vmul.f32 0.0078125, %v35_v36 }
 0x126   :  { %v40_v38 = vadd.f32 1e-05, %v38_v37 }
 0x127   :  { %v37_v39 = vpop.xlane.xlu1 %36 }
 0x128   :  { %426 = vrsqrt.f32 %v40_v38  ;;  %v39_v40 = vmul.f32 0.0078125, %v37_v39 }
 0x12a   :  { %v41_v41 = vadd.f32 1e-05, %v39_v40 }
 0x12c   :  { %428 = vrsqrt.f32 %v41_v41 }
 0x132   :  { %v427_v42 = vpop.eup %426 }
 0x133   :  { %v44_v43 = vmul.f32 %v427_v42, %v483_v9 }
 0x135   :  { %v53_v47 = vmul.f32 %v336_v44, %v44_v43 }
 0x136   :  { %v429_v45 = vpop.eup %428 }
 0x137   :  { %v45_v46 = vmul.f32 %v429_v45, %v487_v13  ;;  %v62_v50 = vadd.f32 %v337_v48, %v53_v47 }
 0x139   :  { %v54_v49 = vmul.f32 %v336_v44, %v45_v46 }
 0x13b   :  { %v63_v51 = vadd.f32 %v337_v48, %v54_v49 }
 0x13d   :  { %v64_v52 = vpack.c.bf16 %v63_v51, %v62_v50 }
 0x13f   :  { %275 = vmatmul.mubr.bf16.vlgmr.msra.gmra.mrb[0].mxu0 %v64_v52  ;;  %388 = vmatmul.mubr.bf16.vlgmr.msra.gmra.mrb[0].mxu1 %v64_v52 }
 0x212   :  { %v276_v62 = vpop.f32.mrb[0].mxu0  ;;  %v319_v63 = vpop.f32.mrb[0].mxu1 }
 0x213   :  { %v277_v0 = vadd.f32 %v276_v62, %v102_v59  ;;  %v320_v1 = vadd.f32 %v319_v63, %v110_v60  ;;  %v278_v2 = vpop.f32.mrb[1].mxu0  ;;  %v389_v3 = vpop.f32.mrb[1].mxu1 }
 0x214   :  { %v279_v4 = vadd.f32 %v278_v2, %v106_v61  ;;  %v280_v5 = vpop.f32.mrb[2].mxu0  ;;  %v322_v6 = vpop.f32.mrb[2].mxu1 }
 0x215   :  { %326 = vst [vmem:[%s592_s5] sm:$0xff] %v277_v0  ;;  %328 = vst [vmem:[%s592_s5 + $0x10] sm:$0xff] %v320_v1  ;;  %v281_v7 = vadd.f32 %v280_v5, %v102_v59  ;;  %v323_v8 = vadd.f32 %v322_v6, %v110_v60  ;;  %v282_v9 = vpop.f32.mrb[3].mxu0  ;;  %v390_v10 = vpop.f32.mrb[3].mxu1 }
 0x216   :  { %327 = vst [vmem:[%s592_s5 + $0x8] sm:$0xff] %v279_v4  ;;  %v283_v11 = vadd.f32 %v282_v9, %v106_v61 }
 0x217   :  { %329 = vst [vmem:[%s592_s5 + $0x18] sm:$0xff] %v281_v7  ;;  %331 = vst [vmem:[%s592_s5 + $0x28] sm:$0xff] %v323_v8 }
 0x218   :  { %330 = vst [vmem:[%s592_s5 + $0x20] sm:$0xff] %v283_v11 }

// kernel: image_encoder_forward.15
= control target key start
LH: loop header
LB: loop body
LE: loop exit
PB: predicated region body
PF: predicated region fallthrough
CT: control target
= control target key end

     0   :  { %s3116_s0 = inlined_call_operand.vmem [shape: s32[9], index: 0, kind: input, shape index: {}]   ;;  %s3117_s1 = inlined_call_operand.vmem [shape: f32[1152,128], index: 1, kind: input, shape index: {}]   ;;  %s3118_s2 = inlined_call_operand.vmem [shape: f32[1152,1], index: 2, kind: input, shape index: {}]   ;;  %s3119_s3 = inlined_call_operand.vmem [shape: bf16[8,128,512], index: 3, kind: input, shape index: {}]   ;;  %s3120_s4 = inlined_call_operand.vmem [shape: f32[8,1,512], index: 4, kind: input, shape index: {}]   ;;  %s3121_s5 = inlined_call_operand.vmem [shape: bf16[8,512,128], index: 5, kind: input, shape index: {}]   ;;  %s3122_s6 = inlined_call_operand.vmem [shape: f32[8,1,128], index: 6, kind: input, shape index: {}]   ;;  %s3123_s7 = inlined_call_operand.vmem [shape: f32[1152,128], index: 7, kind: output, shape index: {}]  }
   0x1   :  { %s12_s26 = sshll.u32 %s3116_s0, 4  ;;  %s13_s26 = int_to_ptr.vmem [resolvable:$true] %s12_s26 }
   0x2   :  { %s2331_s27 = scalar_lea.vmem %s13_s26, 16  ;;  %p2336_p1 = scmp.lt.s32.totalorder %s13_s26, %s13_s26 }
   0x3   :  { %p2332_p0 = scmp.ne.s32.totalorder %s13_s26, %s2331_s27  ;;  %p2337_p2 = scmp.lt.s32.totalorder %s2331_s27, %s2331_s27 }
   0x5   :  { %p2338_p3 = por %p2337_p2, %p2336_p1 }
   0x7   :  { %p2339_p4 = pnand %p2338_p3, %p2332_p0 }
   0x9   :  { %2342 = shalt.err (!%p2339_p4)  }
   0xa   :  { %s2353_s28 = smov [#allocation3]  }
   0xb   :  { %15 = dma.vmem_to_smem %s13_s26, 16, %s2353_s28, [#allocation2] }
   0xc   :  { %2347 = dma.done.wait [#allocation2], 16 }
   0xd   :  { %2348 = vsyncadd [#allocation2], 4294967280 }
   0xe   :  { %17 = sfence }
   0xf   :  { %s2398_s29 = smov 0  }
  0x10 LB: > { %s2404_s0 = sadd.s32 4294967295, %s2351_s29   ;;  %p1902_p5 = scmp.ge.s32.totalorder %s2351_s29, 1  ;;  %s2351_s29 = sphi %s2398_s29, %s23_s29  }
  0x11   : > { %p284_p6 = scmp.lt.s32.totalorder %s2351_s29, 10 }
  0x13   : > { %p285_p7 = pnand %p1902_p5, %p284_p6 }
  0x15   : > { %288 = sbr.rel (%p285_p7) target bundleno = 624 (0x270), region = 44 }
  0x1c   : > { %s352_s30 = sld [smem:[#allocation3 + %s2404_s0]]  ;;  %v2354_v0 = vmov 0   ;;  %s1903_s13 = sshll.u32 %s2404_s0, 4 }
  0x1d   : > { %654 = vmatprep.mubr.bf16.mxu0 %v2354_v0  ;;  %767 = vmatprep.mubr.bf16.mxu1 %v2354_v0  ;;  %s2421_s12 = sld [smem:[#allocation3 + %s2404_s0]]  ;;  %p341_p10 = scmp.lt.s32.totalorder %s1903_s13, 143 }
  0x1e   : > { %2121 = vset.pattern.permute.xlu0 %v2354_v0  ;;  %2122 = vset.pattern.permute.xlu1 %v2354_v0  ;;  %s359_s22 = sld [smem:[#allocation3 + %s2404_s0]] }
  0x1f   : > { %s3139_s13 = smov (!%p341_p10, %s1903_s13), 143 }
  0x20   : > { %s2448_s15 = sshll.u32 %s3139_s13, 3 }
  0x21   : > { %s2463_s21 = scalar_lea.vmem %s3117_s1, %s2448_s15  ;;  %s3081_s13 = scalar_lea.vmem %s3123_s7, %s2448_s15 }
  0x22   : > { %p353_p8 = scmp.lt.s32.totalorder %s352_s30, 7  ;;  %v384_v32 = vld [vmem:[%s2463_s21] sm:$0xff]  ;;  %v385_v33 = vld [vmem:[%s2463_s21 + $0x8] sm:$0xff]  ;;  %v386_v41 = vld [vmem:[%s2463_s21 + $0x10] sm:$0xff] }
  0x23   : > { %p366_p9 = scmp.lt.s32.totalorder %s2421_s12, 7  ;;  %v400_v37 = vpack.c.bf16 %v385_v33, %v384_v32  ;;  %v387_v42 = vld [vmem:[%s2463_s21 + $0x18] sm:$0xff]  ;;  %v388_v53 = vld [vmem:[%s2463_s21 + $0x20] sm:$0xff]  ;;  %v389_v54 = vld [vmem:[%s2463_s21 + $0x28] sm:$0xff] }
  0x24   : > { %s3135_s30 = smov (!%p353_p8, %s352_s30), 7  ;;  %v401_v48 = vpack.c.bf16 %v387_v42, %v386_v41  ;;  %v402_v59 = vpack.c.bf16 %v389_v54, %v388_v53  ;;  %v390_v62 = vld [vmem:[%s2463_s21 + $0x30] sm:$0xff]  ;;  %v391_v63 = vld [vmem:[%s2463_s21 + $0x38] sm:$0xff]  ;;  %p360_p11 = scmp.lt.s32.totalorder %s359_s22, 7 }
  0x25   : > { %s1981_s8 = sshll.u32 %s3135_s30, 8  ;;  %s3137_s12 = smov (!%p366_p9, %s2421_s12), 7 }
  0x26   : > { %s2416_s11 = scalar_lea.vmem %s3119_s3, %s1981_s8  ;;  %s1982_s14 = sshll.u32 %s3137_s12, 8 }
  0x27   : > { %v2123_v1 = vld [vmem:[%s2416_s11 + $0x4] ss:$16 sps:$4 sm:$0xff]   ;;  %v2125_v2 = vld [vmem:[%s2416_s11 + $0xc] ss:$16 sps:$4 sm:$0xff]   ;;  %v2127_v3 = vld [vmem:[%s2416_s11] ss:$16 sps:$4 sm:$0xff]   ;;  %s2453_s18 = scalar_lea.vmem %s3121_s5, %s1982_s14  ;;  %s2539_s30 = scalar_lea.vmem %s3118_s2, %s2448_s15 }
  0x28   : > { %622 = vmatprep.subr.bf16.mxu0 %v2123_v1  ;;  %v2128_v4 = vld [vmem:[%s2416_s11 + $0x8] ss:$16 sps:$4 sm:$0xff]   ;;  %735 = vmatprep.subr.bf16.mxu1 %v2125_v2  ;;  %v2129_v5 = vld [vmem:[%s2416_s11 + $0x24] ss:$16 sps:$4 sm:$0xff]   ;;  %v2131_v6 = vld [vmem:[%s2416_s11 + $0x2c] ss:$16 sps:$4 sm:$0xff]   ;;  %v403_v1 = vpack.c.bf16 %v391_v63, %v390_v62 }
  0x29   : > { %623 = vmatpush1.bf16.msra.mxu0 %v2127_v3  ;;  %736 = vmatpush1.bf16.msra.mxu1 %v2128_v4  ;;  %v2133_v7 = vld [vmem:[%s2416_s11 + $0x20] ss:$16 sps:$4 sm:$0xff]   ;;  %v2134_v8 = vld [vmem:[%s2416_s11 + $0x28] ss:$16 sps:$4 sm:$0xff]   ;;  %v2135_v9 = vld [vmem:[%s2416_s11 + $0x44] ss:$16 sps:$4 sm:$0xff]  }
  0x2a   : > { %624 = vmatprep.subr.bf16.mxu0 %v2129_v5  ;;  %737 = vmatprep.subr.bf16.mxu1 %v2131_v6  ;;  %v2137_v10 = vld [vmem:[%s2416_s11 + $0x4c] ss:$16 sps:$4 sm:$0xff]   ;;  %v2139_v11 = vld [vmem:[%s2416_s11 + $0x40] ss:$16 sps:$4 sm:$0xff]   ;;  %v2140_v12 = vld [vmem:[%s2416_s11 + $0x48] ss:$16 sps:$4 sm:$0xff]  }
  0x2b   : > { %v2141_v13 = vld [vmem:[%s2416_s11 + $0x64] ss:$16 sps:$4 sm:$0xff]   ;;  %v2143_v14 = vld [vmem:[%s2416_s11 + $0x6c] ss:$16 sps:$4 sm:$0xff]   ;;  %v2145_v15 = vld [vmem:[%s2416_s11 + $0x60] ss:$16 sps:$4 sm:$0xff]  }
  0x2c   : > { %v2146_v16 = vld [vmem:[%s2416_s11 + $0x68] ss:$16 sps:$4 sm:$0xff]   ;;  %v2147_v17 = vld [vmem:[%s2416_s11 + $0x84] ss:$16 sps:$4 sm:$0xff]   ;;  %v2149_v18 = vld [vmem:[%s2416_s11 + $0x8c] ss:$16 sps:$4 sm:$0xff]  }
  0x2d   : > { %625 = vmatpush1.bf16.msra.mxu0 %v2133_v7  ;;  %738 = vmatpush1.bf16.msra.mxu1 %v2134_v8  ;;  %v2151_v19 = vld [vmem:[%s2416_s11 + $0x80] ss:$16 sps:$4 sm:$0xff]   ;;  %v2152_v20 = vld [vmem:[%s2416_s11 + $0x88] ss:$16 sps:$4 sm:$0xff]   ;;  %v2153_v21 = vld [vmem:[%s2416_s11 + $0xa4] ss:$16 sps:$4 sm:$0xff]  }
  0x2e   : > { %626 = vmatprep.subr.bf16.mxu0 %v2135_v9  ;;  %739 = vmatprep.subr.bf16.mxu1 %v2137_v10  ;;  %v2155_v22 = vld [vmem:[%s2416_s11 + $0xac] ss:$16 sps:$4 sm:$0xff]   ;;  %v2157_v23 = vld [vmem:[%s2416_s11 + $0xa0] ss:$16 sps:$4 sm:$0xff]   ;;  %v2158_v24 = vld [vmem:[%s2416_s11 + $0xa8] ss:$16 sps:$4 sm:$0xff]  }
  0x2f   : > { %v2159_v25 = vld [vmem:[%s2416_s11 + $0xc4] ss:$16 sps:$4 sm:$0xff]   ;;  %v2161_v26 = vld [vmem:[%s2416_s11 + $0xcc] ss:$16 sps:$4 sm:$0xff]   ;;  %v2163_v27 = vld [vmem:[%s2416_s11 + $0xc0] ss:$16 sps:$4 sm:$0xff]  }
  0x30   : > { %v2164_v28 = vld [vmem:[%s2416_s11 + $0xc8] ss:$16 sps:$4 sm:$0xff]   ;;  %v2165_v29 = vld [vmem:[%s2416_s11 + $0xe4] ss:$16 sps:$4 sm:$0xff]   ;;  %v2167_v30 = vld [vmem:[%s2416_s11 + $0xec] ss:$16 sps:$4 sm:$0xff]  }
  0x31   : > { %627 = vmatpush1.bf16.msra.mxu0 %v2139_v11  ;;  %740 = vmatpush1.bf16.msra.mxu1 %v2140_v12  ;;  %v2169_v31 = vld [vmem:[%s2416_s11 + $0xe0] ss:$16 sps:$4 sm:$0xff]   ;;  %v2170_v34 = vld [vmem:[%s2416_s11 + $0xe8] ss:$16 sps:$4 sm:$0xff]   ;;  %s3141_s22 = smov (!%p360_p11, %s359_s22), 7  ;;  %s372_s8 = sld [smem:[#allocation3 + %s2404_s0]] }
  0x32   : > { %628 = vmatprep.subr.bf16.mxu0 %v2141_v13  ;;  %741 = vmatprep.subr.bf16.mxu1 %v2143_v14  ;;  %v2171_v35 = vld [vmem:[%s2453_s18 + $0x40] sm:$0xff]   ;;  %v2175_v40 = vld [vmem:[%s2453_s18 + $0x48] sm:$0xff]   ;;  %v2179_v46 = vld [vmem:[%s2453_s18 + $0x50] sm:$0xff]   ;;  %s1909_s23 = sshll.u32 %s3141_s22, 2 }
  0x33   : > { %v2173_v36 = vld [vmem:[%s2453_s18 + $0xc0] sm:$0xff]   ;;  %v2177_v43 = vld [vmem:[%s2453_s18 + $0xc8] sm:$0xff]   ;;  %v2181_v47 = vld [vmem:[%s2453_s18 + $0xd0] sm:$0xff]   ;;  %s363_s26 = scalar_lea.vmem %s3120_s4, %s1909_s23 }
  0x34   : > { %v2172_v38 = vld [vmem:[%s2453_s18] sm:$0xff]   ;;  %v2176_v44 = vld [vmem:[%s2453_s18 + $0x8] sm:$0xff]   ;;  %v2180_v49 = vld [vmem:[%s2453_s18 + $0x10] sm:$0xff]  }
  0x35   : > { %629 = vmatpush1.bf16.msra.mxu0 %v2145_v15  ;;  %742 = vmatpush1.bf16.msra.mxu1 %v2146_v16  ;;  %v2174_v39 = vld [vmem:[%s2453_s18 + $0x80] sm:$0xff]   ;;  %v2178_v45 = vld [vmem:[%s2453_s18 + $0x88] sm:$0xff]   ;;  %v2182_v50 = vld [vmem:[%s2453_s18 + $0x90] sm:$0xff]  }
  0x36   : > { %630 = vmatprep.subr.bf16.mxu0 %v2147_v17  ;;  %743 = vmatprep.subr.bf16.mxu1 %v2149_v18  ;;  %v2183_v51 = vld [vmem:[%s2453_s18 + $0x58] sm:$0xff]   ;;  %v2187_v57 = vld [vmem:[%s2453_s18 + $0x60] sm:$0xff]   ;;  %v393_v3 = vld [vmem:[%s2463_s21 + $0x48] sm:$0xff] }
  0x37   : > { %v2185_v52 = vld [vmem:[%s2453_s18 + $0xd8] sm:$0xff]   ;;  %v2189_v58 = vld [vmem:[%s2453_s18 + $0xe0] sm:$0xff]   ;;  %v394_v5 = vld [vmem:[%s2463_s21 + $0x50] sm:$0xff]  ;;  %p373_p12 = scmp.lt.s32.totalorder %s372_s8, 7 }
  0x38   : > { %v2184_v55 = vld [vmem:[%s2453_s18 + $0x18] sm:$0xff]   ;;  %v2188_v60 = vld [vmem:[%s2453_s18 + $0x20] sm:$0xff]   ;;  %v397_v9 = vld [vmem:[%s2463_s21 + $0x68] sm:$0xff] }
  0x39   : > { %631 = vmatpush1.bf16.msra.mxu0 %v2151_v19  ;;  %744 = vmatpush1.bf16.msra.mxu1 %v2152_v20  ;;  %v2186_v56 = vld [vmem:[%s2453_s18 + $0x98] sm:$0xff]   ;;  %v2190_v61 = vld [vmem:[%s2453_s18 + $0xa0] sm:$0xff]   ;;  %v398_v11 = vld [vmem:[%s2463_s21 + $0x70] sm:$0xff]  ;;  %s3143_s8 = smov (!%p373_p12, %s372_s8), 7 }
  0x3a   : > { %632 = vmatprep.subr.bf16.mxu0 %v2153_v21  ;;  %745 = vmatprep.subr.bf16.mxu1 %v2155_v22  ;;  %v392_v2 = vld [vmem:[%s2463_s21 + $0x40] sm:$0xff]  ;;  %v395_v6 = vld [vmem:[%s2463_s21 + $0x58] sm:$0xff]  ;;  %v2191_v14 = vld [vmem:[%s2453_s18 + $0x68] sm:$0xff]   ;;  %s375_s11 = scalar_lea.vmem %s3122_s6, %s3143_s8 }
  0x3b   : > { %v404_v4 = vpack.c.bf16 %v393_v3, %v392_v2  ;;  %v405_v7 = vpack.c.bf16 %v395_v6, %v394_v5  ;;  %v396_v8 = vld [vmem:[%s2463_s21 + $0x60] sm:$0xff]  ;;  %v399_v12 = vld [vmem:[%s2463_s21 + $0x78] sm:$0xff]  ;;  %v2192_v15 = vld [vmem:[%s2453_s18 + $0x28] sm:$0xff]  }
  0x3c   : > { %v406_v10 = vpack.c.bf16 %v397_v9, %v396_v8  ;;  %v407_v13 = vpack.c.bf16 %v399_v12, %v398_v11  ;;  %v2193_v16 = vld [vmem:[%s2453_s18 + $0xe8] sm:$0xff]   ;;  %v2196_v18 = vld [vmem:[%s2453_s18 + $0x30] sm:$0xff]   ;;  %v2199_v21 = vld [vmem:[%s2453_s18 + $0x78] sm:$0xff]  }
  0x3d   : > { %633 = vmatpush1.bf16.msra.mxu0 %v2157_v23  ;;  %746 = vmatpush1.bf16.msra.mxu1 %v2158_v24  ;;  %v2194_v17 = vld [vmem:[%s2453_s18 + $0xa8] sm:$0xff]   ;;  %v2197_v19 = vld [vmem:[%s2453_s18 + $0xf0] sm:$0xff]   ;;  %v2200_v22 = vld [vmem:[%s2453_s18 + $0x38] sm:$0xff]  }
  0x3e   : > { %634 = vmatprep.subr.bf16.mxu0 %v2159_v25  ;;  %747 = vmatprep.subr.bf16.mxu1 %v2161_v26  ;;  %v2198_v20 = vld [vmem:[%s2453_s18 + $0xb0] sm:$0xff]   ;;  %v2201_v23 = vld [vmem:[%s2453_s18 + $0xf8] sm:$0xff]   ;;  %v442_v25 = vlaneseq  ;;  %v1657_v32 = vld [vmem:[%s2539_s30] sm:$0xff] }
  0x3f   : > { %v2202_v24 = vld [vmem:[%s2453_s18 + $0xb8] sm:$0xff]   ;;  %v1659_v33 = vld [vmem:[%s2539_s30 + $0x10] sm:$0xff]  ;;  %1675 = vperm.xlu0 %2121, %v1657_v32   ;;  %v1666_v9 = vld [vmem:[%s2539_s30 + $0x48] sm:$0xff] }
  0x40   : > { %v443_v26 = vshrl.u32 %v442_v25, 7  ;;  %1685 = vperm.xlu1 %2122, %v1659_v33   ;;  %v1670_v33 = vld [vmem:[%s2539_s30 + $0x68] sm:$0xff] }
  0x41   : > { %635 = vmatpush1.bf16.msra.mxu0 %v2163_v27  ;;  %748 = vmatpush1.bf16.msra.mxu1 %v2164_v28 }
  0x42   : > { %636 = vmatprep.subr.bf16.mxu0 %v2165_v29  ;;  %749 = vmatprep.subr.bf16.mxu1 %v2167_v30  ;;  %v444_v27 = vsub.s32 0, %v443_v26  ;;  %v452_v28 = vsub.s32 2, %v443_v26  ;;  %v440_v29 = vld [vmem:[%s363_s26] sm:$0xf]  ;;  %v448_v30 = vsub.s32 1, %v443_v26 }
  0x45   : > { %637 = vmatpush1.bf16.msra.mxu0 %v2169_v31  ;;  %750 = vmatpush1.bf16.msra.mxu1 %v2170_v34  ;;  %v456_v31 = vsub.s32 3, %v443_v26  ;;  %v2543_v34 = vrot.slane %v440_v29, %v444_v27 }
  0x46   : > { %1983 = vmatprep.subr.bf16.mxu0 %v2171_v35  ;;  %2047 = vmatprep.subr.bf16.mxu1 %v2173_v36  ;;  %v2545_v35 = vrot.slane %v440_v29, %v452_v28  ;;  %v1658_v36 = vld [vmem:[%s2539_s30 + $0x8] sm:$0xff] }
  0x47   : > { %1680 = vperm.xlu0 %2121, %v1658_v36  }
  0x48   : > { %655 = vmatmul.mubr.bf16.vlgmr.msra.gmra.mrb[0].mxu0 %v400_v37  ;;  %768 = vmatmul.mubr.bf16.vlgmr.msra.gmra.mrb[0].mxu1 %v400_v37  ;;  %v1660_v37 = vld [vmem:[%s2539_s30 + $0x18] sm:$0xff] }
  0x49   : > { %664 = vmatprep.mubr.bf16.mxu0 %v2354_v0  ;;  %777 = vmatprep.mubr.bf16.mxu1 %v2354_v0 }
  0x4a   : > { %1984 = vmatpush3.bf16.msra.mxu0 %v2172_v38  ;;  %2048 = vmatpush3.bf16.msra.mxu1 %v2174_v39  ;;  %v2549_v38 = vrot.slane %v440_v29, %v448_v30  ;;  %v2551_v39 = vrot.slane %v440_v29, %v456_v31 }
  0x4b   : > { %1985 = vmatprep.subr.bf16.mxu0 %v2175_v40  ;;  %2049 = vmatprep.subr.bf16.mxu1 %v2177_v43 }
  0x4c   : > { %1690 = vperm.xlu1 %2122, %v1660_v37  }
  0x4e   : > { %1986 = vmatpush3.bf16.msra.mxu0 %v2176_v44  ;;  %2050 = vmatpush3.bf16.msra.mxu1 %v2178_v45 }
  0x4f   : > { %1987 = vmatprep.subr.bf16.mxu0 %v2179_v46  ;;  %2051 = vmatprep.subr.bf16.mxu1 %v2181_v47  ;;  %v1662_v46 = vld [vmem:[%s2539_s30 + $0x28] sm:$0xff]  ;;  %v1661_v47 = vld [vmem:[%s2539_s30 + $0x20] sm:$0xff] }
  0x50   : > { %665 = vmatmul.mubr.bf16.gmra.mrb[4].mxu0 %v401_v48  ;;  %778 = vmatmul.mubr.bf16.gmra.mrb[4].mxu1 %v401_v48 }
  0x51   : > { %674 = vmatprep.mubr.bf16.mxu0 %v2354_v0  ;;  %787 = vmatprep.mubr.bf16.mxu1 %v2354_v0 }
  0x52   : > { %1988 = vmatpush3.bf16.msra.mxu0 %v2180_v49  ;;  %2052 = vmatpush3.bf16.msra.mxu1 %v2182_v50 }
  0x53   : > { %1989 = vmatprep.subr.bf16.mxu0 %v2183_v51  ;;  %2053 = vmatprep.subr.bf16.mxu1 %v2185_v52 }
  0x54   : > { %1700 = vperm.xlu1 %2122, %v1662_v46   ;;  %1695 = vperm.xlu0 %2121, %v1661_v47  }
  0x56   : > { %1990 = vmatpush3.bf16.msra.mxu0 %v2184_v55  ;;  %2054 = vmatpush3.bf16.msra.mxu1 %v2186_v56 }
  0x57   : > { %1991 = vmatprep.subr.bf16.mxu0 %v2187_v57  ;;  %2055 = vmatprep.subr.bf16.mxu1 %v2189_v58 }
  0x58   : > { %675 = vmatmul.mubr.bf16.gmra.mrb[8].mxu0 %v402_v59  ;;  %788 = vmatmul.mubr.bf16.gmra.mrb[8].mxu1 %v402_v59 }
  0x59   : > { %684 = vmatprep.mubr.bf16.mxu0 %v2354_v0  ;;  %797 = vmatprep.mubr.bf16.mxu1 %v2354_v0 }
  0x5a   : > { %1992 = vmatpush3.bf16.msra.mxu0 %v2188_v60  ;;  %2056 = vmatpush3.bf16.msra.mxu1 %v2190_v61  ;;  %v1664_v60 = vld [vmem:[%s2539_s30 + $0x38] sm:$0xff]  ;;  %v1663_v61 = vld [vmem:[%s2539_s30 + $0x30] sm:$0xff] }
  0x5b   : > { %1993 = vmatprep.subr.bf16.mxu0 %v2191_v14  ;;  %2057 = vmatprep.subr.bf16.mxu1 %v2193_v16 }
  0x5c   : > { %1710 = vperm.xlu1 %2122, %v1664_v60   ;;  %1705 = vperm.xlu0 %2121, %v1663_v61  }
  0x5e   : > { %1994 = vmatpush3.bf16.msra.mxu0 %v2192_v15  ;;  %2058 = vmatpush3.bf16.msra.mxu1 %v2194_v17 }
  0x5f   : > { %2059 = vmatprep.subr.bf16.mxu1 %v2197_v19 }
  0x60   : > { %685 = vmatmul.mubr.bf16.gmra.mrb[12].mxu0 %v403_v1  ;;  %798 = vmatmul.mubr.bf16.gmra.mrb[12].mxu1 %v403_v1 }
  0x61   : > { %694 = vmatprep.mubr.bf16.mxu0 %v2354_v0  ;;  %807 = vmatprep.mubr.bf16.mxu1 %v2354_v0 }
  0x62   : > { %2060 = vmatpush3.bf16.msra.mxu1 %v2198_v20  ;;  %1720 = vperm.xlu1 %2122, %v1666_v9   ;;  %v1668_v20 = vld [vmem:[%s2539_s30 + $0x58] sm:$0xff] }
  0x63   : > { %2061 = vmatprep.subr.bf16.mxu1 %v2201_v23 }
  0x66   : > { %2062 = vmatpush3.bf16.msra.mxu1 %v2202_v24  ;;  %v1667_v24 = vld [vmem:[%s2539_s30 + $0x50] sm:$0xff]  ;;  %1730 = vperm.xlu1 %2122, %v1668_v20  }
  0x68   : > { %695 = vmatmul.mubr.bf16.gmra.mrb[16].mxu0 %v404_v4  ;;  %808 = vmatmul.mubr.bf16.gmra.mrb[16].mxu1 %v404_v4 }
  0x69   : > { %704 = vmatprep.mubr.bf16.mxu0 %v2354_v0  ;;  %817 = vmatprep.mubr.bf16.mxu1 %v2354_v0 }
  0x6a   : > { %1740 = vperm.xlu1 %2122, %v1670_v33  }
  0x70   : > { %705 = vmatmul.mubr.bf16.gmra.mrb[20].mxu0 %v405_v7  ;;  %818 = vmatmul.mubr.bf16.gmra.mrb[20].mxu1 %v405_v7 }
  0x71   : > { %714 = vmatprep.mubr.bf16.mxu0 %v2354_v0  ;;  %827 = vmatprep.mubr.bf16.mxu1 %v2354_v0 }
  0x78   : > { %715 = vmatmul.mubr.bf16.gmra.mrb[24].mxu0 %v406_v10  ;;  %828 = vmatmul.mubr.bf16.gmra.mrb[24].mxu1 %v406_v10  ;;  %v1665_v10 = vld [vmem:[%s2539_s30 + $0x40] sm:$0xff] }
  0x79   : > { %724 = vmatprep.mubr.bf16.mxu0 %v2354_v0  ;;  %837 = vmatprep.mubr.bf16.mxu1 %v2354_v0  ;;  %v2195_v0 = vld [vmem:[%s2453_s18 + $0x70] sm:$0xff]  }
  0x7a   : > { %1995 = vmatprep.subr.bf16.mxu0 %v2195_v0  ;;  %1715 = vperm.xlu0 %2121, %v1665_v10   ;;  %v1672_v10 = vld [vmem:[%s2539_s30 + $0x78] sm:$0xff] }
  0x7b   : > { %1996 = vmatpush3.bf16.msra.mxu0 %v2196_v18  ;;  %1750 = vperm.xlu1 %2122, %v1672_v10  }
  0x7c   : > { %1997 = vmatprep.subr.bf16.mxu0 %v2199_v21 }
  0x7e   : > { %1725 = vperm.xlu0 %2121, %v1667_v24  }
  0x7f   : > { %1998 = vmatpush3.bf16.msra.mxu0 %v2200_v22 }
  0x80   : > { %725 = vmatmul.mubr.bf16.gmra.mrb[28].mxu0 %v407_v13  ;;  %838 = vmatmul.mubr.bf16.gmra.mrb[28].mxu1 %v407_v13 }
 0x11b   : > { %v656_v40 = vpop.f32.mrb[0].mxu0  ;;  %v769_v41 = vpop.f32.mrb[0].mxu1 }
 0x11c   : > { %v657_v42 = vadd.f32 %v656_v40, %v2543_v34  ;;  %v2555_v43 = vadd.f32 %v769_v41, %v2545_v35  ;;  %v658_v44 = vpop.f32.mrb[1].mxu0  ;;  %v771_v45 = vpop.f32.mrb[1].mxu1 }
 0x11d   : > { %v659_v48 = vadd.f32 %v658_v44, %v2549_v38  ;;  %v772_v49 = vadd.f32 %v771_v45, %v2551_v39  ;;  %v660_v50 = vpop.f32.mrb[2].mxu0  ;;  %v773_v51 = vpop.f32.mrb[2].mxu1 }
 0x11e   : > { %v912_v52 = vmul.f32 0.70710677, %v657_v42  ;;  %v914_v53 = vmul.f32 0.70710677, %v2555_v43  ;;  %v661_v56 = vadd.f32 %v660_v50, %v2543_v34  ;;  %v774_v57 = vadd.f32 %v773_v51, %v2545_v35  ;;  %v662_v58 = vpop.f32.mrb[3].mxu0  ;;  %v775_v59 = vpop.f32.mrb[3].mxu1 }
 0x11f   : > { %v913_v54 = vmul.f32 0.70710677, %v659_v48  ;;  %v915_v55 = vmul.f32 0.70710677, %v772_v49  ;;  %v663_v62 = vadd.f32 %v662_v58, %v2549_v38  ;;  %v776_v63 = vadd.f32 %v775_v59, %v2551_v39  ;;  %v1669_v50 = vld [vmem:[%s2539_s30 + $0x60] sm:$0xff] }
 0x120   : > { %2203 = verf.f32 %v912_v52  ;;  %v916_v1 = vmul.f32 0.70710677, %v661_v56  ;;  %v918_v2 = vmul.f32 0.70710677, %v774_v57  ;;  %v848_v21 = vmul.f32 0.5, %v657_v42  ;;  %1735 = vperm.xlu0 %2121, %v1669_v50  }
 0x121   : > { %2205 = verf.f32 %v914_v53  ;;  %v917_v3 = vmul.f32 0.70710677, %v663_v62  ;;  %v919_v5 = vmul.f32 0.70710677, %v776_v63  ;;  %v850_v29 = vmul.f32 0.5, %v2555_v43 }
 0x122   : > { %2207 = verf.f32 %v913_v54  ;;  %v2584_v30 = vmul.f32 0.5, %v659_v48  ;;  %v2586_v31 = vmul.f32 0.5, %v772_v49  ;;  %v852_v32 = vmul.f32 0.5, %v661_v56 }
 0x123   : > { %2209 = verf.f32 %v915_v55  ;;  %v666_v4 = vpop.f32.mrb[4].mxu0  ;;  %v779_v7 = vpop.f32.mrb[4].mxu1  ;;  %v854_v40 = vmul.f32 0.5, %v774_v57  ;;  %v2589_v46 = vmul.f32 0.5, %v663_v62  ;;  %v2591_v43 = vmul.f32 0.5, %v776_v63 }
 0x124   : > { %2211 = verf.f32 %v916_v1  ;;  %v667_v6 = vadd.f32 %v666_v4, %v2543_v34  ;;  %v668_v8 = vpop.f32.mrb[5].mxu0  ;;  %v780_v11 = vadd.f32 %v779_v7, %v2545_v35  ;;  %v781_v13 = vpop.f32.mrb[5].mxu1 }
 0x125   : > { %2213 = verf.f32 %v918_v2  ;;  %v669_v12 = vadd.f32 %v668_v8, %v2549_v38  ;;  %v670_v14 = vpop.f32.mrb[6].mxu0  ;;  %v782_v16 = vadd.f32 %v781_v13, %v2551_v39  ;;  %v783_v17 = vpop.f32.mrb[6].mxu1 }
 0x126   : > { %2215 = verf.f32 %v917_v3  ;;  %v920_v15 = vmul.f32 0.70710677, %v667_v6  ;;  %v672_v0 = vpop.f32.mrb[7].mxu0  ;;  %v922_v18 = vmul.f32 0.70710677, %v780_v11  ;;  %v785_v19 = vpop.f32.mrb[7].mxu1  ;;  %v671_v25 = vadd.f32 %v670_v14, %v2543_v34 }
 0x127   : > { %2217 = verf.f32 %v919_v5  ;;  %v921_v22 = vmul.f32 0.70710677, %v669_v12  ;;  %v923_v23 = vmul.f32 0.70710677, %v782_v16  ;;  %v2578_v26 = vadd.f32 %v783_v17, %v2545_v35 }
 0x128   : > { %2219 = verf.f32 %v920_v15  ;;  %v2581_v27 = vadd.f32 %v672_v0, %v2549_v38  ;;  %v924_v41 = vmul.f32 0.70710677, %v671_v25  ;;  %v786_v48 = vadd.f32 %v785_v19, %v2551_v39 }
 0x129   : > { %2221 = verf.f32 %v922_v18  ;;  %v926_v47 = vmul.f32 0.70710677, %v2578_v26  ;;  %v2596_v53 = vmul.f32 0.5, %v667_v6  ;;  %v2601_v58 = vmul.f32 0.5, %v780_v11  ;;  %v1671_v11 = vld [vmem:[%s2539_s30 + $0x70] sm:$0xff] }
 0x12a   : > { %v2204_v28 = vpop.eup %2203  ;;  %2223 = verf.f32 %v921_v22  ;;  %v925_v54 = vmul.f32 0.70710677, %v2581_v27  ;;  %v2603_v59 = vmul.f32 0.5, %v669_v12  ;;  %v2605_v60 = vmul.f32 0.5, %v782_v16  ;;  %1745 = vperm.xlu0 %2121, %v1671_v11  }
 0x12b   : > { %v2206_v36 = vpop.eup %2205  ;;  %v1040_v37 = vadd.f32 1.0, %v2204_v28  ;;  %v676_v42 = vpop.f32.mrb[8].mxu0  ;;  %2225 = verf.f32 %v923_v23  ;;  %v2611_v4 = vmul.f32 0.5, %v671_v25  ;;  %v927_v8 = vmul.f32 0.70710677, %v786_v48 }
 0x12c   : > { %v789_v44 = vpop.f32.mrb[8].mxu1  ;;  %v2208_v45 = vpop.eup %2207  ;;  %v1042_v52 = vadd.f32 1.0, %v2206_v36  ;;  %2227 = verf.f32 %v924_v41  ;;  %v677_v9 = vadd.f32 %v676_v42, %v2543_v34  ;;  %v2629_v22 = vmul.f32 0.5, %v2578_v26 }
 0x12d   : > { %v678_v49 = vpop.f32.mrb[9].mxu0  ;;  %v2210_v51 = vpop.eup %2209  ;;  %v2609_v1 = vmul.f32 %v1040_v37, %v848_v21  ;;  %v1041_v2 = vadd.f32 1.0, %v2208_v45  ;;  %2229 = verf.f32 %v926_v47  ;;  %v790_v15 = vadd.f32 %v789_v44, %v2545_v35 }
 0x12e   : > { %v791_v55 = vpop.f32.mrb[9].mxu1  ;;  %v2599_v56 = vpop.f32.mrb[10].mxu0  ;;  %v2618_v13 = vmul.f32 %v1042_v52, %v850_v29  ;;  %2231 = verf.f32 %v925_v54  ;;  %v1043_v17 = vadd.f32 1.0, %v2210_v51  ;;  %v928_v18 = vmul.f32 0.70710677, %v677_v9 }
 0x12f   : > { %v2212_v57 = vpop.eup %2211  ;;  %v793_v61 = vpop.f32.mrb[10].mxu1  ;;  %v679_v19 = vadd.f32 %v678_v49, %v2549_v38  ;;  %v2632_v23 = vmul.f32 0.5, %v2581_v27  ;;  %v2634_v24 = vmul.f32 0.5, %v786_v48  ;;  %v2639_v29 = vmul.f32 %v1041_v2, %v2584_v30 }
 0x130   : > { %v2607_v62 = vpop.f32.mrb[11].mxu0  ;;  %v2214_v63 = vpop.eup %2213  ;;  %v1044_v3 = vadd.f32 1.0, %v2212_v57  ;;  %2233 = verf.f32 %v927_v8  ;;  %v930_v41 = vmul.f32 0.70710677, %v790_v15  ;;  %v2652_v30 = vmul.f32 %v1043_v17, %v2586_v31 }
 0x131   : > { %v2613_v5 = vpop.f32.mrb[11].mxu1  ;;  %v2216_v6 = vpop.eup %2215  ;;  %v1046_v7 = vadd.f32 1.0, %v2214_v63  ;;  %2235 = verf.f32 %v928_v18  ;;  %v929_v47 = vmul.f32 0.70710677, %v679_v19  ;;  %v792_v48 = vadd.f32 %v791_v55, %v2551_v39 }
 0x132   : > { %v2218_v12 = vpop.eup %2217  ;;  %v2620_v14 = vmul.f32 %v1044_v3, %v852_v32  ;;  %v1045_v33 = vadd.f32 1.0, %v2216_v6  ;;  %v2659_v52 = vmul.f32 0.5, %v677_v9  ;;  %2237 = verf.f32 %v930_v41 }
 0x133   : > { %v2220_v16 = vpop.eup %2219  ;;  %v2623_v0 = vmul.f32 %v1046_v7, %v854_v40  ;;  %v686_v25 = vpop.f32.mrb[12].mxu0  ;;  %v1047_v37 = vadd.f32 1.0, %v2218_v12  ;;  %v681_v54 = vadd.f32 %v2599_v56, %v2543_v34  ;;  %v794_v57 = vadd.f32 %v793_v61, %v2545_v35 }
 0x134   : > { %v2222_v20 = vpop.eup %2221  ;;  %v1168_v21 = vpack.c.bf16 %v2620_v14, %v2609_v1  ;;  %v2636_v28 = vpop.f32.mrb[12].mxu1  ;;  %v1048_v40 = vadd.f32 1.0, %v2220_v16  ;;  %v1109_v31 = vmul.f32 %v1045_v33, %v2589_v46  ;;  %v2665_v3 = vmul.f32 0.5, %v790_v15 }
 0x135   : > { %v1170_v32 = vpack.c.bf16 %v2623_v0, %v2618_v13  ;;  %v2643_v26 = vpop.f32.mrb[13].mxu0  ;;  %v2645_v36 = vpop.f32.mrb[13].mxu1  ;;  %v1050_v45 = vadd.f32 1.0, %v2222_v20  ;;  %2239 = verf.f32 %v929_v47  ;;  %v1111_v55 = vmul.f32 %v1047_v37, %v2591_v43 }
 0x136   : > { %v2224_v27 = vpop.eup %2223  ;;  %v2647_v42 = vpop.f32.mrb[14].mxu0  ;;  %v2669_v6 = vmul.f32 %v1048_v40, %v2596_v53  ;;  %v931_v7 = vmul.f32 0.70710677, %v792_v48  ;;  %v932_v8 = vmul.f32 0.70710677, %v681_v54  ;;  %v2674_v61 = vmul.f32 0.5, %v679_v19 }
 0x137   : > { %v2649_v44 = vpop.f32.mrb[14].mxu1  ;;  %v2655_v49 = vpop.f32.mrb[15].mxu0  ;;  %v1049_v2 = vadd.f32 1.0, %v2224_v27  ;;  %v2672_v10 = vmul.f32 %v1050_v45, %v2601_v58  ;;  %v934_v11 = vmul.f32 0.70710677, %v794_v57  ;;  %v683_v15 = vadd.f32 %v2607_v62, %v2549_v38 }
 0x138   : > { %v2657_v50 = vpop.f32.mrb[15].mxu1  ;;  %v2226_v51 = vpop.eup %2225  ;;  %2241 = verf.f32 %v931_v7  ;;  %v796_v43 = vadd.f32 %v2613_v5, %v2551_v39  ;;  %v2687_v17 = vmul.f32 0.5, %v792_v48  ;;  %v687_v18 = vadd.f32 %v686_v25, %v2543_v34 }
 0x139   : > { %v2228_v63 = vpop.eup %2227  ;;  %v1051_v56 = vadd.f32 1.0, %v2226_v51  ;;  %v2685_v58 = vmul.f32 %v1049_v2, %v2603_v59  ;;  %2243 = verf.f32 %v932_v8  ;;  %v2694_v33 = vmul.f32 0.5, %v681_v54 }
 0x13a   : > { %v2230_v9 = vpop.eup %2229  ;;  %v1052_v12 = vadd.f32 1.0, %v2228_v63  ;;  %2245 = verf.f32 %v934_v11  ;;  %v933_v5 = vmul.f32 0.70710677, %v683_v15  ;;  %v935_v45 = vmul.f32 0.70710677, %v796_v43 }
 0x13b   : > { %v2232_v46 = vpop.eup %2231  ;;  %v2680_v53 = vpop.f32.mrb[16].mxu0  ;;  %v1054_v62 = vadd.f32 1.0, %v2230_v9  ;;  %v2701_v40 = vmul.f32 %v1051_v56, %v2605_v60  ;;  %v936_v25 = vmul.f32 0.70710677, %v687_v18  ;;  %v800_v54 = vadd.f32 %v2636_v28, %v2545_v35 }
 0x13c   : > { %v2682_v16 = vpop.f32.mrb[16].mxu1  ;;  %v2690_v19 = vpop.f32.mrb[17].mxu0  ;;  %v1053_v41 = vadd.f32 1.0, %v2232_v46  ;;  %v2706_v51 = vmul.f32 %v1052_v12, %v2611_v4  ;;  %2247 = verf.f32 %v933_v5  ;;  %v689_v63 = vadd.f32 %v2643_v26, %v2549_v38 }
 0x13d   : > { %v2692_v20 = vpop.f32.mrb[17].mxu1  ;;  %v2696_v27 = vpop.f32.mrb[18].mxu0  ;;  %2249 = verf.f32 %v935_v45  ;;  %v802_v60 = vadd.f32 %v2645_v36, %v2551_v39  ;;  %v1169_v7 = vpack.c.bf16 %v1109_v31, %v2639_v29  ;;  %v1171_v8 = vpack.c.bf16 %v1111_v55, %v2652_v30 }
 0x13e   : > { %v2698_v37 = vpop.f32.mrb[18].mxu1  ;;  %v2234_v59 = vpop.eup %2233  ;;  %v2719_v4 = vmul.f32 %v1054_v62, %v2629_v22  ;;  %v2721_v11 = vmul.f32 0.5, %v794_v57  ;;  %v938_v28 = vmul.f32 0.70710677, %v800_v54  ;;  %v2724_v26 = vmul.f32 %v1053_v41, %v2632_v23 }
 0x13f   : > { %v2703_v47 = vpop.f32.mrb[19].mxu0  ;;  %v2236_v48 = vpop.eup %2235  ;;  %v1055_v56 = vadd.f32 1.0, %v2234_v59  ;;  %2251 = verf.f32 %v936_v25  ;;  %v937_v5 = vmul.f32 0.70710677, %v689_v63  ;;  %1495 = vmatprep.mubr.bf16.mxu0 %v1169_v7  ;;  %1592 = vmatprep.mubr.bf16.mxu1 %v1171_v8  ;;  %v2726_v29 = vmul.f32 0.5, %v683_v15 }
 0x140   : > { %v2712_v2 = vpop.f32.mrb[19].mxu1  ;;  %v2238_v9 = vpop.eup %2237  ;;  %v1056_v12 = vadd.f32 1.0, %v2236_v48  ;;  %v2728_v36 = vmul.f32 0.5, %v796_v43  ;;  %v939_v30 = vmul.f32 0.70710677, %v802_v60  ;;  %v691_v22 = vadd.f32 %v2647_v42, %v2543_v34  ;;  %1496 = vmatmul.mubr.bf16.vlgmr.msra.gmra.mrb[32].mxu0 %v1168_v21  ;;  %1593 = vmatmul.mubr.bf16.vlgmr.msra.gmra.mrb[32].mxu1 %v1170_v32 }
 0x141   : > { %v2240_v46 = vpop.eup %2239  ;;  %v1058_v31 = vadd.f32 1.0, %v2238_v9  ;;  %2253 = verf.f32 %v938_v28  ;;  %v804_v55 = vadd.f32 %v2649_v44, %v2545_v35  ;;  %v693_v42 = vadd.f32 %v2655_v49, %v2549_v38 }
 0x142   : > { %v2242_v14 = vpop.eup %2241  ;;  %v2751_v13 = vmul.f32 %v1055_v56, %v2634_v24  ;;  %v1057_v0 = vadd.f32 1.0, %v2240_v46  ;;  %2255 = verf.f32 %v937_v5  ;;  %v940_v21 = vmul.f32 0.70710677, %v691_v22 }
 0x143   : > { %v2738_v23 = vpop.f32.mrb[20].mxu0  ;;  %v2740_v57 = vpop.f32.mrb[20].mxu1  ;;  %v2758_v44 = vmul.f32 %v1056_v12, %v2659_v52  ;;  %v2760_v49 = vmul.f32 0.5, %v687_v18  ;;  %2257 = verf.f32 %v939_v30  ;;  %v942_v59 = vmul.f32 0.70710677, %v804_v55 }
 0x144   : > { %v2746_v15 = vpop.f32.mrb[21].mxu0  ;;  %v2748_v1 = vpop.f32.mrb[21].mxu1  ;;  %v2764_v24 = vmul.f32 0.5, %v800_v54  ;;  %v2766_v25 = vmul.f32 0.5, %v689_v63  ;;  %v941_v48 = vmul.f32 0.70710677, %v693_v42  ;;  %v806_v7 = vadd.f32 %v2657_v50, %v2551_v39 }
 0x145   : > { %v2753_v32 = vpop.f32.mrb[22].mxu0  ;;  %v2755_v43 = vpop.f32.mrb[22].mxu1  ;;  %v2773_v52 = vmul.f32 %v1058_v31, %v2665_v3  ;;  %v2775_v18 = vmul.f32 0.5, %v802_v60  ;;  %2259 = verf.f32 %v940_v21  ;;  %v697_v9 = vadd.f32 %v2680_v53, %v2543_v34 }
 0x146   : > { %v2244_v62 = vpop.eup %2243  ;;  %v2762_v41 = vpop.f32.mrb[23].mxu0  ;;  %v2780_v54 = vmul.f32 %v1057_v0, %v2674_v61  ;;  %v1059_v63 = vadd.f32 1.0, %v2242_v14  ;;  %2261 = verf.f32 %v942_v59  ;;  %v943_v28 = vmul.f32 0.70710677, %v806_v7 }
 0x147   : > { %v2246_v45 = vpop.eup %2245  ;;  %v2770_v8 = vpop.f32.mrb[23].mxu1  ;;  %v1060_v50 = vadd.f32 1.0, %v2244_v62  ;;  %2263 = verf.f32 %v941_v48  ;;  %v944_v5 = vmul.f32 0.70710677, %v697_v9  ;;  %v810_v60 = vadd.f32 %v2682_v16, %v2545_v35 }
 0x148   : > { %v2248_v56 = vpop.eup %2247  ;;  %v1062_v12 = vadd.f32 1.0, %v2246_v45  ;;  %2265 = verf.f32 %v943_v28  ;;  %v699_v53 = vadd.f32 %v2690_v19, %v2549_v38  ;;  %v2790_v0 = vmul.f32 0.5, %v691_v22 }
 0x149   : > { %v2250_v46 = vpop.eup %2249  ;;  %v1061_v3 = vadd.f32 1.0, %v2248_v56  ;;  %2267 = verf.f32 %v944_v5  ;;  %v812_v21 = vadd.f32 %v2692_v20, %v2551_v39  ;;  %v2799_v16 = vmul.f32 %v1059_v63, %v2687_v17 }
 0x14a   : > { %v2252_v31 = vpop.eup %2251  ;;  %v1063_v14 = vadd.f32 1.0, %v2250_v46  ;;  %v2801_v19 = vmul.f32 0.5, %v804_v55  ;;  %v2803_v45 = vmul.f32 0.5, %v693_v42  ;;  %v946_v48 = vmul.f32 0.70710677, %v810_v60 }
 0x14b   : > { %v2786_v30 = vpop.f32.mrb[24].mxu0  ;;  %v2788_v61 = vpop.f32.mrb[24].mxu1  ;;  %v2810_v46 = vmul.f32 %v1060_v50, %v2694_v33  ;;  %v2813_v20 = vmul.f32 %v1062_v12, %v2721_v11  ;;  %v2815_v5 = vmul.f32 0.5, %v806_v7  ;;  %v2817_v17 = vmul.f32 0.5, %v697_v9 }
 0x14c   : > { %v2794_v62 = vpop.f32.mrb[25].mxu0  ;;  %v2796_v59 = vpop.f32.mrb[25].mxu1  ;;  %v1173_v33 = vpack.c.bf16 %v2724_v26, %v2685_v58  ;;  %v2829_v11 = vmul.f32 %v1063_v14, %v2728_v36  ;;  %2269 = verf.f32 %v946_v48  ;;  %v947_v7 = vmul.f32 0.70710677, %v812_v21 }
 0x14d   : > { %3124 = vst [vmem:[#allocation5_spill] sm:$0xff] %v2796_v59  ;;  %v2805_v56 = vpop.f32.mrb[26].mxu0  ;;  %v2807_v22 = vpop.f32.mrb[26].mxu1  ;;  %v945_v59 = vmul.f32 0.70710677, %v699_v53  ;;  %v1175_v9 = vpack.c.bf16 %v2751_v13, %v2701_v40  ;;  %v1172_v36 = vpack.c.bf16 %v2706_v51, %v2669_v6  ;;  %v1174_v40 = vpack.c.bf16 %v2719_v4, %v2672_v10 }
 0x14e   : > { %3125 = vst [vmem:[#allocation6_spill] sm:$0xff] %v2805_v56  ;;  %3126 = vst [vmem:[#allocation7_spill] sm:$0xff] %v2807_v22  ;;  %v2254_v28 = vpop.eup %2253  ;;  %v2819_v55 = vpop.f32.mrb[27].mxu0  ;;  %v2824_v56 = vmul.f32 %v1061_v3, %v2726_v29  ;;  %v1064_v22 = vadd.f32 1.0, %v2252_v31  ;;  %1503 = vmatprep.mubr.bf16.mxu0 %v1173_v33  ;;  %v701_v29 = vadd.f32 %v2696_v27, %v2543_v34  ;;  %v2839_v31 = vmul.f32 0.5, %v699_v53 }
 0x14f   : > { %v2821_v42 = vpop.f32.mrb[27].mxu1  ;;  %v2256_v63 = vpop.eup %2255  ;;  %v1066_v12 = vadd.f32 1.0, %v2254_v28  ;;  %v814_v3 = vadd.f32 %v2698_v37, %v2545_v35  ;;  %1600 = vmatprep.mubr.bf16.mxu1 %v1175_v9  ;;  %2271 = verf.f32 %v945_v59  ;;  %v2850_v28 = vmul.f32 0.5, %v812_v21  ;;  %1504 = vmatmul.mubr.bf16.gmra.mrb[36].mxu0 %v1172_v36 }
 0x150   : > { %3127 = vst [vmem:[#allocation8_spill] sm:$0xff] %v2821_v42  ;;  %v2258_v50 = vpop.eup %2257  ;;  %v2833_v42 = vmul.f32 0.5, %v810_v60  ;;  %v1065_v26 = vadd.f32 1.0, %v2256_v63  ;;  %v2846_v60 = vmul.f32 %v1064_v22, %v2760_v49  ;;  %v948_v27 = vmul.f32 0.70710677, %v701_v29  ;;  %1601 = vmatmul.mubr.bf16.gmra.mrb[36].mxu1 %v1174_v40 }
 0x151   : > { %v2260_v58 = vpop.eup %2259  ;;  %v1067_v14 = vadd.f32 1.0, %v2258_v50  ;;  %2273 = verf.f32 %v947_v7  ;;  %v950_v53 = vmul.f32 0.70710677, %v814_v3  ;;  %v703_v6 = vadd.f32 %v2703_v47, %v2549_v38 }
 0x152   : > { %v2262_v13 = vpop.eup %2261  ;;  %v2859_v49 = vmul.f32 %v1066_v12, %v2764_v24  ;;  %2275 = verf.f32 %v948_v27  ;;  %v816_v21 = vadd.f32 %v2712_v2, %v2551_v39  ;;  %v707_v59 = vadd.f32 %v2738_v23, %v2543_v34 }
 0x153   : > { %v2848_v48 = vpop.f32.mrb[28].mxu0  ;;  %v2264_v37 = vpop.eup %2263  ;;  %v2870_v33 = vmul.f32 %v1065_v26, %v2766_v25  ;;  %v1068_v50 = vadd.f32 1.0, %v2260_v58  ;;  %v1070_v7 = vadd.f32 1.0, %v2262_v13  ;;  %2277 = verf.f32 %v950_v53 }
 0x154   : > { %v2854_v10 = vpop.f32.mrb[28].mxu1  ;;  %v2856_v51 = vpop.f32.mrb[29].mxu0  ;;  %v2877_v2 = vmul.f32 %v1067_v14, %v2775_v18  ;;  %v1069_v12 = vadd.f32 1.0, %v2264_v37  ;;  %v949_v23 = vmul.f32 0.70710677, %v703_v6  ;;  %v820_v25 = vadd.f32 %v2740_v57, %v2545_v35 }
 0x155   : > { %v2266_v4 = vpop.eup %2265  ;;  %v2865_v22 = vpop.f32.mrb[29].mxu1  ;;  %v951_v36 = vmul.f32 0.70710677, %v816_v21  ;;  %v952_v26 = vmul.f32 0.70710677, %v707_v59  ;;  %v709_v13 = vadd.f32 %v2746_v15, %v2549_v38  ;;  %v822_v18 = vadd.f32 %v2748_v1, %v2551_v39 }
 0x156   : > { %v2867_v63 = vpop.f32.mrb[30].mxu0  ;;  %v2268_v47 = vpop.eup %2267  ;;  %v1071_v40 = vadd.f32 1.0, %v2266_v4  ;;  %2279 = verf.f32 %v949_v23  ;;  %v2890_v37 = vmul.f32 %v1068_v50, %v2790_v0  ;;  %v886_v53 = vmul.f32 0.5, %v814_v3 }
 0x157   : > { %3128 = vst [vmem:[#allocation9_spill] sm:$0xff] %v2867_v63  ;;  %v2872_v24 = vpop.f32.mrb[30].mxu1  ;;  %v2874_v9 = vpop.f32.mrb[31].mxu0  ;;  %v1072_v27 = vadd.f32 1.0, %v2268_v47  ;;  %v2879_v63 = vmul.f32 0.5, %v701_v29  ;;  %v2893_v29 = vmul.f32 %v1070_v7, %v2801_v19  ;;  %v2896_v57 = vmul.f32 %v1069_v12, %v2803_v45 }
 0x158   : > { %v2883_v58 = vpop.f32.mrb[31].mxu1  ;;  %v2270_v14 = vpop.eup %2269  ;;  %v954_v4 = vmul.f32 0.70710677, %v820_v25  ;;  %v2898_v47 = vmul.f32 0.5, %v703_v6  ;;  %2281 = verf.f32 %v951_v36  ;;  %v953_v23 = vmul.f32 0.70710677, %v709_v13 }
 0x159   : > { %v2901_v15 = vmul.f32 %v1071_v40, %v2815_v5  ;;  %v2904_v1 = vmul.f32 %v1072_v27, %v2817_v17  ;;  %v2906_v0 = vmul.f32 0.5, %v816_v21  ;;  %v2908_v50 = vmul.f32 0.5, %v707_v59  ;;  %v2272_v19 = vpop.eup %2271 }
 0x15a   : > { %v1074_v3 = vadd.f32 1.0, %v2270_v14  ;;  %2283 = verf.f32 %v952_v26  ;;  %v955_v7 = vmul.f32 0.70710677, %v822_v18  ;;  %v1177_v45 = vpack.c.bf16 %v2824_v56, %v2780_v54 }
 0x15b   : > { %v2274_v6 = vpop.eup %2273  ;;  %2285 = verf.f32 %v954_v4  ;;  %v1179_v5 = vpack.c.bf16 %v2829_v11, %v2799_v16  ;;  %v711_v17 = vadd.f32 %v2753_v32, %v2543_v34  ;;  %v824_v21 = vadd.f32 %v2755_v43, %v2545_v35 }
 0x15c   : > { %v2276_v59 = vpop.eup %2275  ;;  %2287 = verf.f32 %v953_v23  ;;  %1511 = vmatprep.mubr.bf16.mxu0 %v1177_v45  ;;  %v1176_v12 = vpack.c.bf16 %v2810_v46, %v2758_v44  ;;  %v1178_v54 = vpack.c.bf16 %v2813_v20, %v2773_v52  ;;  %v713_v56 = vadd.f32 %v2762_v41, %v2549_v38 }
 0x15d   : > { %v2278_v36 = vpop.eup %2277  ;;  %v1073_v16 = vadd.f32 1.0, %v2272_v19  ;;  %v2924_v11 = vmul.f32 0.5, %v820_v25  ;;  %2289 = verf.f32 %v955_v7  ;;  %1608 = vmatprep.mubr.bf16.mxu1 %v1179_v5  ;;  %v956_v32 = vmul.f32 0.70710677, %v711_v17 }
 0x15e   : > { %v1075_v43 = vadd.f32 1.0, %v2274_v6  ;;  %v2926_v40 = vmul.f32 0.5, %v709_v13  ;;  %v958_v27 = vmul.f32 0.70710677, %v824_v21  ;;  %1512 = vmatmul.mubr.bf16.gmra.mrb[40].mxu0 %v1176_v12  ;;  %1609 = vmatmul.mubr.bf16.gmra.mrb[40].mxu1 %v1178_v54  ;;  %v957_v44 = vmul.f32 0.70710677, %v713_v56 }
 0x15f   : > { %v2929_v46 = vmul.f32 %v1074_v3, %v2833_v42  ;;  %2291 = verf.f32 %v956_v32  ;;  %v826_v41 = vadd.f32 %v2770_v8, %v2551_v39  ;;  %v717_v52 = vadd.f32 %v2786_v30, %v2543_v34 }
 0x160   : > { %v2280_v20 = vpop.eup %2279  ;;  %v1076_v25 = vadd.f32 1.0, %v2276_v59  ;;  %v1078_v26 = vadd.f32 1.0, %v2278_v36  ;;  %2293 = verf.f32 %v958_v27  ;;  %v830_v13 = vadd.f32 %v2788_v61, %v2545_v35  ;;  %v3129_v36 = vld [vmem:[#allocation5_spill] sm:$0xff]  ;;  %v3130_v27 = vld [vmem:[#allocation6_spill] sm:$0xff] }
 0x161   : > { %v2937_v14 = vmul.f32 0.5, %v822_v18  ;;  %2295 = verf.f32 %v957_v44  ;;  %v959_v4 = vmul.f32 0.70710677, %v826_v41  ;;  %v719_v42 = vadd.f32 %v2794_v62, %v2549_v38 }
 0x162   : > { %v2282_v23 = vpop.eup %2281  ;;  %v2942_v8 = vmul.f32 %v1073_v16, %v2839_v31  ;;  %v2945_v30 = vmul.f32 %v1075_v43, %v2850_v28  ;;  %v2947_v19 = vmul.f32 0.5, %v711_v17  ;;  %v960_v3 = vmul.f32 0.70710677, %v717_v52 }
 0x163   : > { %v1077_v7 = vadd.f32 1.0, %v2280_v20  ;;  %v2949_v45 = vmul.f32 0.5, %v824_v21  ;;  %2297 = verf.f32 %v959_v4  ;;  %v962_v61 = vmul.f32 0.70710677, %v830_v13  ;;  %v3131_v20 = vld [vmem:[#allocation7_spill] sm:$0xff] }
 0x164   : > { %v2284_v18 = vpop.eup %2283  ;;  %v2952_v6 = vmul.f32 %v1076_v25, %v2879_v63  ;;  %v2954_v62 = vmul.f32 %v1078_v26, %v886_v53  ;;  %v2956_v5 = vmul.f32 0.5, %v713_v56  ;;  %2299 = verf.f32 %v960_v3 }
 0x165   : > { %v2286_v31 = vpop.eup %2285  ;;  %v1079_v28 = vadd.f32 1.0, %v2282_v23  ;;  %v2958_v59 = vmul.f32 0.5, %v826_v41  ;;  %v2960_v17 = vmul.f32 0.5, %v717_v52  ;;  %v961_v12 = vmul.f32 0.70710677, %v719_v42 }
 0x166   : > { %v2288_v21 = vpop.eup %2287  ;;  %v2962_v54 = vmul.f32 0.5, %v830_v13  ;;  %v832_v16 = vadd.f32 %v3129_v36, %v2551_v39  ;;  %v1181_v63 = vpack.c.bf16 %v2896_v57, %v2870_v33  ;;  %v1183_v53 = vpack.c.bf16 %v2901_v15, %v2877_v2 }
 0x167   : > { %v2290_v56 = vpop.eup %2289  ;;  %v2971_v32 = vmul.f32 %v1077_v7, %v2898_v47  ;;  %v1080_v43 = vadd.f32 1.0, %v2284_v18  ;;  %2301 = verf.f32 %v962_v61  ;;  %v721_v44 = vadd.f32 %v3130_v27, %v2543_v34 }
 0x168   : > { %v1082_v41 = vadd.f32 1.0, %v2286_v31  ;;  %v963_v52 = vmul.f32 0.70710677, %v832_v16  ;;  %1519 = vmatprep.mubr.bf16.mxu0 %v1181_v63  ;;  %1616 = vmatprep.mubr.bf16.mxu1 %v1183_v53  ;;  %v834_v25 = vadd.f32 %v3131_v20, %v2545_v35  ;;  %v1180_v33 = vpack.c.bf16 %v2890_v37, %v2846_v60  ;;  %v3132_v37 = vld [vmem:[#allocation8_spill] sm:$0xff] }
 0x169   : > { %v2292_v2 = vpop.eup %2291  ;;  %v1081_v57 = vadd.f32 1.0, %v2288_v21  ;;  %2303 = verf.f32 %v961_v12  ;;  %v964_v47 = vmul.f32 0.70710677, %v721_v44  ;;  %v1182_v15 = vpack.c.bf16 %v2893_v29, %v2859_v49 }
 0x16a   : > { %v2294_v26 = vpop.eup %2293  ;;  %v1143_v13 = vmul.f32 %v1079_v28, %v2906_v0  ;;  %v1083_v4 = vadd.f32 1.0, %v2290_v56  ;;  %2305 = verf.f32 %v963_v52  ;;  %v966_v23 = vmul.f32 0.70710677, %v834_v25  ;;  %1520 = vmatmul.mubr.bf16.gmra.mrb[44].mxu0 %v1180_v33 }
 0x16b   : > { %v2296_v3 = vpop.eup %2295  ;;  %v2982_v7 = vmul.f32 0.5, %v719_v42  ;;  %2307 = verf.f32 %v964_v47  ;;  %1617 = vmatmul.mubr.bf16.gmra.mrb[44].mxu1 %v1182_v15  ;;  %v723_v60 = vadd.f32 %v2819_v55, %v2549_v38  ;;  %v836_v61 = vadd.f32 %v3132_v37, %v2551_v39 }
 0x16c   : > { %v2989_v49 = vmul.f32 %v1080_v43, %v2908_v50  ;;  %v2992_v29 = vmul.f32 %v1082_v41, %v2924_v11  ;;  %2309 = verf.f32 %v966_v23  ;;  %v2996_v0 = vadd.f32 %v2848_v48, %v2543_v34 }
 0x16d   : > { %v2298_v42 = vpop.eup %2297  ;;  %v2999_v18 = vmul.f32 %v1081_v57, %v2926_v40  ;;  %v1084_v31 = vadd.f32 1.0, %v2292_v2  ;;  %v1086_v55 = vadd.f32 1.0, %v2294_v26  ;;  %v965_v28 = vmul.f32 0.70710677, %v723_v60 }
 0x16e   : > { %v2300_v12 = vpop.eup %2299  ;;  %v3002_v21 = vmul.f32 %v1083_v4, %v2937_v14  ;;  %v1085_v50 = vadd.f32 1.0, %v2296_v3  ;;  %v3004_v36 = vmul.f32 0.5, %v832_v16  ;;  %v967_v11 = vmul.f32 0.70710677, %v836_v61 }
 0x16f   : > { %v1087_v63 = vadd.f32 1.0, %v2298_v42  ;;  %v900_v53 = vmul.f32 0.5, %v721_v44  ;;  %2311 = verf.f32 %v965_v28  ;;  %v3008_v48 = vadd.f32 %v2854_v10, %v2545_v35 }
 0x170   : > { %v902_v40 = vmul.f32 0.5, %v834_v25  ;;  %2313 = verf.f32 %v967_v11  ;;  %v968_v56 = vmul.f32 0.70710677, %v2996_v0  ;;  %v3013_v43 = vadd.f32 %v2856_v51, %v2549_v38 }
 0x171   : > { %v2302_v14 = vpop.eup %2301  ;;  %v3016_v16 = vmul.f32 %v1084_v31, %v2947_v19  ;;  %v3019_v27 = vmul.f32 %v1086_v55, %v2949_v45  ;;  %v1088_v44 = vadd.f32 1.0, %v2300_v12  ;;  %v970_v41 = vmul.f32 0.70710677, %v3008_v48 }
 0x172   : > { %v1149_v10 = vmul.f32 %v1085_v50, %v2956_v5  ;;  %v901_v52 = vmul.f32 0.5, %v723_v60  ;;  %v903_v20 = vmul.f32 0.5, %v836_v61  ;;  %v969_v25 = vmul.f32 0.70710677, %v3013_v43  ;;  %v3133_v5 = vld [vmem:[#allocation9_spill] sm:$0xff] }
 0x173   : > { %v2304_v33 = vpop.eup %2303  ;;  %v1151_v51 = vmul.f32 %v1087_v63, %v2958_v59  ;;  %v3027_v2 = vadd.f32 %v2865_v22, %v2551_v39  ;;  %v1185_v19 = vpack.c.bf16 %v2971_v32, %v2942_v8  ;;  %v1187_v45 = vpack.c.bf16 %v1143_v13, %v2945_v30 }
 0x174   : > { %v2306_v57 = vpop.eup %2305  ;;  %v1090_v47 = vadd.f32 1.0, %v2302_v14  ;;  %2315 = verf.f32 %v968_v56  ;;  %v731_v15 = vadd.f32 %v3133_v5, %v2543_v34  ;;  %v3036_v26 = vadd.f32 %v2872_v24, %v2545_v35 }
 0x175   : > { %v2308_v59 = vpop.eup %2307  ;;  %v3039_v4 = vmul.f32 %v1088_v44, %v2960_v17  ;;  %2317 = verf.f32 %v970_v41  ;;  %v971_v22 = vmul.f32 0.70710677, %v3027_v2  ;;  %1527 = vmatprep.mubr.bf16.mxu0 %v1185_v19  ;;  %1624 = vmatprep.mubr.bf16.mxu1 %v1187_v45  ;;  %v1184_v8 = vpack.c.bf16 %v2952_v6, %v2904_v1 }
 0x176   : > { %v2310_v30 = vpop.eup %2309  ;;  %v1089_v32 = vadd.f32 1.0, %v2304_v33  ;;  %v1092_v13 = vadd.f32 1.0, %v2308_v59  ;;  %2319 = verf.f32 %v969_v25  ;;  %v972_v34 = vmul.f32 0.70710677, %v731_v15 }
 0x177   : > { %v1091_v23 = vadd.f32 1.0, %v2306_v57  ;;  %v1094_v35 = vadd.f32 1.0, %v2310_v30  ;;  %2321 = verf.f32 %v971_v22  ;;  %v974_v24 = vmul.f32 0.70710677, %v3036_v26  ;;  %1528 = vmatmul.mubr.bf16.gmra.mrb[48].mxu0 %v1184_v8 }
 0x178   : > { %v1156_v17 = vmul.f32 %v1092_v13, %v900_v53  ;;  %2323 = verf.f32 %v972_v34  ;;  %v1186_v3 = vpack.c.bf16 %v2954_v62, %v2929_v46  ;;  %v733_v60 = vadd.f32 %v2874_v9, %v2549_v38 }
 0x179   : > { %v2312_v1 = vpop.eup %2311  ;;  %v3049_v6 = vmul.f32 %v1094_v35, %v902_v40  ;;  %2325 = verf.f32 %v974_v24  ;;  %v846_v37 = vadd.f32 %v2883_v58, %v2551_v39  ;;  %v1189_v61 = vpack.c.bf16 %v1149_v10, %v2999_v18  ;;  %v3073_v24 = vld [vmem:[%s375_s11] ss:$0 sm:$0xff] }
 0x17a   : > { %v2314_v42 = vpop.eup %2313  ;;  %v1154_v31 = vmul.f32 %v1090_v47, %v2962_v54  ;;  %v1093_v55 = vadd.f32 1.0, %v2312_v1  ;;  %1625 = vmatmul.mubr.bf16.gmra.mrb[48].mxu1 %v1186_v3  ;;  %v973_v28 = vmul.f32 0.70710677, %v733_v60  ;;  %v1191_v46 = vpack.c.bf16 %v1151_v51, %v3002_v21 }
 0x17b   : > { %v1153_v62 = vmul.f32 %v1089_v32, %v2982_v7  ;;  %v1095_v38 = vadd.f32 1.0, %v2314_v42  ;;  %v975_v9 = vmul.f32 0.70710677, %v846_v37  ;;  %1535 = vmatprep.mubr.bf16.mxu0 %v1189_v61  ;;  %v1188_v12 = vpack.c.bf16 %v3016_v16, %v2989_v49 }
 0x17c   : > { %v1155_v39 = vmul.f32 %v1091_v23, %v3004_v36  ;;  %v1157_v58 = vmul.f32 %v1093_v55, %v901_v52  ;;  %2327 = verf.f32 %v973_v28  ;;  %1632 = vmatprep.mubr.bf16.mxu1 %v1191_v46  ;;  %v1190_v54 = vpack.c.bf16 %v3019_v27, %v2992_v29 }
 0x17d   : > { %v1159_v18 = vmul.f32 %v1095_v38, %v903_v20  ;;  %2329 = verf.f32 %v975_v9  ;;  %v1192_v21 = vpack.c.bf16 %v1156_v17, %v3039_v4  ;;  %v1194_v7 = vpack.c.bf16 %v3049_v6, %v1154_v31 }
 0x17e   : > { %v2316_v50 = vpop.eup %2315  ;;  %v1193_v11 = vpack.c.bf16 %v1157_v58, %v1153_v62  ;;  %v904_v29 = vmul.f32 0.5, %v2996_v0  ;;  %v908_v27 = vmul.f32 0.5, %v731_v15  ;;  %v906_v41 = vmul.f32 0.5, %v3008_v48  ;;  %v1686_v58 = vpop.permute.xlu1 %1685 }
 0x17f   : > { %v2318_v63 = vpop.eup %2317  ;;  %1536 = vmatmul.mubr.bf16.gmra.mrb[52].mxu0 %v1188_v12  ;;  %v1195_v53 = vpack.c.bf16 %v1159_v18, %v1155_v39  ;;  %v1096_v40 = vadd.f32 1.0, %v2316_v50  ;;  %v910_v10 = vmul.f32 0.5, %v3036_v26  ;;  %v905_v5 = vmul.f32 0.5, %v3013_v43  ;;  %v1676_v43 = vpop.permute.xlu0 %1675 }
 0x180   : > { %v2320_v49 = vpop.eup %2319  ;;  %1543 = vmatprep.mubr.bf16.mxu0 %v1193_v11  ;;  %v1098_v14 = vadd.f32 1.0, %v2318_v63  ;;  %v909_v59 = vmul.f32 0.5, %v733_v60  ;;  %v907_v48 = vmul.f32 0.5, %v3027_v2  ;;  %v911_v4 = vmul.f32 0.5, %v846_v37 }
 0x181   : > { %v2322_v36 = vpop.eup %2321  ;;  %v1160_v20 = vmul.f32 %v1096_v40, %v904_v29  ;;  %v1097_v25 = vadd.f32 1.0, %v2320_v49 }
 0x182   : > { %v2324_v56 = vpop.eup %2323  ;;  %1633 = vmatmul.mubr.bf16.gmra.mrb[52].mxu1 %v1190_v54  ;;  %v1162_v19 = vmul.f32 %v1098_v14, %v906_v41  ;;  %v1099_v45 = vadd.f32 1.0, %v2322_v36  ;;  %v1691_v41 = vpop.permute.xlu1 %1690 }
 0x183   : > { %v2326_v16 = vpop.eup %2325  ;;  %v1100_v44 = vadd.f32 1.0, %v2324_v56  ;;  %1640 = vmatprep.mubr.bf16.mxu1 %v1195_v53  ;;  %v1161_v8 = vmul.f32 %v1097_v25, %v905_v5  ;;  %v1681_v38 = vpop.permute.xlu0 %1680 }
 0x184   : > { %v1102_v52 = vadd.f32 1.0, %v2326_v16  ;;  %v1163_v32 = vmul.f32 %v1099_v45, %v907_v48 }
 0x185   : > { %v1164_v33 = vmul.f32 %v1100_v44, %v908_v27 }
 0x186   : > { %v2328_v51 = vpop.eup %2327  ;;  %v1166_v57 = vmul.f32 %v1102_v52, %v910_v10 }
 0x187   : > { %v2330_v47 = vpop.eup %2329  ;;  %v1101_v0 = vadd.f32 1.0, %v2328_v51  ;;  %1544 = vmatmul.mubr.bf16.gmra.mrb[56].mxu0 %v1192_v21  ;;  %v1196_v15 = vpack.c.bf16 %v1164_v33, %v1160_v20 }
 0x188   : > { %v1103_v26 = vadd.f32 1.0, %v2330_v47  ;;  %v1198_v22 = vpack.c.bf16 %v1166_v57, %v1162_v19 }
 0x189   : > { %v1165_v30 = vmul.f32 %v1101_v0, %v909_v59 }
 0x18a   : > { %v1167_v13 = vmul.f32 %v1103_v26, %v911_v4  ;;  %1641 = vmatmul.mubr.bf16.gmra.mrb[56].mxu1 %v1194_v7  ;;  %v1696_v26 = vpop.permute.xlu0 %1695 }
 0x18b   : > { %v1197_v34 = vpack.c.bf16 %v1165_v30, %v1161_v8  ;;  %v1701_v30 = vpop.permute.xlu1 %1700 }
 0x18c   : > { %v1199_v23 = vpack.c.bf16 %v1167_v13, %v1163_v32 }
 0x18d   : > { %1551 = vmatprep.mubr.bf16.mxu0 %v1197_v34 }
 0x18e   : > { %1648 = vmatprep.mubr.bf16.mxu1 %v1199_v23 }
 0x18f   : > { %1552 = vmatmul.mubr.bf16.gmra.mrb[60].mxu0 %v1196_v15 }
 0x192   : > { %1649 = vmatmul.mubr.bf16.gmra.mrb[60].mxu1 %v1198_v22 }
 0x213   : > { %v1999_v2 = vpop.f32.mrb[32].mxu0  ;;  %v2063_v35 = vpop.f32.mrb[32].mxu1 }
 0x214   : > { %v2000_v17 = vpop.f32.mrb[33].mxu0  ;;  %v2064_v3 = vpop.f32.mrb[33].mxu1 }
 0x215   : > { %v2001_v60 = vadd.f32 %v2000_v17, %v1999_v2  ;;  %v2065_v1 = vadd.f32 %v2064_v3, %v2063_v35  ;;  %v2002_v6 = vpop.f32.mrb[34].mxu0  ;;  %v2066_v37 = vpop.f32.mrb[34].mxu1 }
 0x216   : > { %v2003_v61 = vpop.f32.mrb[35].mxu0  ;;  %v2067_v42 = vpop.f32.mrb[35].mxu1 }
 0x217   : > { %v1498_v31 = vadd.f32 %v2001_v60, %v3073_v24  ;;  %v2004_v55 = vadd.f32 %v2003_v61, %v2002_v6  ;;  %v2068_v28 = vadd.f32 %v2067_v42, %v2066_v37 }
 0x219   : > { %v1501_v46 = vadd.f32 %v2004_v55, %v3073_v24  ;;  %v1595_v62 = vadd.f32 %v2065_v1, %v1498_v31  ;;  %v1706_v55 = vpop.permute.xlu0 %1705 }
 0x21b   : > { %v1753_v9 = vmul.f32 %v1676_v43, %v1595_v62  ;;  %v1598_v12 = vadd.f32 %v2068_v28, %v1501_v46  ;;  %v1711_v62 = vpop.permute.xlu1 %1710 }
 0x21d   : > { %1769 = vst [vmem:[%s3081_s13] sm:$0xff] %v1753_v9  ;;  %v1754_v39 = vmul.f32 %v1681_v38, %v1598_v12 }
 0x21f   : > { %1770 = vst [vmem:[%s3081_s13 + $0x8] sm:$0xff] %v1754_v39 }
 0x222   : > { %v2005_v54 = vpop.f32.mrb[36].mxu0 }
 0x223   : > { %v2069_v18 = vpop.f32.mrb[36].mxu1  ;;  %v2006_v21 = vpop.f32.mrb[37].mxu0 }
 0x224   : > { %v2070_v7 = vpop.f32.mrb[37].mxu1  ;;  %v2007_v50 = vadd.f32 %v2006_v21, %v2005_v54  ;;  %v2008_v63 = vpop.f32.mrb[38].mxu0 }
 0x225   : > { %v2071_v11 = vadd.f32 %v2070_v7, %v2069_v18  ;;  %v2072_v53 = vpop.f32.mrb[38].mxu1  ;;  %v2009_v49 = vpop.f32.mrb[39].mxu0 }
 0x226   : > { %v2073_v36 = vpop.f32.mrb[39].mxu1  ;;  %v1506_v40 = vadd.f32 %v2007_v50, %v3073_v24  ;;  %v2010_v56 = vadd.f32 %v2009_v49, %v2008_v63 }
 0x227   : > { %v2074_v14 = vadd.f32 %v2073_v36, %v2072_v53 }
 0x228   : > { %v1603_v16 = vadd.f32 %v2071_v11, %v1506_v40  ;;  %v1509_v29 = vadd.f32 %v2010_v56, %v3073_v24  ;;  %v1716_v56 = vpop.permute.xlu0 %1715 }
 0x22a   : > { %v1755_v27 = vmul.f32 %v1686_v58, %v1603_v16  ;;  %v1606_v44 = vadd.f32 %v2074_v14, %v1509_v29 }
 0x22c   : > { %1771 = vst [vmem:[%s3081_s13 + $0x10] sm:$0xff] %v1755_v27  ;;  %v1756_v10 = vmul.f32 %v1691_v41, %v1606_v44  ;;  %v1721_v44 = vpop.permute.xlu1 %1720 }
 0x22e   : > { %1772 = vst [vmem:[%s3081_s13 + $0x18] sm:$0xff] %v1756_v10 }
 0x231   : > { %v2011_v52 = vpop.f32.mrb[40].mxu0  ;;  %v2075_v20 = vpop.f32.mrb[40].mxu1 }
 0x232   : > { %v2012_v25 = vpop.f32.mrb[41].mxu0  ;;  %v2076_v33 = vpop.f32.mrb[41].mxu1 }
 0x233   : > { %v2013_v51 = vadd.f32 %v2012_v25, %v2011_v52  ;;  %v2077_v19 = vadd.f32 %v2076_v33, %v2075_v20  ;;  %v2014_v45 = vpop.f32.mrb[42].mxu0  ;;  %v2078_v57 = vpop.f32.mrb[42].mxu1 }
 0x234   : > { %v2015_v47 = vpop.f32.mrb[43].mxu0  ;;  %v2079_v5 = vpop.f32.mrb[43].mxu1 }
 0x235   : > { %v1514_v59 = vadd.f32 %v2013_v51, %v3073_v24  ;;  %v2016_v0 = vadd.f32 %v2015_v47, %v2014_v45  ;;  %v2080_v15 = vadd.f32 %v2079_v5, %v2078_v57 }
 0x237   : > { %v1611_v48 = vadd.f32 %v2077_v19, %v1514_v59  ;;  %v1517_v4 = vadd.f32 %v2016_v0, %v3073_v24 }
 0x239   : > { %v1757_v22 = vmul.f32 %v1696_v26, %v1611_v48  ;;  %v1614_v8 = vadd.f32 %v2080_v15, %v1517_v4  ;;  %v1726_v15 = vpop.permute.xlu0 %1725 }
 0x23b   : > { %1773 = vst [vmem:[%s3081_s13 + $0x20] sm:$0xff] %v1757_v22  ;;  %v1758_v32 = vmul.f32 %v1701_v30, %v1614_v8  ;;  %v1731_v8 = vpop.permute.xlu1 %1730 }
 0x23d   : > { %1774 = vst [vmem:[%s3081_s13 + $0x28] sm:$0xff] %v1758_v32  ;;  %v2017_v13 = vpop.f32.mrb[44].mxu0 }
 0x23e   : > { %v2081_v34 = vpop.f32.mrb[44].mxu1  ;;  %v2018_v23 = vpop.f32.mrb[45].mxu0 }
 0x23f   : > { %v2019_v43 = vadd.f32 %v2018_v23, %v2017_v13  ;;  %v2082_v2 = vpop.f32.mrb[45].mxu1  ;;  %v2020_v35 = vpop.f32.mrb[46].mxu0 }
 0x240   : > { %v2083_v17 = vadd.f32 %v2082_v2, %v2081_v34  ;;  %v2084_v3 = vpop.f32.mrb[46].mxu1  ;;  %v2021_v60 = vpop.f32.mrb[47].mxu0 }
 0x241   : > { %v1522_v1 = vadd.f32 %v2019_v43, %v3073_v24  ;;  %v2022_v6 = vadd.f32 %v2021_v60, %v2020_v35  ;;  %v2085_v37 = vpop.f32.mrb[47].mxu1 }
 0x242   : > { %v2086_v61 = vadd.f32 %v2085_v37, %v2084_v3 }
 0x243   : > { %v1619_v42 = vadd.f32 %v2083_v17, %v1522_v1  ;;  %v1525_v31 = vadd.f32 %v2022_v6, %v3073_v24 }
 0x245   : > { %v1759_v28 = vmul.f32 %v1706_v55, %v1619_v42  ;;  %v1622_v46 = vadd.f32 %v2086_v61, %v1525_v31  ;;  %v1736_v61 = vpop.permute.xlu0 %1735 }
 0x247   : > { %1775 = vst [vmem:[%s3081_s13 + $0x30] sm:$0xff] %v1759_v28  ;;  %v1760_v38 = vmul.f32 %v1711_v62, %v1622_v46  ;;  %v1741_v46 = vpop.permute.xlu1 %1740 }
 0x249   : > { %1776 = vst [vmem:[%s3081_s13 + $0x38] sm:$0xff] %v1760_v38 }
 0x24a   : > { %v2023_v9 = vpop.f32.mrb[48].mxu0 }
 0x24b   : > { %v2024_v12 = vpop.f32.mrb[49].mxu0 }
 0x24c   : > { %v2025_v39 = vadd.f32 %v2024_v12, %v2023_v9  ;;  %v2026_v58 = vpop.f32.mrb[50].mxu0 }
 0x24d   : > { %v2087_v54 = vpop.f32.mrb[48].mxu1  ;;  %v2027_v18 = vpop.f32.mrb[51].mxu0 }
 0x24e   : > { %v1530_v21 = vadd.f32 %v2025_v39, %v3073_v24  ;;  %v2088_v7 = vpop.f32.mrb[49].mxu1  ;;  %v2028_v50 = vadd.f32 %v2027_v18, %v2026_v58 }
 0x24f   : > { %v2089_v11 = vadd.f32 %v2088_v7, %v2087_v54  ;;  %v2090_v63 = vpop.f32.mrb[50].mxu1 }
 0x250   : > { %v1533_v53 = vadd.f32 %v2028_v50, %v3073_v24  ;;  %v2091_v49 = vpop.f32.mrb[51].mxu1 }
 0x251   : > { %v1627_v36 = vadd.f32 %v2089_v11, %v1530_v21  ;;  %v2092_v40 = vadd.f32 %v2091_v49, %v2090_v63  ;;  %v1746_v49 = vpop.permute.xlu0 %1745 }
 0x252   : > { %v2029_v14 = vpop.f32.mrb[52].mxu0 }
 0x253   : > { %v1761_v16 = vmul.f32 %v1716_v56, %v1627_v36  ;;  %v1630_v29 = vadd.f32 %v2092_v40, %v1533_v53  ;;  %v2030_v27 = vpop.f32.mrb[53].mxu0  ;;  %v1751_v56 = vpop.permute.xlu1 %1750 }
 0x254   : > { %v2031_v41 = vadd.f32 %v2030_v27, %v2029_v14  ;;  %v2032_v10 = vpop.f32.mrb[54].mxu0 }
 0x255   : > { %1777 = vst [vmem:[%s3081_s13 + $0x40] sm:$0xff] %v1761_v16  ;;  %v1762_v52 = vmul.f32 %v1721_v44, %v1630_v29  ;;  %v2093_v20 = vpop.f32.mrb[52].mxu1  ;;  %v2033_v25 = vpop.f32.mrb[55].mxu0 }
 0x256   : > { %v1538_v33 = vadd.f32 %v2031_v41, %v3073_v24  ;;  %v2094_v51 = vpop.f32.mrb[53].mxu1  ;;  %v2034_v19 = vadd.f32 %v2033_v25, %v2032_v10 }
 0x257   : > { %1778 = vst [vmem:[%s3081_s13 + $0x48] sm:$0xff] %v1762_v52  ;;  %v2095_v45 = vadd.f32 %v2094_v51, %v2093_v20  ;;  %v2096_v57 = vpop.f32.mrb[54].mxu1 }
 0x258   : > { %v1541_v47 = vadd.f32 %v2034_v19, %v3073_v24  ;;  %v2097_v5 = vpop.f32.mrb[55].mxu1 }
 0x259   : > { %v1635_v59 = vadd.f32 %v2095_v45, %v1538_v33  ;;  %v2098_v0 = vadd.f32 %v2097_v5, %v2096_v57 }
 0x25a   : > { %v2035_v48 = vpop.f32.mrb[56].mxu0 }
 0x25b   : > { %v1763_v4 = vmul.f32 %v1726_v15, %v1635_v59  ;;  %v1638_v26 = vadd.f32 %v2098_v0, %v1541_v47  ;;  %v2036_v22 = vpop.f32.mrb[57].mxu0 }
 0x25c   : > { %v2037_v30 = vadd.f32 %v2036_v22, %v2035_v48  ;;  %v2038_v32 = vpop.f32.mrb[58].mxu0 }
 0x25d   : > { %1779 = vst [vmem:[%s3081_s13 + $0x50] sm:$0xff] %v1763_v4  ;;  %v1764_v13 = vmul.f32 %v1731_v8, %v1638_v26  ;;  %v2099_v34 = vpop.f32.mrb[56].mxu1  ;;  %v2039_v23 = vpop.f32.mrb[59].mxu0 }
 0x25e   : > { %v1546_v43 = vadd.f32 %v2037_v30, %v3073_v24  ;;  %v2100_v2 = vpop.f32.mrb[57].mxu1  ;;  %v2040_v35 = vadd.f32 %v2039_v23, %v2038_v32 }
 0x25f   : > { %1780 = vst [vmem:[%s3081_s13 + $0x58] sm:$0xff] %v1764_v13  ;;  %v2101_v17 = vadd.f32 %v2100_v2, %v2099_v34  ;;  %v2102_v3 = vpop.f32.mrb[58].mxu1 }
 0x260   : > { %v1549_v60 = vadd.f32 %v2040_v35, %v3073_v24  ;;  %v2103_v1 = vpop.f32.mrb[59].mxu1 }
 0x261   : > { %v1643_v6 = vadd.f32 %v2101_v17, %v1546_v43  ;;  %v2104_v37 = vadd.f32 %v2103_v1, %v2102_v3 }
 0x262   : > { %v2041_v42 = vpop.f32.mrb[60].mxu0 }
 0x263   : > { %v1765_v31 = vmul.f32 %v1736_v61, %v1643_v6  ;;  %v1646_v55 = vadd.f32 %v2104_v37, %v1549_v60  ;;  %v2042_v28 = vpop.f32.mrb[61].mxu0 }
 0x264   : > { %v2043_v62 = vadd.f32 %v2042_v28, %v2041_v42  ;;  %v2044_v38 = vpop.f32.mrb[62].mxu0 }
 0x265   : > { %1781 = vst [vmem:[%s3081_s13 + $0x60] sm:$0xff] %v1765_v31  ;;  %v1766_v9 = vmul.f32 %v1741_v46, %v1646_v55  ;;  %v2105_v12 = vpop.f32.mrb[60].mxu1  ;;  %v2045_v39 = vpop.f32.mrb[63].mxu0 }
 0x266   : > { %v1554_v58 = vadd.f32 %v2043_v62, %v3073_v24  ;;  %v2106_v54 = vpop.f32.mrb[61].mxu1  ;;  %v2046_v18 = vadd.f32 %v2045_v39, %v2044_v38 }
 0x267   : > { %1782 = vst [vmem:[%s3081_s13 + $0x68] sm:$0xff] %v1766_v9  ;;  %v2107_v21 = vadd.f32 %v2106_v54, %v2105_v12  ;;  %v2108_v7 = vpop.f32.mrb[62].mxu1 }
 0x268   : > { %v1557_v50 = vadd.f32 %v2046_v18, %v3073_v24  ;;  %v2109_v11 = vpop.f32.mrb[63].mxu1 }
 0x269   : > { %v1651_v63 = vadd.f32 %v2107_v21, %v1554_v58  ;;  %v2110_v53 = vadd.f32 %v2109_v11, %v2108_v7 }
 0x26b   : > { %v1767_v36 = vmul.f32 %v1746_v49, %v1651_v63  ;;  %v1654_v40 = vadd.f32 %v2110_v53, %v1557_v50 }
 0x26d   : > { %1783 = vst [vmem:[%s3081_s13 + $0x70] sm:$0xff] %v1767_v36  ;;  %v1768_v14 = vmul.f32 %v1751_v56, %v1654_v40 }
 0x26f   : > { %1784 = vst [vmem:[%s3081_s13 + $0x78] sm:$0xff] %v1768_v14 }
 0x270 PF: > { %s23_s29 = sadd.s32 1, %s2351_s29  }
 0x271   : > { %p20_p13 = scmp.ge.s32.totalorder %s23_s29, 11  }
 0x273   :  { %22 = sbr.rel (!%p20_p13) target bundleno = 16 (0x10), region = 89 }

</bundles_post_ra>
